<compile_context>
chip_gen: v7x
topology: tpu7x:2x2x1
jax: 0.10.0
libtpu: 0.0.40
codegen_flags: <defaults>
</compile_context>

<pallas_src>
import functools

import jax
import jax.numpy as jnp
from jax.experimental import pallas as pl
from jax.experimental.pallas import tpu as pltpu


# ----------------------------------------------------------------------------
# helpers
# ----------------------------------------------------------------------------
def _round_up(x, m):
    return (x + m - 1) // m * m


# ----------------------------------------------------------------------------
# fused matmul + bias (+ residual) (+ relu) Pallas kernel
# ----------------------------------------------------------------------------
def _make_matmul_kernel(relu, with_res):
    """out = act((x @ w) + bias [+ residual]); bf16 MXU, f32 accumulator."""

    def kernel(x_ref, w_ref, b_ref, *rest):
        if with_res:
            r_ref, o_ref, acc_ref = rest
        else:
            o_ref, acc_ref = rest
            r_ref = None

        @pl.when(pl.program_id(2) == 0)
        def _():
            acc_ref[...] = jnp.zeros_like(acc_ref)

        acc_ref[...] += jnp.dot(x_ref[...], w_ref[...],
                                preferred_element_type=jnp.float32)

        @pl.when(pl.program_id(2) == pl.num_programs(2) - 1)
        def _():
            y = acc_ref[...] + b_ref[...]
            if r_ref is not None:
                y = y + r_ref[...].astype(jnp.float32)
            if relu:
                y = jnp.maximum(y, 0.0)
            o_ref[...] = y.astype(o_ref.dtype)

    return kernel


def matmul_bn_act(x, w_pad, bias_pad, n_out, residual=None, relu=True,
                  out_dtype=jnp.bfloat16):
    """x:[M,K] (any float), w_pad:[Kpad,Npad] bf16 (BN scale folded in),
    bias_pad:[1,Npad] f32. Returns [M, n_out] in out_dtype."""
    M, K = x.shape
    Kpad, Npad = w_pad.shape

    # tile sizes (bf16-friendly: sublane multiples of 16, lanes of 128)
    tn = 256 if Npad % 256 == 0 else 128
    tk = 512 if Kpad % 512 == 0 else (256 if Kpad % 256 == 0 else 128)
    tm = 256 if M >= 256 else _round_up(max(M, 1), 16)
    Mpad = _round_up(M, tm)

    x = x.astype(jnp.bfloat16)
    if Mpad != M or Kpad != K:
        x = jnp.pad(x, ((0, Mpad - M), (0, Kpad - K)))

    args = [x, w_pad, bias_pad]
    in_specs = [
        pl.BlockSpec((tm, tk), lambda i, j, k: (i, k)),
        pl.BlockSpec((tk, tn), lambda i, j, k: (k, j)),
        pl.BlockSpec((1, tn), lambda i, j, k: (0, j)),
    ]
    if residual is not None:
        r = residual.astype(jnp.bfloat16)
        if Mpad != M or Npad != n_out:
            r = jnp.pad(r, ((0, Mpad - M), (0, Npad - n_out)))
        args.append(r)
        in_specs.append(pl.BlockSpec((tm, tn), lambda i, j, k: (i, j)))

    kernel = _make_matmul_kernel(relu, residual is not None)
    out = pl.pallas_call(
        kernel,
        out_shape=jax.ShapeDtypeStruct((Mpad, Npad), out_dtype),
        grid_spec=pltpu.PrefetchScalarGridSpec(
            num_scalar_prefetch=0,
            grid=(Mpad // tm, Npad // tn, Kpad // tk),
            in_specs=in_specs,
            out_specs=pl.BlockSpec((tm, tn), lambda i, j, k: (i, j)),
            scratch_shapes=[pltpu.VMEM((tm, tn), jnp.float32)],
        ),
        compiler_params=pltpu.CompilerParams(
            dimension_semantics=("parallel", "parallel", "arbitrary"),
            vmem_limit_bytes=48 * 1024 * 1024,  # well under v7x 64 MiB physical
        ),
    )(*args)

    if Mpad != M or Npad != n_out:
        out = out[:M, :n_out]
    return out


# ----------------------------------------------------------------------------
# conv wrappers (glue in plain JAX inside the single jit; matmul on the MXU)
# ----------------------------------------------------------------------------
def conv1x1_bn_act(x, w_pad, b_pad, cout, stride=1, residual=None, relu=True,
                   out_dtype=jnp.bfloat16):
    """1x1 conv + folded-BN bias (+residual) (+relu); x:[N,H,W,Cin] NHWC."""
    if stride > 1:
        x = x[:, ::stride, ::stride, :]
    n, ho, wo, c = x.shape
    xm = x.reshape(n * ho * wo, c)
    res = None if residual is None else residual.reshape(n * ho * wo, cout)
    out = matmul_bn_act(xm, w_pad, b_pad, cout, res, relu, out_dtype)
    return out.reshape(n, ho, wo, cout)


def conv3x3_bn_act(x, w_pad, b_pad, cout, stride=1, relu=True,
                   out_dtype=jnp.bfloat16):
    """3x3 conv (pad=1) + folded-BN bias (+relu); x:[N,H,W,Cin] NHWC."""
    # TODO(synk): the 9x im2col is still materialized (fused by XLA under the
    # whole-network jit); layer4 only has 3 small 3x3 convs so it is cheap here,
    # but a shifted-index_map kernel would remove the HBM round-trip entirely.
    n, h, w, c = x.shape
    xp = jnp.pad(x, ((0, 0), (1, 1), (1, 1), (0, 0)))
    ho = (h + 2 - 3) // stride + 1
    wo = (w + 2 - 3) // stride + 1
    cols = []
    for i in range(3):
        for j in range(3):
            cols.append(
                xp[:, i:i + stride * ho:stride, j:j + stride * wo:stride, :])
    patches = jnp.concatenate(cols, axis=-1)          # feature order (kh,kw,c)
    xm = patches.reshape(n * ho * wo, 9 * c)
    out = matmul_bn_act(xm, w_pad, b_pad, cout, None, relu, out_dtype)
    return out.reshape(n, ho, wo, cout)


# ----------------------------------------------------------------------------
# deterministic parameter construction (ResNet-152 layer4 + fc head)
# ----------------------------------------------------------------------------
_BN_EPS = 1e-5


def _conv_bn_params(kw_key, kb_key, cin, cout, kh, kw):
    std = (2.0 / (cin * kh * kw)) ** 0.5
    w = jax.random.normal(kw_key, (cout, cin, kh, kw), jnp.float32) * std
    # [Cout,Cin,KH,KW] -> [KH*KW*Cin, Cout], feature order (kh, kw, c)
    w2 = jnp.transpose(w, (2, 3, 1, 0)).reshape(kh * kw * cin, cout)

    # eval-mode BN folded: scale into the weight columns, bias kept separately
    gamma = jnp.full((cout,), 0.5, jnp.float32)
    beta = 0.01 * jax.random.normal(kb_key, (cout,), jnp.float32)
    mean = jnp.zeros((cout,), jnp.float32)
    var = jnp.ones((cout,), jnp.float32)
    scale = gamma / jnp.sqrt(var + _BN_EPS)
    bias = beta - mean * scale
    w2 = w2 * scale[None, :]

    K, N = w2.shape
    kpad, npad = _round_up(K, 128), _round_up(N, 128)
    w2 = jnp.pad(w2, ((0, kpad - K), (0, npad - N))).astype(jnp.bfloat16)
    b = jnp.pad(bias, (0, npad - N)).reshape(1, npad).astype(jnp.float32)
    return w2, b


def build_f_classification_params(key, num_classes=10):
    keys = iter(jax.random.split(key, 64))
    inplanes, planes = 1024, 512        # ResNet-152 layer4: 3 Bottleneck blocks
    blocks = []
    for b in range(3):
        blk = {
            "conv1": _conv_bn_params(next(keys), next(keys), inplanes, planes, 1, 1),
            "conv2": _conv_bn_params(next(keys), next(keys), planes, planes, 3, 3),
            "conv3": _conv_bn_params(next(keys), next(keys), planes, planes * 4, 1, 1),
        }
        if b == 0:
            blk["down"] = _conv_bn_params(next(keys), next(keys),
                                          inplanes, planes * 4, 1, 1)
        blocks.append(blk)
        inplanes = planes * 4

    # fc head: Linear(2048, num_classes), kaiming init (fan_in)
    kfw, kfb = next(keys), next(keys)
    std = (2.0 / 2048) ** 0.5
    fw = jax.random.normal(kfw, (2048, num_classes), jnp.float32) * std
    fb = 0.01 * jax.random.normal(kfb, (num_classes,), jnp.float32)
    npad = _round_up(num_classes, 128)
    fw = jnp.pad(fw, ((0, 0), (0, npad - num_classes))).astype(jnp.bfloat16)
    fb = jnp.pad(fb, (0, npad - num_classes)).reshape(1, npad).astype(jnp.float32)
    return {"blocks": blocks, "fc_w": fw, "fc_b": fb}


# ----------------------------------------------------------------------------
# forward pass (single jit over the whole module)
# ----------------------------------------------------------------------------
@functools.partial(jax.jit, static_argnames=("num_classes",))
def f_classification_forward(params, x_nchw, *, num_classes=10):
    # PyTorch semantics: input is the 1024-channel layer3 feature map (NCHW);
    # output is [N, num_classes] logits in f32.
    x = jnp.transpose(x_nchw, (0, 2, 3, 1)).astype(jnp.bfloat16)  # -> NHWC

    planes, expansion = 512, 4
    for bi, blk in enumerate(params["blocks"]):
        stride = 2 if bi == 0 else 1
        identity = x

        w, b = blk["conv1"]
        out = conv1x1_bn_act(x, w, b, planes, stride=1, relu=True)
        w, b = blk["conv2"]
        out = conv3x3_bn_act(out, w, b, planes, stride=stride, relu=True)
        if "down" in blk:
            dw, db = blk["down"]
            identity = conv1x1_bn_act(x, dw, db, planes * expansion,
                                      stride=stride, relu=False)
        w, b = blk["conv3"]
        # fused: conv3 + bn3-bias + residual add + relu
        out = conv1x1_bn_act(out, w, b, planes * expansion, stride=1,
                             residual=identity, relu=True)
        x = out

    # AdaptiveAvgPool2d((1,1)) + flatten  (tiny reduction -> plain XLA)
    feat = jnp.mean(x.astype(jnp.float32), axis=(1, 2))          # [N, 2048]

    logits = matmul_bn_act(feat, params["fc_w"], params["fc_b"], num_classes,
                           residual=None, relu=False, out_dtype=jnp.float32)
    return logits                                                 # [N, classes]


# ----------------------------------------------------------------------------
if __name__ == "__main__":
    key = jax.random.PRNGKey(0)
    kp, kx = jax.random.split(key)
    params = build_f_classification_params(kp, num_classes=10)

    # layer4 of ResNet-152 consumes a 1024-channel feature map (layer3 output);
    # small spatial size for the test.
    x = jax.random.normal(kx, (2, 1024, 8, 8), jnp.float32)       # NCHW

    logits = f_classification_forward(params, x, num_classes=10)
    logits = jax.block_until_ready(logits)
    assert logits.shape == (2, 10) and logits.dtype == jnp.float32
    assert bool(jnp.all(jnp.isfinite(logits)))
    print("KERNEL_OK")
</pallas_src>

<mosaic_0001>
module attributes {stable_mosaic.version = 11 : i64} {
  func.func @kernel(%arg0: i32, %arg1: i32, %arg2: i32, %arg3: memref<32x512xbf16, #tpu.memory_space<vmem>>, %arg4: memref<512x256xbf16, #tpu.memory_space<vmem>>, %arg5: memref<1x256xf32, #tpu.memory_space<vmem>>, %arg6: memref<32x256xbf16, #tpu.memory_space<vmem>>, %arg7: memref<32x256xf32, #tpu.memory_space<vmem>>) attributes {dimension_semantics = [#tpu.dimension_semantics<parallel>, #tpu.dimension_semantics<parallel>, #tpu.dimension_semantics<arbitrary>], iteration_bounds = array<i64: 1, 8, 2>, scalar_prefetch = 0 : i64, scratch_operands = 1 : i64, tpu.core_type = #tpu.core_type<tc>, window_params = [{transform_indices = @transform_0, window_bounds = array<i64: 32, 512>}, {transform_indices = @transform_1, window_bounds = array<i64: 512, 256>}, {transform_indices = @transform_2, window_bounds = array<i64: 1, 256>}, {transform_indices = @transform_3, window_bounds = array<i64: 32, 256>}]} {
    %c0_i32 = arith.constant 0 : i32
    %0 = arith.cmpi eq, %arg2, %c0_i32 : i32
    %1 = arith.extui %0 : i1 to i32
    %c0_i32_0 = arith.constant 0 : i32
    %2 = arith.cmpi ne, %1, %c0_i32_0 : i32
    scf.if %2 {
      %cst_9 = arith.constant 0.000000e+00 : f32
      %12 = vector.broadcast %cst_9 : f32 to vector<32x256xf32>
      %c0_10 = arith.constant 0 : index
      %c0_11 = arith.constant 0 : index
      %13 = vector.load %arg7[%c0_10, %c0_11] : memref<32x256xf32, #tpu.memory_space<vmem>>, vector<32x256xf32>
      tpu.vector_store %arg7[%c0_10, %c0_11], %12 {strides = array<i32>} : memref<32x256xf32, #tpu.memory_space<vmem>>, vector<32x256xf32>,
    } else {
    }
    %c0 = arith.constant 0 : index
    %c0_1 = arith.constant 0 : index
    %3 = vector.load %arg7[%c0, %c0_1] : memref<32x256xf32, #tpu.memory_space<vmem>>, vector<32x256xf32>
    %c0_2 = arith.constant 0 : index
    %c0_3 = arith.constant 0 : index
    %4 = vector.load %arg3[%c0_2, %c0_3] : memref<32x512xbf16, #tpu.memory_space<vmem>>, vector<32x512xbf16>
    %c0_4 = arith.constant 0 : index
    %c0_5 = arith.constant 0 : index
    %5 = vector.load %arg4[%c0_4, %c0_5] : memref<512x256xbf16, #tpu.memory_space<vmem>>, vector<512x256xbf16>
    %cst = arith.constant dense<0.000000e+00> : vector<32x256xf32>
    %6 = tpu.matmul %4, %5, %cst {dimension_numbers = #tpu.dot_dimension_numbers<[1], [0], [0], [1], [0, 0, 1, 1], [], []>} : vector<32x512xbf16>, vector<512x256xbf16>, vector<32x256xf32> -> vector<32x256xf32>
    %7 = arith.addf %3, %6 : vector<32x256xf32>
    %c0_6 = arith.constant 0 : index
    %c0_7 = arith.constant 0 : index
    %8 = vector.load %arg7[%c0_6, %c0_7] : memref<32x256xf32, #tpu.memory_space<vmem>>, vector<32x256xf32>
    tpu.vector_store %arg7[%c0_6, %c0_7], %7 {strides = array<i32>} : memref<32x256xf32, #tpu.memory_space<vmem>>, vector<32x256xf32>,
    %c1_i32 = arith.constant 1 : i32
    %9 = arith.cmpi eq, %arg2, %c1_i32 : i32
    %10 = arith.extui %9 : i1 to i32
    %c0_i32_8 = arith.constant 0 : i32
    %11 = arith.cmpi ne, %10, %c0_i32_8 : i32
    scf.if %11 {
      %c0_9 = arith.constant 0 : index
      %c0_10 = arith.constant 0 : index
      %12 = vector.load %arg7[%c0_9, %c0_10] : memref<32x256xf32, #tpu.memory_space<vmem>>, vector<32x256xf32>
      %c0_11 = arith.constant 0 : index
      %c0_12 = arith.constant 0 : index
      %13 = vector.load %arg5[%c0_11, %c0_12] : memref<1x256xf32, #tpu.memory_space<vmem>>, vector<1x256xf32>
      %14 = vector.broadcast %13 : vector<1x256xf32> to vector<32x256xf32>
      %15 = arith.addf %12, %14 : vector<32x256xf32>
      %16 = arith.truncf %15 : vector<32x256xf32> to vector<32x256xbf16>
      %c0_13 = arith.constant 0 : index
      %c0_14 = arith.constant 0 : index
      %17 = vector.load %arg6[%c0_13, %c0_14] : memref<32x256xbf16, #tpu.memory_space<vmem>>, vector<32x256xbf16>
      tpu.vector_store %arg6[%c0_13, %c0_14], %16 {strides = array<i32>} : memref<32x256xbf16, #tpu.memory_space<vmem>>, vector<32x256xbf16>,
    } else {
    }
    return
  }
  func.func @transform_0(%arg0: i32, %arg1: i32, %arg2: i32) -> (i32, i32) {
    %c0_i32 = arith.constant 0 : i32
    return %arg0, %arg2 : i32, i32
  }
  func.func @transform_1(%arg0: i32, %arg1: i32, %arg2: i32) -> (i32, i32) {
    %c0_i32 = arith.constant 0 : i32
    return %arg2, %arg1 : i32, i32
  }
  func.func @transform_2(%arg0: i32, %arg1: i32, %arg2: i32) -> (i32, i32) {
    %c0_i32 = arith.constant 0 : i32
    %c0_i32_0 = arith.constant 0 : i32
    return %c0_i32, %arg1 : i32, i32
  }
  func.func @transform_3(%arg0: i32, %arg1: i32, %arg2: i32) -> (i32, i32) {
    %c0_i32 = arith.constant 0 : i32
    return %arg0, %arg1 : i32, i32
  }
}

module attributes {stable_mosaic.version = 11 : i64} {
  func.func @kernel(%arg0: i32, %arg1: i32, %arg2: i32, %arg3: memref<128x512xbf16, #tpu.memory_space<vmem>>, %arg4: memref<512x256xbf16, #tpu.memory_space<vmem>>, %arg5: memref<1x256xf32, #tpu.memory_space<vmem>>, %arg6: memref<128x256xbf16, #tpu.memory_space<vmem>>, %arg7: memref<128x256xf32, #tpu.memory_space<vmem>>) attributes {dimension_semantics = [#tpu.dimension_semantics<parallel>, #tpu.dimension_semantics<parallel>, #tpu.dimension_semantics<arbitrary>], iteration_bounds = array<i64: 1, 2, 2>, scalar_prefetch = 0 : i64, scratch_operands = 1 : i64, tpu.core_type = #tpu.core_type<tc>, window_params = [{transform_indices = @transform_0, window_bounds = array<i64: 128, 512>}, {transform_indices = @transform_1, window_bounds = array<i64: 512, 256>}, {transform_indices = @transform_2, window_bounds = array<i64: 1, 256>}, {transform_indices = @transform_3, window_bounds = array<i64: 128, 256>}]} {
    %c0_i32 = arith.constant 0 : i32
    %0 = arith.cmpi eq, %arg2, %c0_i32 : i32
    %1 = arith.extui %0 : i1 to i32
    %c0_i32_0 = arith.constant 0 : i32
    %2 = arith.cmpi ne, %1, %c0_i32_0 : i32
    scf.if %2 {
      %cst_9 = arith.constant 0.000000e+00 : f32
      %12 = vector.broadcast %cst_9 : f32 to vector<128x256xf32>
      %c0_10 = arith.constant 0 : index
      %c0_11 = arith.constant 0 : index
      %13 = vector.load %arg7[%c0_10, %c0_11] : memref<128x256xf32, #tpu.memory_space<vmem>>, vector<128x256xf32>
      tpu.vector_store %arg7[%c0_10, %c0_11], %12 {strides = array<i32>} : memref<128x256xf32, #tpu.memory_space<vmem>>, vector<128x256xf32>,
    } else {
    }
    %c0 = arith.constant 0 : index
    %c0_1 = arith.constant 0 : index
    %3 = vector.load %arg7[%c0, %c0_1] : memref<128x256xf32, #tpu.memory_space<vmem>>, vector<128x256xf32>
    %c0_2 = arith.constant 0 : index
    %c0_3 = arith.constant 0 : index
    %4 = vector.load %arg3[%c0_2, %c0_3] : memref<128x512xbf16, #tpu.memory_space<vmem>>, vector<128x512xbf16>
    %c0_4 = arith.constant 0 : index
    %c0_5 = arith.constant 0 : index
    %5 = vector.load %arg4[%c0_4, %c0_5] : memref<512x256xbf16, #tpu.memory_space<vmem>>, vector<512x256xbf16>
    %cst = arith.constant dense<0.000000e+00> : vector<128x256xf32>
    %6 = tpu.matmul %4, %5, %cst {dimension_numbers = #tpu.dot_dimension_numbers<[1], [0], [0], [1], [0, 0, 1, 1], [], []>} : vector<128x512xbf16>, vector<512x256xbf16>, vector<128x256xf32> -> vector<128x256xf32>
    %7 = arith.addf %3, %6 : vector<128x256xf32>
    %c0_6 = arith.constant 0 : index
    %c0_7 = arith.constant 0 : index
    %8 = vector.load %arg7[%c0_6, %c0_7] : memref<128x256xf32, #tpu.memory_space<vmem>>, vector<128x256xf32>
    tpu.vector_store %arg7[%c0_6, %c0_7], %7 {strides = array<i32>} : memref<128x256xf32, #tpu.memory_space<vmem>>, vector<128x256xf32>,
    %c1_i32 = arith.constant 1 : i32
    %9 = arith.cmpi eq, %arg2, %c1_i32 : i32
    %10 = arith.extui %9 : i1 to i32
    %c0_i32_8 = arith.constant 0 : i32
    %11 = arith.cmpi ne, %10, %c0_i32_8 : i32
    scf.if %11 {
      %c0_9 = arith.constant 0 : index
      %c0_10 = arith.constant 0 : index
      %12 = vector.load %arg7[%c0_9, %c0_10] : memref<128x256xf32, #tpu.memory_space<vmem>>, vector<128x256xf32>
      %c0_11 = arith.constant 0 : index
      %c0_12 = arith.constant 0 : index
      %13 = vector.load %arg5[%c0_11, %c0_12] : memref<1x256xf32, #tpu.memory_space<vmem>>, vector<1x256xf32>
      %14 = vector.broadcast %13 : vector<1x256xf32> to vector<128x256xf32>
      %15 = arith.addf %12, %14 : vector<128x256xf32>
      %cst_13 = arith.constant 0.000000e+00 : f32
      %16 = vector.broadcast %cst_13 : f32 to vector<128x256xf32>
      %17 = arith.maximumf %15, %16 : vector<128x256xf32>
      %18 = arith.truncf %17 : vector<128x256xf32> to vector<128x256xbf16>
      %c0_14 = arith.constant 0 : index
      %c0_15 = arith.constant 0 : index
      %19 = vector.load %arg6[%c0_14, %c0_15] : memref<128x256xbf16, #tpu.memory_space<vmem>>, vector<128x256xbf16>
      tpu.vector_store %arg6[%c0_14, %c0_15], %18 {strides = array<i32>} : memref<128x256xbf16, #tpu.memory_space<vmem>>, vector<128x256xbf16>,
    } else {
    }
    return
  }
  func.func @transform_0(%arg0: i32, %arg1: i32, %arg2: i32) -> (i32, i32) {
    %c0_i32 = arith.constant 0 : i32
    return %arg0, %arg2 : i32, i32
  }
  func.func @transform_1(%arg0: i32, %arg1: i32, %arg2: i32) -> (i32, i32) {
    %c0_i32 = arith.constant 0 : i32
    return %arg2, %arg1 : i32, i32
  }
  func.func @transform_2(%arg0: i32, %arg1: i32, %arg2: i32) -> (i32, i32) {
    %c0_i32 = arith.constant 0 : i32
    %c0_i32_0 = arith.constant 0 : i32
    return %c0_i32, %arg1 : i32, i32
  }
  func.func @transform_3(%arg0: i32, %arg1: i32, %arg2: i32) -> (i32, i32) {
    %c0_i32 = arith.constant 0 : i32
    return %arg0, %arg1 : i32, i32
  }
}

module attributes {stable_mosaic.version = 11 : i64} {
  func.func @kernel(%arg0: i32, %arg1: i32, %arg2: i32, %arg3: memref<32x512xbf16, #tpu.memory_space<vmem>>, %arg4: memref<512x256xbf16, #tpu.memory_space<vmem>>, %arg5: memref<1x256xf32, #tpu.memory_space<vmem>>, %arg6: memref<32x256xbf16, #tpu.memory_space<vmem>>, %arg7: memref<32x256xf32, #tpu.memory_space<vmem>>) attributes {dimension_semantics = [#tpu.dimension_semantics<parallel>, #tpu.dimension_semantics<parallel>, #tpu.dimension_semantics<arbitrary>], iteration_bounds = array<i64: 1, 2, 9>, scalar_prefetch = 0 : i64, scratch_operands = 1 : i64, tpu.core_type = #tpu.core_type<tc>, window_params = [{transform_indices = @transform_0, window_bounds = array<i64: 32, 512>}, {transform_indices = @transform_1, window_bounds = array<i64: 512, 256>}, {transform_indices = @transform_2, window_bounds = array<i64: 1, 256>}, {transform_indices = @transform_3, window_bounds = array<i64: 32, 256>}]} {
    %c0_i32 = arith.constant 0 : i32
    %0 = arith.cmpi eq, %arg2, %c0_i32 : i32
    %1 = arith.extui %0 : i1 to i32
    %c0_i32_0 = arith.constant 0 : i32
    %2 = arith.cmpi ne, %1, %c0_i32_0 : i32
    scf.if %2 {
      %cst_9 = arith.constant 0.000000e+00 : f32
      %12 = vector.broadcast %cst_9 : f32 to vector<32x256xf32>
      %c0_10 = arith.constant 0 : index
      %c0_11 = arith.constant 0 : index
      %13 = vector.load %arg7[%c0_10, %c0_11] : memref<32x256xf32, #tpu.memory_space<vmem>>, vector<32x256xf32>
      tpu.vector_store %arg7[%c0_10, %c0_11], %12 {strides = array<i32>} : memref<32x256xf32, #tpu.memory_space<vmem>>, vector<32x256xf32>,
    } else {
    }
    %c0 = arith.constant 0 : index
    %c0_1 = arith.constant 0 : index
    %3 = vector.load %arg7[%c0, %c0_1] : memref<32x256xf32, #tpu.memory_space<vmem>>, vector<32x256xf32>
    %c0_2 = arith.constant 0 : index
    %c0_3 = arith.constant 0 : index
    %4 = vector.load %arg3[%c0_2, %c0_3] : memref<32x512xbf16, #tpu.memory_space<vmem>>, vector<32x512xbf16>
    %c0_4 = arith.constant 0 : index
    %c0_5 = arith.constant 0 : index
    %5 = vector.load %arg4[%c0_4, %c0_5] : memref<512x256xbf16, #tpu.memory_space<vmem>>, vector<512x256xbf16>
    %cst = arith.constant dense<0.000000e+00> : vector<32x256xf32>
    %6 = tpu.matmul %4, %5, %cst {dimension_numbers = #tpu.dot_dimension_numbers<[1], [0], [0], [1], [0, 0, 1, 1], [], []>} : vector<32x512xbf16>, vector<512x256xbf16>, vector<32x256xf32> -> vector<32x256xf32>
    %7 = arith.addf %3, %6 : vector<32x256xf32>
    %c0_6 = arith.constant 0 : index
    %c0_7 = arith.constant 0 : index
    %8 = vector.load %arg7[%c0_6, %c0_7] : memref<32x256xf32, #tpu.memory_space<vmem>>, vector<32x256xf32>
    tpu.vector_store %arg7[%c0_6, %c0_7], %7 {strides = array<i32>} : memref<32x256xf32, #tpu.memory_space<vmem>>, vector<32x256xf32>,
    %c8_i32 = arith.constant 8 : i32
    %9 = arith.cmpi eq, %arg2, %c8_i32 : i32
    %10 = arith.extui %9 : i1 to i32
    %c0_i32_8 = arith.constant 0 : i32
    %11 = arith.cmpi ne, %10, %c0_i32_8 : i32
    scf.if %11 {
      %c0_9 = arith.constant 0 : index
      %c0_10 = arith.constant 0 : index
      %12 = vector.load %arg7[%c0_9, %c0_10] : memref<32x256xf32, #tpu.memory_space<vmem>>, vector<32x256xf32>
      %c0_11 = arith.constant 0 : index
      %c0_12 = arith.constant 0 : index
      %13 = vector.load %arg5[%c0_11, %c0_12] : memref<1x256xf32, #tpu.memory_space<vmem>>, vector<1x256xf32>
      %14 = vector.broadcast %13 : vector<1x256xf32> to vector<32x256xf32>
      %15 = arith.addf %12, %14 : vector<32x256xf32>
      %cst_13 = arith.constant 0.000000e+00 : f32
      %16 = vector.broadcast %cst_13 : f32 to vector<32x256xf32>
      %17 = arith.maximumf %15, %16 : vector<32x256xf32>
      %18 = arith.truncf %17 : vector<32x256xf32> to vector<32x256xbf16>
      %c0_14 = arith.constant 0 : index
      %c0_15 = arith.constant 0 : index
      %19 = vector.load %arg6[%c0_14, %c0_15] : memref<32x256xbf16, #tpu.memory_space<vmem>>, vector<32x256xbf16>
      tpu.vector_store %arg6[%c0_14, %c0_15], %18 {strides = array<i32>} : memref<32x256xbf16, #tpu.memory_space<vmem>>, vector<32x256xbf16>,
    } else {
    }
    return
  }
  func.func @transform_0(%arg0: i32, %arg1: i32, %arg2: i32) -> (i32, i32) {
    %c0_i32 = arith.constant 0 : i32
    return %arg0, %arg2 : i32, i32
  }
  func.func @transform_1(%arg0: i32, %arg1: i32, %arg2: i32) -> (i32, i32) {
    %c0_i32 = arith.constant 0 : i32
    return %arg2, %arg1 : i32, i32
  }
  func.func @transform_2(%arg0: i32, %arg1: i32, %arg2: i32) -> (i32, i32) {
    %c0_i32 = arith.constant 0 : i32
    %c0_i32_0 = arith.constant 0 : i32
    return %c0_i32, %arg1 : i32, i32
  }
  func.func @transform_3(%arg0: i32, %arg1: i32, %arg2: i32) -> (i32, i32) {
    %c0_i32 = arith.constant 0 : i32
    return %arg0, %arg1 : i32, i32
  }
}

module attributes {stable_mosaic.version = 11 : i64} {
  func.func @kernel(%arg0: i32, %arg1: i32, %arg2: i32, %arg3: memref<32x512xbf16, #tpu.memory_space<vmem>>, %arg4: memref<512x256xbf16, #tpu.memory_space<vmem>>, %arg5: memref<1x256xf32, #tpu.memory_space<vmem>>, %arg6: memref<32x256xbf16, #tpu.memory_space<vmem>>, %arg7: memref<32x256xf32, #tpu.memory_space<vmem>>) attributes {dimension_semantics = [#tpu.dimension_semantics<parallel>, #tpu.dimension_semantics<parallel>, #tpu.dimension_semantics<arbitrary>], iteration_bounds = array<i64: 1, 2, 4>, scalar_prefetch = 0 : i64, scratch_operands = 1 : i64, tpu.core_type = #tpu.core_type<tc>, window_params = [{transform_indices = @transform_0, window_bounds = array<i64: 32, 512>}, {transform_indices = @transform_1, window_bounds = array<i64: 512, 256>}, {transform_indices = @transform_2, window_bounds = array<i64: 1, 256>}, {transform_indices = @transform_3, window_bounds = array<i64: 32, 256>}]} {
    %c0_i32 = arith.constant 0 : i32
    %0 = arith.cmpi eq, %arg2, %c0_i32 : i32
    %1 = arith.extui %0 : i1 to i32
    %c0_i32_0 = arith.constant 0 : i32
    %2 = arith.cmpi ne, %1, %c0_i32_0 : i32
    scf.if %2 {
      %cst_9 = arith.constant 0.000000e+00 : f32
      %12 = vector.broadcast %cst_9 : f32 to vector<32x256xf32>
      %c0_10 = arith.constant 0 : index
      %c0_11 = arith.constant 0 : index
      %13 = vector.load %arg7[%c0_10, %c0_11] : memref<32x256xf32, #tpu.memory_space<vmem>>, vector<32x256xf32>
      tpu.vector_store %arg7[%c0_10, %c0_11], %12 {strides = array<i32>} : memref<32x256xf32, #tpu.memory_space<vmem>>, vector<32x256xf32>,
    } else {
    }
    %c0 = arith.constant 0 : index
    %c0_1 = arith.constant 0 : index
    %3 = vector.load %arg7[%c0, %c0_1] : memref<32x256xf32, #tpu.memory_space<vmem>>, vector<32x256xf32>
    %c0_2 = arith.constant 0 : index
    %c0_3 = arith.constant 0 : index
    %4 = vector.load %arg3[%c0_2, %c0_3] : memref<32x512xbf16, #tpu.memory_space<vmem>>, vector<32x512xbf16>
    %c0_4 = arith.constant 0 : index
    %c0_5 = arith.constant 0 : index
    %5 = vector.load %arg4[%c0_4, %c0_5] : memref<512x256xbf16, #tpu.memory_space<vmem>>, vector<512x256xbf16>
    %cst = arith.constant dense<0.000000e+00> : vector<32x256xf32>
    %6 = tpu.matmul %4, %5, %cst {dimension_numbers = #tpu.dot_dimension_numbers<[1], [0], [0], [1], [0, 0, 1, 1], [], []>} : vector<32x512xbf16>, vector<512x256xbf16>, vector<32x256xf32> -> vector<32x256xf32>
    %7 = arith.addf %3, %6 : vector<32x256xf32>
    %c0_6 = arith.constant 0 : index
    %c0_7 = arith.constant 0 : index
    %8 = vector.load %arg7[%c0_6, %c0_7] : memref<32x256xf32, #tpu.memory_space<vmem>>, vector<32x256xf32>
    tpu.vector_store %arg7[%c0_6, %c0_7], %7 {strides = array<i32>} : memref<32x256xf32, #tpu.memory_space<vmem>>, vector<32x256xf32>,
    %c3_i32 = arith.constant 3 : i32
    %9 = arith.cmpi eq, %arg2, %c3_i32 : i32
    %10 = arith.extui %9 : i1 to i32
    %c0_i32_8 = arith.constant 0 : i32
    %11 = arith.cmpi ne, %10, %c0_i32_8 : i32
    scf.if %11 {
      %c0_9 = arith.constant 0 : index
      %c0_10 = arith.constant 0 : index
      %12 = vector.load %arg7[%c0_9, %c0_10] : memref<32x256xf32, #tpu.memory_space<vmem>>, vector<32x256xf32>
      %c0_11 = arith.constant 0 : index
      %c0_12 = arith.constant 0 : index
      %13 = vector.load %arg5[%c0_11, %c0_12] : memref<1x256xf32, #tpu.memory_space<vmem>>, vector<1x256xf32>
      %14 = vector.broadcast %13 : vector<1x256xf32> to vector<32x256xf32>
      %15 = arith.addf %12, %14 : vector<32x256xf32>
      %cst_13 = arith.constant 0.000000e+00 : f32
      %16 = vector.broadcast %cst_13 : f32 to vector<32x256xf32>
      %17 = arith.maximumf %15, %16 : vector<32x256xf32>
      %18 = arith.truncf %17 : vector<32x256xf32> to vector<32x256xbf16>
      %c0_14 = arith.constant 0 : index
      %c0_15 = arith.constant 0 : index
      %19 = vector.load %arg6[%c0_14, %c0_15] : memref<32x256xbf16, #tpu.memory_space<vmem>>, vector<32x256xbf16>
      tpu.vector_store %arg6[%c0_14, %c0_15], %18 {strides = array<i32>} : memref<32x256xbf16, #tpu.memory_space<vmem>>, vector<32x256xbf16>,
    } else {
    }
    return
  }
  func.func @transform_0(%arg0: i32, %arg1: i32, %arg2: i32) -> (i32, i32) {
    %c0_i32 = arith.constant 0 : i32
    return %arg0, %arg2 : i32, i32
  }
  func.func @transform_1(%arg0: i32, %arg1: i32, %arg2: i32) -> (i32, i32) {
    %c0_i32 = arith.constant 0 : i32
    return %arg2, %arg1 : i32, i32
  }
  func.func @transform_2(%arg0: i32, %arg1: i32, %arg2: i32) -> (i32, i32) {
    %c0_i32 = arith.constant 0 : i32
    %c0_i32_0 = arith.constant 0 : i32
    return %c0_i32, %arg1 : i32, i32
  }
  func.func @transform_3(%arg0: i32, %arg1: i32, %arg2: i32) -> (i32, i32) {
    %c0_i32 = arith.constant 0 : i32
    return %arg0, %arg1 : i32, i32
  }
}

module attributes {stable_mosaic.version = 11 : i64} {
  func.func @kernel(%arg0: i32, %arg1: i32, %arg2: i32, %arg3: memref<32x512xbf16, #tpu.memory_space<vmem>>, %arg4: memref<512x256xbf16, #tpu.memory_space<vmem>>, %arg5: memref<1x256xf32, #tpu.memory_space<vmem>>, %arg6: memref<32x256xbf16, #tpu.memory_space<vmem>>, %arg7: memref<32x256xbf16, #tpu.memory_space<vmem>>, %arg8: memref<32x256xf32, #tpu.memory_space<vmem>>) attributes {dimension_semantics = [#tpu.dimension_semantics<parallel>, #tpu.dimension_semantics<parallel>, #tpu.dimension_semantics<arbitrary>], iteration_bounds = array<i64: 1, 8, 1>, scalar_prefetch = 0 : i64, scratch_operands = 1 : i64, tpu.core_type = #tpu.core_type<tc>, window_params = [{transform_indices = @transform_0, window_bounds = array<i64: 32, 512>}, {transform_indices = @transform_1, window_bounds = array<i64: 512, 256>}, {transform_indices = @transform_2, window_bounds = array<i64: 1, 256>}, {transform_indices = @transform_3, window_bounds = array<i64: 32, 256>}, {transform_indices = @transform_4, window_bounds = array<i64: 32, 256>}]} {
    %c0_i32 = arith.constant 0 : i32
    %0 = arith.cmpi eq, %arg2, %c0_i32 : i32
    %1 = arith.extui %0 : i1 to i32
    %c0_i32_0 = arith.constant 0 : i32
    %2 = arith.cmpi ne, %1, %c0_i32_0 : i32
    scf.if %2 {
      %cst_10 = arith.constant 0.000000e+00 : f32
      %12 = vector.broadcast %cst_10 : f32 to vector<32x256xf32>
      %c0_11 = arith.constant 0 : index
      %c0_12 = arith.constant 0 : index
      %13 = vector.load %arg8[%c0_11, %c0_12] : memref<32x256xf32, #tpu.memory_space<vmem>>, vector<32x256xf32>
      tpu.vector_store %arg8[%c0_11, %c0_12], %12 {strides = array<i32>} : memref<32x256xf32, #tpu.memory_space<vmem>>, vector<32x256xf32>,
    } else {
    }
    %c0 = arith.constant 0 : index
    %c0_1 = arith.constant 0 : index
    %3 = vector.load %arg8[%c0, %c0_1] : memref<32x256xf32, #tpu.memory_space<vmem>>, vector<32x256xf32>
    %c0_2 = arith.constant 0 : index
    %c0_3 = arith.constant 0 : index
    %4 = vector.load %arg3[%c0_2, %c0_3] : memref<32x512xbf16, #tpu.memory_space<vmem>>, vector<32x512xbf16>
    %c0_4 = arith.constant 0 : index
    %c0_5 = arith.constant 0 : index
    %5 = vector.load %arg4[%c0_4, %c0_5] : memref<512x256xbf16, #tpu.memory_space<vmem>>, vector<512x256xbf16>
    %cst = arith.constant dense<0.000000e+00> : vector<32x256xf32>
    %6 = tpu.matmul %4, %5, %cst {dimension_numbers = #tpu.dot_dimension_numbers<[1], [0], [0], [1], [0, 0, 1, 1], [], []>} : vector<32x512xbf16>, vector<512x256xbf16>, vector<32x256xf32> -> vector<32x256xf32>
    %7 = arith.addf %3, %6 : vector<32x256xf32>
    %c0_6 = arith.constant 0 : index
    %c0_7 = arith.constant 0 : index
    %8 = vector.load %arg8[%c0_6, %c0_7] : memref<32x256xf32, #tpu.memory_space<vmem>>, vector<32x256xf32>
    tpu.vector_store %arg8[%c0_6, %c0_7], %7 {strides = array<i32>} : memref<32x256xf32, #tpu.memory_space<vmem>>, vector<32x256xf32>,
    %c0_i32_8 = arith.constant 0 : i32
    %9 = arith.cmpi eq, %arg2, %c0_i32_8 : i32
    %10 = arith.extui %9 : i1 to i32
    %c0_i32_9 = arith.constant 0 : i32
    %11 = arith.cmpi ne, %10, %c0_i32_9 : i32
    scf.if %11 {
      %c0_10 = arith.constant 0 : index
      %c0_11 = arith.constant 0 : index
      %12 = vector.load %arg8[%c0_10, %c0_11] : memref<32x256xf32, #tpu.memory_space<vmem>>, vector<32x256xf32>
      %c0_12 = arith.constant 0 : index
      %c0_13 = arith.constant 0 : index
      %13 = vector.load %arg5[%c0_12, %c0_13] : memref<1x256xf32, #tpu.memory_space<vmem>>, vector<1x256xf32>
      %14 = vector.broadcast %13 : vector<1x256xf32> to vector<32x256xf32>
      %15 = arith.addf %12, %14 : vector<32x256xf32>
      %c0_14 = arith.constant 0 : index
      %c0_15 = arith.constant 0 : index
      %16 = vector.load %arg6[%c0_14, %c0_15] : memref<32x256xbf16, #tpu.memory_space<vmem>>, vector<32x256xbf16>
      %17 = arith.extf %16 : vector<32x256xbf16> to vector<32x256xf32>
      %18 = arith.addf %15, %17 : vector<32x256xf32>
      %cst_16 = arith.constant 0.000000e+00 : f32
      %19 = vector.broadcast %cst_16 : f32 to vector<32x256xf32>
      %20 = arith.maximumf %18, %19 : vector<32x256xf32>
      %21 = arith.truncf %20 : vector<32x256xf32> to vector<32x256xbf16>
      %c0_17 = arith.constant 0 : index
      %c0_18 = arith.constant 0 : index
      %22 = vector.load %arg7[%c0_17, %c0_18] : memref<32x256xbf16, #tpu.memory_space<vmem>>, vector<32x256xbf16>
      tpu.vector_store %arg7[%c0_17, %c0_18], %21 {strides = array<i32>} : memref<32x256xbf16, #tpu.memory_space<vmem>>, vector<32x256xbf16>,
    } else {
    }
    return
  }
  func.func @transform_0(%arg0: i32, %arg1: i32, %arg2: i32) -> (i32, i32) {
    %c0_i32 = arith.constant 0 : i32
    return %arg0, %arg2 : i32, i32
  }
  func.func @transform_1(%arg0: i32, %arg1: i32, %arg2: i32) -> (i32, i32) {
    %c0_i32 = arith.constant 0 : i32
    return %arg2, %arg1 : i32, i32
  }
  func.func @transform_2(%arg0: i32, %arg1: i32, %arg2: i32) -> (i32, i32) {
    %c0_i32 = arith.constant 0 : i32
    %c0_i32_0 = arith.constant 0 : i32
    return %c0_i32, %arg1 : i32, i32
  }
  func.func @transform_3(%arg0: i32, %arg1: i32, %arg2: i32) -> (i32, i32) {
    %c0_i32 = arith.constant 0 : i32
    return %arg0, %arg1 : i32, i32
  }
  func.func @transform_4(%arg0: i32, %arg1: i32, %arg2: i32) -> (i32, i32) {
    %c0_i32 = arith.constant 0 : i32
    return %arg0, %arg1 : i32, i32
  }
}

module attributes {stable_mosaic.version = 11 : i64} {
  func.func @kernel(%arg0: i32, %arg1: i32, %arg2: i32, %arg3: memref<16x512xbf16, #tpu.memory_space<vmem>>, %arg4: memref<512x128xbf16, #tpu.memory_space<vmem>>, %arg5: memref<1x128xf32, #tpu.memory_space<vmem>>, %arg6: memref<16x128xf32, #tpu.memory_space<vmem>>, %arg7: memref<16x128xf32, #tpu.memory_space<vmem>>) attributes {dimension_semantics = [#tpu.dimension_semantics<parallel>, #tpu.dimension_semantics<parallel>, #tpu.dimension_semantics<arbitrary>], iteration_bounds = array<i64: 1, 1, 4>, scalar_prefetch = 0 : i64, scratch_operands = 1 : i64, tpu.core_type = #tpu.core_type<tc>, window_params = [{transform_indices = @transform_0, window_bounds = array<i64: 16, 512>}, {transform_indices = @transform_1, window_bounds = array<i64: 512, 128>}, {transform_indices = @transform_2, window_bounds = array<i64: 1, 128>}, {transform_indices = @transform_3, window_bounds = array<i64: 16, 128>}]} {
    %c0_i32 = arith.constant 0 : i32
    %0 = arith.cmpi eq, %arg2, %c0_i32 : i32
    %1 = arith.extui %0 : i1 to i32
    %c0_i32_0 = arith.constant 0 : i32
    %2 = arith.cmpi ne, %1, %c0_i32_0 : i32
    scf.if %2 {
      %cst_9 = arith.constant 0.000000e+00 : f32
      %12 = vector.broadcast %cst_9 : f32 to vector<16x128xf32>
      %c0_10 = arith.constant 0 : index
      %c0_11 = arith.constant 0 : index
      %13 = vector.load %arg7[%c0_10, %c0_11] : memref<16x128xf32, #tpu.memory_space<vmem>>, vector<16x128xf32>
      tpu.vector_store %arg7[%c0_10, %c0_11], %12 {strides = array<i32>} : memref<16x128xf32, #tpu.memory_space<vmem>>, vector<16x128xf32>,
    } else {
    }
    %c0 = arith.constant 0 : index
    %c0_1 = arith.constant 0 : index
    %3 = vector.load %arg7[%c0, %c0_1] : memref<16x128xf32, #tpu.memory_space<vmem>>, vector<16x128xf32>
    %c0_2 = arith.constant 0 : index
    %c0_3 = arith.constant 0 : index
    %4 = vector.load %arg3[%c0_2, %c0_3] : memref<16x512xbf16, #tpu.memory_space<vmem>>, vector<16x512xbf16>
    %c0_4 = arith.constant 0 : index
    %c0_5 = arith.constant 0 : index
    %5 = vector.load %arg4[%c0_4, %c0_5] : memref<512x128xbf16, #tpu.memory_space<vmem>>, vector<512x128xbf16>
    %cst = arith.constant dense<0.000000e+00> : vector<16x128xf32>
    %6 = tpu.matmul %4, %5, %cst {dimension_numbers = #tpu.dot_dimension_numbers<[1], [0], [0], [1], [0, 0, 1, 1], [], []>} : vector<16x512xbf16>, vector<512x128xbf16>, vector<16x128xf32> -> vector<16x128xf32>
    %7 = arith.addf %3, %6 : vector<16x128xf32>
    %c0_6 = arith.constant 0 : index
    %c0_7 = arith.constant 0 : index
    %8 = vector.load %arg7[%c0_6, %c0_7] : memref<16x128xf32, #tpu.memory_space<vmem>>, vector<16x128xf32>
    tpu.vector_store %arg7[%c0_6, %c0_7], %7 {strides = array<i32>} : memref<16x128xf32, #tpu.memory_space<vmem>>, vector<16x128xf32>,
    %c3_i32 = arith.constant 3 : i32
    %9 = arith.cmpi eq, %arg2, %c3_i32 : i32
    %10 = arith.extui %9 : i1 to i32
    %c0_i32_8 = arith.constant 0 : i32
    %11 = arith.cmpi ne, %10, %c0_i32_8 : i32
    scf.if %11 {
      %c0_9 = arith.constant 0 : index
      %c0_10 = arith.constant 0 : index
      %12 = vector.load %arg7[%c0_9, %c0_10] : memref<16x128xf32, #tpu.memory_space<vmem>>, vector<16x128xf32>
      %c0_11 = arith.constant 0 : index
      %c0_12 = arith.constant 0 : index
      %13 = vector.load %arg5[%c0_11, %c0_12] : memref<1x128xf32, #tpu.memory_space<vmem>>, vector<1x128xf32>
      %14 = vector.broadcast %13 : vector<1x128xf32> to vector<16x128xf32>
      %15 = arith.addf %12, %14 : vector<16x128xf32>
      %c0_13 = arith.constant 0 : index
      %c0_14 = arith.constant 0 : index
      %16 = vector.load %arg6[%c0_13, %c0_14] : memref<16x128xf32, #tpu.memory_space<vmem>>, vector<16x128xf32>
      tpu.vector_store %arg6[%c0_13, %c0_14], %15 {strides = array<i32>} : memref<16x128xf32, #tpu.memory_space<vmem>>, vector<16x128xf32>,
    } else {
    }
    return
  }
  func.func @transform_0(%arg0: i32, %arg1: i32, %arg2: i32) -> (i32, i32) {
    %c0_i32 = arith.constant 0 : i32
    return %arg0, %arg2 : i32, i32
  }
  func.func @transform_1(%arg0: i32, %arg1: i32, %arg2: i32) -> (i32, i32) {
    %c0_i32 = arith.constant 0 : i32
    return %arg2, %arg1 : i32, i32
  }
  func.func @transform_2(%arg0: i32, %arg1: i32, %arg2: i32) -> (i32, i32) {
    %c0_i32 = arith.constant 0 : i32
    %c0_i32_0 = arith.constant 0 : i32
    return %c0_i32, %arg1 : i32, i32
  }
  func.func @transform_3(%arg0: i32, %arg1: i32, %arg2: i32) -> (i32, i32) {
    %c0_i32 = arith.constant 0 : i32
    return %arg0, %arg1 : i32, i32
  }
}

</mosaic_0001>

<bundles_post_ra>
// kernel: f_classification_forward.13
= control target key start
LH: loop header
LB: loop body
LE: loop exit
PB: predicated region body
PF: predicated region fallthrough
CT: control target
= control target key end

     0   :  { %s2020_s0 = inlined_call_operand.vmem [shape: bf16[32,1024], index: 0, kind: input, shape index: {}]   ;;  %s2021_s1 = inlined_call_operand.hbm [shape: bf16[1024,2048], index: 1, kind: input, shape index: {}]   ;;  %s2022_s2 = inlined_call_operand.hbm [shape: f32[1,2048], index: 2, kind: input, shape index: {}]   ;;  %s2023_s3 = inlined_call_operand.vmem [shape: bf16[32,2048], index: 3, kind: output, shape index: {}]  }
   0x1   :  { %2031 = sst [smem:[#allocation19_spill]] %s2020_s0 }
   0x2   :  { %2032 = sst [smem:[#allocation20_spill]] %s2021_s1 }
   0x3   :  { %8 = vsyncpa [#allocation5], 0 }
   0x4   :  { %10 = vsyncpa [#allocation5 + $0x1], 0 }
   0x5   :  { %11 = vsyncpa [#allocation7], 0 }
   0x6   :  { %13 = vsyncpa [#allocation7 + $0x1], 0  ;;  %s1665_s12 = smov 0   ;;  %s1667_s13 = smov 0  }
   0x7   :  { %s1669_s14 = smov 0   ;;  %s1671_s15 = smov 0  }
   0x8   :  { %s1673_s16 = smov 0   ;;  %s1675_s17 = smov 0  }
   0x9   :  { %s1677_s18 = smov 0   ;;  %s1679_s19 = smov 0  }
   0xa   :  { %s1681_s20 = smov 0   ;;  %s1683_s21 = smov 0  }
   0xb   :  { %s1685_s22 = smov 0   ;;  %s1687_s23 = smov 0  }
   0xc   :  { %s1689_s24 = smov 0  }
   0xd LB: > { %2033 = sst [smem:[#allocation11_spill]] %s1609_s17  ;;  %s1132_s25 = sadd.s32 4294967295, %s1637_s24   ;;  %s1637_s24 = sphi %s1689_s24, %s19_s24   ;;  %s1633_s23 = sphi %s1687_s23, %s2068_s23   ;;  %s1629_s22 = sphi %s1685_s22, %s2059_s22   ;;  %s1625_s21 = sphi %s1683_s21, %s2067_s21   ;;  %s1621_s20 = sphi %s1681_s20, %s2058_s20   ;;  %s1617_s19 = sphi %s1679_s19, %s2057_s19   ;;  %s1613_s18 = sphi %s1677_s18, %s2056_s18   ;;  %s1609_s17 = sphi %s1675_s17, %s2066_s17   ;;  %s1605_s16 = sphi %s1673_s16, %s2065_s16   ;;  %s1601_s15 = sphi %s1671_s15, %s2064_s15   ;;  %s1597_s14 = sphi %s1669_s14, %s2063_s14   ;;  %s1593_s13 = sphi %s1667_s13, %s2062_s13   ;;  %s1589_s12 = sphi %s1665_s12, %s2061_s12  }
   0xe   : > { %2034 = sst [smem:[#allocation12_spill]] %s1617_s19  ;;  %s31_s26 = sadd.s32 1, %s1629_s22 }
   0xf   : > { %2035 = sst [smem:[#allocation13_spill]] %s1629_s22  ;;  %p32_p0 = scmp.ge.s32.totalorder %s31_s26, 2 }
  0x10   : > { %s34_s27 = sadd.s32 1, %s1633_s23  ;;  %s47_s28 = sadd.s32 1, %s1617_s19 }
  0x11   : > { %p54_p1 = scmp.ne.s32.totalorder %s1617_s19, %s1613_s18  ;;  %s2070_s26 = smov (%p32_p0, %s31_s26), 0 }
  0x12   : > { %2036 = sst [smem:[#allocation14_spill]] %s2070_s26  ;;  %s2072_s27 = smov (!%p32_p0, %s34_s27), %s1633_s23 }
  0x13   : > { %s43_s29 = ssub.s32 %s1629_s22, %s2070_s26  ;;  %p55_p2 = scmp.eq.s32.totalorder %s1637_s24, 0 }
  0x14   : > { %p36_p3 = scmp.ge.s32.totalorder %s2072_s27, 8  ;;  %p45_p4 = scmp.eq.s32.totalorder %s43_s29, 0 }
  0x15   : > { %p1744_p5 = por %p55_p2, %p54_p1  ;;  %s75_s4 = sadd.s32 1, %s1609_s17 }
  0x16   : > { %s2074_s27 = smov (%p36_p3, %s2072_s27), 0  ;;  %p82_p6 = scmp.ne.s32.totalorder %s1609_s17, %s1605_s16 }
  0x17   : > { %2038 = sst [smem:[#allocation15_spill]] %s2074_s27  ;;  %s71_s6 = ssub.s32 %s1633_s23, %s2074_s27 }
  0x18   : > { %s1752_s5 = scalar_select %p45_p4, %s1617_s19, %s47_s28  }
  0x19   : > { %s72_s7 = sor.u32 %s71_s6, %s43_s29  ;;  %p88_p7 = scmp.ne.s32.totalorder %s1605_s16, %s1601_s15 }
  0x1a   : > { %2039 = sst [smem:[#allocation16_spill]] %s1752_s5  ;;  %p73_p8 = scmp.eq.s32.totalorder %s72_s7, 0 }
  0x1b   : > { %p1762_p9 = por %p82_p6, %p55_p2  ;;  %p89_p10 = scmp.eq.s32.totalorder %s1132_s25, 0 }
  0x1c   : > { %p99_p11 = scmp.eq.s32.totalorder %s71_s6, 0  ;;  %s101_s11 = sadd.s32 1, %s1597_s14 }
  0x1d   : > { %s1769_s9 = scalar_select %p73_p8, %s1609_s17, %s75_s4  }
  0x1e   : > { %p1771_p12 = por %p89_p10, %p88_p7  ;;  %p108_p13 = scmp.ne.s32.totalorder %s1597_s14, %s1593_s13 }
  0x1f   : > { %2041 = sst [smem:[#allocation17_spill]] %s1769_s9  ;;  %p114_p0 = scmp.ne.s32.totalorder %s1593_s13, %s1589_s12 }
  0x20   : > { %s2042_s10 = scalar_select %p1771_p12, 1, 0 }
  0x21   : > { %s1777_s28 = scalar_select %p99_p11, %s1597_s14, %s101_s11  }
  0x22   : > { %p140_p1 = scmp.eq.s32.totalorder %s1132_s25, 15  ;;  %p1787_p3 = por %p108_p13, %p55_p2 }
  0x23   : > { %2043 = sst [smem:[#allocation18_spill]] %s1777_s28  ;;  %p1791_p4 = por %p114_p0, %p89_p10 }
  0x24   : > { %p1795_p6 = por %p140_p1, %p108_p13  ;;  %p1135_p7 = scmp.ge.s32.totalorder %s1637_s24, 16 }
  0x25   : > { %s2045_s29 = scalar_select %p1791_p4, 1, 0 }
  0x26   : > { %s2046_s4 = scalar_select %p1795_p6, 1, 0 }
  0x27   : > { %162 = sbr.rel (%p1135_p7) target bundleno = 119 (0x77), region = 16 }
  0x2e   : > { %165 = sbr.rel (!%p1744_p5) target bundleno = 60 (0x3c), region = 20  ;;  %s167_s12 = sand.u32 (%p1744_p5), 1, %s1617_s19  }
  0x2f   : > { %s1235_s25 = sshll.u32 (%p1744_p5), %s1629_s22, 4  ;;  %s1136_s6 = sshll.u32 (%p1744_p5), %s167_s12, 6 }
  0x30   : > { %s2047_s0 = sld [smem:[#allocation19_spill]] (%p1744_p5)  ;;  %s169_s26 = scalar_lea.vmem (%p1744_p5), [#allocation3], %s1136_s6 }
  0x36   : > { %s175_s27 = scalar_lea.vmem %s2047_s0, %s1235_s25 }
  0x37   : > { %v188_v0 = vld [vmem:[%s175_s27] sm:$0xff]  ;;  %v190_v1 = vld [vmem:[%s175_s27 + $0x8] sm:$0xff] }
  0x38   : > { %v192_v2 = vld [vmem:[%s175_s27 + $0x20] sm:$0xff]  ;;  %189 = vst [vmem:[%s169_s26] sm:$0xff] %v188_v0  ;;  %191 = vst [vmem:[%s169_s26 + $0x8] sm:$0xff] %v190_v1  ;;  %v194_v3 = vld [vmem:[%s175_s27 + $0x28] sm:$0xff] }
  0x39   : > { %193 = vst [vmem:[%s169_s26 + $0x10] sm:$0xff] %v192_v2  ;;  %v196_v4 = vld [vmem:[%s175_s27 + $0x40] sm:$0xff]  ;;  %v198_v5 = vld [vmem:[%s175_s27 + $0x48] sm:$0xff]  ;;  %195 = vst [vmem:[%s169_s26 + $0x18] sm:$0xff] %v194_v3 }
  0x3a   : > { %197 = vst [vmem:[%s169_s26 + $0x20] sm:$0xff] %v196_v4  ;;  %199 = vst [vmem:[%s169_s26 + $0x28] sm:$0xff] %v198_v5  ;;  %v200_v6 = vld [vmem:[%s175_s27 + $0x60] sm:$0xff]  ;;  %v202_v7 = vld [vmem:[%s175_s27 + $0x68] sm:$0xff] }
  0x3b   : > { %201 = vst [vmem:[%s169_s26 + $0x30] sm:$0xff] %v200_v6  ;;  %203 = vst [vmem:[%s169_s26 + $0x38] sm:$0xff] %v202_v7 }
  0x3c PF: > { %s210_s30 = sand.u32 1, %s1609_s17   ;;  %s1141_s12 = sshll.u32 %s1633_s23, 1 }
  0x3d   : > { %s1139_s25 = sshll.u32 %s210_s30, 9  ;;  %s1236_s6 = sshll.u32 %s1629_s22, 10 }
  0x3e   : > { %s221_s7 = sadd.s32 %s1236_s6, %s1141_s12  ;;  %s214_s11 = scalar_lea.vmem [#allocation4], %s1139_s25 }
  0x3f   : > { %s224_s0 = sshll.u32 %s214_s11, 4  ;;  %s1143_s5 = sshll.u32 %s221_s7, 6  ;;  %s1810_s0 = int_to_ptr.vmem [resolvable:$true] %s224_s0 }
  0x40   : > { %s2048_s1 = sld [smem:[#allocation20_spill]]  ;;  %s1817_s26 = scalar_lea.sflag [#allocation5], %s210_s30 }
  0x46   : > { %s1815_s27 = scalar_lea.hbm %s2048_s1, %s1143_s5  ;;  %s1475_s6 = scalar_lea.hbm %s2048_s1, 131072 }
  0x47   : > { %s1471_s17 = scalar_lea.hbm %s1815_s27, 8192  ;;  %p1476_p10 = scmp.lt.u32.totalorder %s1815_s27, %s2048_s1 }
  0x48   : > { %p1472_p2 = scmp.ne.s32.totalorder %s1815_s27, %s1471_s17  ;;  %p1477_p11 = scmp.lt.u32.totalorder %s1475_s6, %s1471_s17 }
  0x49   : > { %p1479_p0 = scmp.lt.u32.totalorder %s1471_s17, %s1815_s27 }
  0x4a   : > { %p1473_p5 = pnand %p1472_p2, %p1762_p9  ;;  %p1478_p13 = por %p1477_p11, %p1476_p10 }
  0x4c   : > { %p1474_p8 = pneg %p1473_p5  ;;  %p1480_p1 = por %p1479_p0, %p1478_p13 }
  0x4e   : > { %p1481_p7 = pnand %p1480_p1, %p1474_p8 }
  0x50   : > { %1484 = shalt.err (!%p1481_p7)
}
  0x51   : > { %s1485_s19 = scalar_lea.vmem %s1810_s0, 8192  ;;  %s1639_s5 = smov [#allocation4]  }
  0x52   : > { %p1486_p2 = scmp.ne.s32.totalorder %s1810_s0, %s1485_s19  ;;  %s1489_s9 = sshll.u32 %s1639_s5, 4  ;;  %s1490_s9 = int_to_ptr.vmem [resolvable:$false] %s1489_s9 }
  0x53   : > { %s1491_s30 = scalar_lea.vmem %s1490_s9, 16384  ;;  %p1492_p4 = scmp.lt.s32.totalorder %s1810_s0, %s1490_s9 }
  0x54   : > { %p1487_p5 = pnand %p1486_p2, %p1762_p9  ;;  %p1493_p12 = scmp.lt.s32.totalorder %s1491_s30, %s1485_s19 }
  0x56   : > { %p1488_p6 = pneg %p1487_p5  ;;  %p1494_p10 = por %p1493_p12, %p1492_p4 }
  0x58   : > { %p1495_p11 = pnand %p1494_p10, %p1488_p6 }
  0x5a   : > { %1498 = shalt.err (!%p1495_p11)
}
  0x5b   : > { %s1640_s17 = smov 1024   ;;  %s1641_s12 = smov 128  }
  0x5c   : > { %s1642_s25 = smov 8   ;;  %s234_s6 = sand.u32 1, %s1597_s14  }
  0x5d   : > { %1251 = dma.hbm_to_vmem [thread:$0]  (%p1762_p9), %s1815_s27, 8192, %s1810_s0, %s1817_s26, %s1640_s17, %s1641_s12, %s1642_s25  }
  0x5e   : > { %s1237_s7 = sshll.u32 %s1633_s23, 5  ;;  %s1144_s11 = sshll.u32 %s234_s6, 1 }
  0x5f   : > { %s1846_s9 = scalar_lea.hbm %s2022_s2, %s1237_s7  ;;  %s238_s30 = scalar_lea.vmem [#allocation6], %s1144_s11 }
  0x60   : > { %s246_s1 = sshll.u32 %s238_s30, 4  ;;  %s235_s22 = scalar_lea.sflag [#allocation7], %s234_s6  ;;  %s247_s1 = int_to_ptr.vmem [resolvable:$true] %s246_s1 }
  0x61   : > { %s1499_s28 = scalar_lea.hbm %s1846_s9, 32  ;;  %s1503_s27 = scalar_lea.hbm %s2022_s2, 256 }
  0x62   : > { %p1500_p12 = scmp.ne.s32.totalorder %s1846_s9, %s1499_s28  ;;  %p1504_p6 = scmp.lt.u32.totalorder %s1846_s9, %s2022_s2 }
  0x63   : > { %p1505_p8 = scmp.lt.u32.totalorder %s1503_s27, %s1499_s28  ;;  %p1507_p0 = scmp.lt.u32.totalorder %s1499_s28, %s1846_s9 }
  0x64   : > { %p1501_p9 = pnand %p1500_p12, %p1787_p3 }
  0x65   : > { %p1506_p13 = por %p1505_p8, %p1504_p6 }
  0x66   : > { %p1502_p4 = pneg %p1501_p9 }
  0x67   : > { %p1508_p1 = por %p1507_p0, %p1506_p13 }
  0x69   : > { %p1509_p7 = pnand %p1508_p1, %p1502_p4 }
  0x6b   : > { %1512 = shalt.err (!%p1509_p7)
}
  0x6c   : > { %s1513_s12 = scalar_lea.vmem %s247_s1, 32  ;;  %s1643_s25 = smov [#allocation6]  }
  0x6d   : > { %p1514_p2 = scmp.ne.s32.totalorder %s247_s1, %s1513_s12  ;;  %s1517_s6 = sshll.u32 %s1643_s25, 4  ;;  %s1518_s6 = int_to_ptr.vmem [resolvable:$false] %s1517_s6 }
  0x6e   : > { %s1519_s7 = scalar_lea.vmem %s1518_s6, 64  ;;  %p1520_p11 = scmp.lt.s32.totalorder %s247_s1, %s1518_s6 }
  0x6f   : > { %p1515_p5 = pnand %p1514_p2, %p1787_p3  ;;  %p1521_p12 = scmp.lt.s32.totalorder %s1519_s7, %s1513_s12 }
  0x71   : > { %p1516_p10 = pneg %p1515_p5  ;;  %p1522_p9 = por %p1521_p12, %p1520_p11 }
  0x73   : > { %p1523_p6 = pnand %p1522_p9, %p1516_p10 }
  0x75   : > { %1526 = shalt.err (!%p1523_p6)
}
  0x76   : > { %1252 = dma.hbm_to_vmem [thread:$0]  (%p1787_p3), %s1846_s9, 32, %s247_s1, %s235_s22  }
  0x77 PF: > { %p1147_p4 = scmp.ge.s32.totalorder %s1637_s24, 1  ;;  %p251_p8 = scmp.lt.s32.totalorder %s1637_s24, 17 }
  0x79   : > { %p252_p13 = pnand %p1147_p4, %p251_p8 }
  0x7a   : > { %s258_s28 = sand.u32 (!%p252_p13), 1, %s1613_s18   ;;  %s264_s11 = sand.u32 (!%p252_p13), 1, %s1605_s16  }
  0x7b   : > { %255 = sbr.rel (%p252_p13) target bundleno = 459 (0x1cb), region = 51  ;;  %s1148_s5 = sshll.u32 (!%p252_p13), %s258_s28, 6 }
  0x7c   : > { %s1149_s19 = sshll.u32 (!%p252_p13), %s264_s11, 9  ;;  %s1869_s30 = scalar_lea.vmem (!%p252_p13), [#allocation3], %s1148_s5 }
  0x7d   : > { %s265_s0 = scalar_lea.sflag (!%p252_p13), [#allocation5], %s264_s11  ;;  %s1871_s15 = scalar_lea.vmem (!%p252_p13), [#allocation4], %s1149_s19 }
  0x7e   : > { %p2049_p3 = scmp.ne.s32.totalorder (!%p252_p13), %s2042_s10, 0 }
  0x82   : > { %1580 = dma.done.wait (%p2049_p3), %s265_s0, 8192  }
  0x83   : > { %1582 = vsyncadd (%p2049_p3), %s265_s0, 4294959104  ;;  %s273_s1 = sand.u32 1, %s1593_s13   ;;  %p2050_p0 = scmp.ne.s32.totalorder %s2045_s29, 0 }
  0x84   : > { %s1150_s22 = sshll.u32 %s273_s1, 1  ;;  %s274_s9 = scalar_lea.sflag [#allocation7], %s273_s1 }
  0x85   : > { %s1878_s8 = scalar_lea.vmem [#allocation6], %s1150_s22 }
  0x86   : > { %1584 = dma.done.wait (%p2050_p0), %s274_s9, 32  }
  0x87   : > { %1586 = vsyncadd (%p2050_p0), %s274_s9, 4294967264  ;;  %s1151_s18 = sshll.u32 %s273_s1, 5  ;;  %p1152_p1 = scmp.ne.s32.totalorder %s1621_s20, 0 }
  0x88   : > { %s1884_s27 = scalar_lea.vmem [#allocation8], %s1151_s18  ;;  %v1644_v8 = vmov (!%p1152_p1), 0.0  }
  0x89   : > { %318 = sbr.rel (%p1152_p1) target bundleno = 144 (0x90), region = 67  ;;  %319 = vst [vmem:[#allocation2] sm:$0xff] (!%p1152_p1), %v1644_v8  ;;  %320 = vst [vmem:[#allocation2 + $0x8] sm:$0xff] (!%p1152_p1), %v1644_v8 }
  0x8a   : > { %321 = vst [vmem:[#allocation2 + $0x10] sm:$0xff] (!%p1152_p1), %v1644_v8  ;;  %322 = vst [vmem:[#allocation2 + $0x18] sm:$0xff] (!%p1152_p1), %v1644_v8 }
  0x8b   : > { %323 = vst [vmem:[#allocation2 + $0x20] sm:$0xff] (!%p1152_p1), %v1644_v8  ;;  %324 = vst [vmem:[#allocation2 + $0x28] sm:$0xff] (!%p1152_p1), %v1644_v8 }
  0x8c   : > { %325 = vst [vmem:[#allocation2 + $0x30] sm:$0xff] (!%p1152_p1), %v1644_v8  ;;  %326 = vst [vmem:[#allocation2 + $0x38] sm:$0xff] (!%p1152_p1), %v1644_v8 }
  0x90 PF: > { %v1363_v9 = vld [vmem:[%s1871_s15 + $0x4] ss:$8 sps:$4 sm:$0xff]   ;;  %v1367_v11 = vld [vmem:[%s1871_s15] ss:$8 sps:$4 sm:$0xff]   ;;  %v1369_v13 = vld [vmem:[%s1871_s15 + $0x14] ss:$8 sps:$4 sm:$0xff]  }
  0x91   : > { %v1365_v10 = vld [vmem:[%s1871_s15 + $0x104] ss:$8 sps:$4 sm:$0xff]   ;;  %767 = vmatprep.subr.bf16.mxu1 %v1363_v9  ;;  %v1368_v12 = vld [vmem:[%s1871_s15 + $0x100] ss:$8 sps:$4 sm:$0xff]   ;;  %v1371_v14 = vld [vmem:[%s1871_s15 + $0x114] ss:$8 sps:$4 sm:$0xff]  }
  0x92   : > { %820 = vmatprep.subr.bf16.mxu0 %v1365_v10  ;;  %768 = vmatpush1.bf16.msra.mxu1 %v1367_v11  ;;  %v1373_v15 = vld [vmem:[%s1871_s15 + $0x10] ss:$8 sps:$4 sm:$0xff]   ;;  %v1375_v17 = vld [vmem:[%s1871_s15 + $0x24] ss:$8 sps:$4 sm:$0xff]   ;;  %v1379_v19 = vld [vmem:[%s1871_s15 + $0x20] ss:$8 sps:$4 sm:$0xff]  }
  0x93   : > { %821 = vmatpush1.bf16.msra.mxu0 %v1368_v12  ;;  %769 = vmatprep.subr.bf16.mxu1 %v1369_v13  ;;  %v1374_v16 = vld [vmem:[%s1871_s15 + $0x110] ss:$8 sps:$4 sm:$0xff]   ;;  %v1377_v18 = vld [vmem:[%s1871_s15 + $0x124] ss:$8 sps:$4 sm:$0xff]   ;;  %v1380_v20 = vld [vmem:[%s1871_s15 + $0x120] ss:$8 sps:$4 sm:$0xff]  }
  0x94   : > { %822 = vmatprep.subr.bf16.mxu0 %v1371_v14  ;;  %v1381_v21 = vld [vmem:[%s1871_s15 + $0x34] ss:$8 sps:$4 sm:$0xff]   ;;  %v1385_v23 = vld [vmem:[%s1871_s15 + $0x30] ss:$8 sps:$4 sm:$0xff]   ;;  %v1387_v25 = vld [vmem:[%s1871_s15 + $0x44] ss:$8 sps:$4 sm:$0xff]  }
  0x95   : > { %v1383_v22 = vld [vmem:[%s1871_s15 + $0x134] ss:$8 sps:$4 sm:$0xff]   ;;  %v1386_v24 = vld [vmem:[%s1871_s15 + $0x130] ss:$8 sps:$4 sm:$0xff]   ;;  %v1389_v26 = vld [vmem:[%s1871_s15 + $0x144] ss:$8 sps:$4 sm:$0xff]  }
  0x96   : > { %770 = vmatpush1.bf16.msra.mxu1 %v1373_v15  ;;  %v1391_v27 = vld [vmem:[%s1871_s15 + $0x40] ss:$8 sps:$4 sm:$0xff]   ;;  %v1393_v29 = vld [vmem:[%s1871_s15 + $0x54] ss:$8 sps:$4 sm:$0xff]   ;;  %v1397_v31 = vld [vmem:[%s1871_s15 + $0x50] ss:$8 sps:$4 sm:$0xff]  }
  0x97   : > { %823 = vmatpush1.bf16.msra.mxu0 %v1374_v16  ;;  %771 = vmatprep.subr.bf16.mxu1 %v1375_v17  ;;  %v1392_v28 = vld [vmem:[%s1871_s15 + $0x140] ss:$8 sps:$4 sm:$0xff]   ;;  %v1395_v30 = vld [vmem:[%s1871_s15 + $0x154] ss:$8 sps:$4 sm:$0xff]   ;;  %v1398_v32 = vld [vmem:[%s1871_s15 + $0x150] ss:$8 sps:$4 sm:$0xff]  }
  0x98   : > { %824 = vmatprep.subr.bf16.mxu0 %v1377_v18  ;;  %v1399_v33 = vld [vmem:[%s1871_s15 + $0x64] ss:$8 sps:$4 sm:$0xff]   ;;  %v1403_v35 = vld [vmem:[%s1871_s15 + $0x60] ss:$8 sps:$4 sm:$0xff]   ;;  %v1405_v37 = vld [vmem:[%s1871_s15 + $0x74] ss:$8 sps:$4 sm:$0xff]  }
  0x99   : > { %v1401_v34 = vld [vmem:[%s1871_s15 + $0x164] ss:$8 sps:$4 sm:$0xff]   ;;  %v1404_v36 = vld [vmem:[%s1871_s15 + $0x160] ss:$8 sps:$4 sm:$0xff]   ;;  %v1407_v38 = vld [vmem:[%s1871_s15 + $0x174] ss:$8 sps:$4 sm:$0xff]  }
  0x9a   : > { %772 = vmatpush1.bf16.msra.mxu1 %v1379_v19  ;;  %v1409_v39 = vld [vmem:[%s1871_s15 + $0x70] ss:$8 sps:$4 sm:$0xff]   ;;  %v1411_v41 = vld [vmem:[%s1871_s15 + $0x84] ss:$8 sps:$4 sm:$0xff]   ;;  %v1415_v43 = vld [vmem:[%s1871_s15 + $0x80] ss:$8 sps:$4 sm:$0xff]  }
  0x9b   : > { %825 = vmatpush1.bf16.msra.mxu0 %v1380_v20  ;;  %773 = vmatprep.subr.bf16.mxu1 %v1381_v21  ;;  %v1410_v40 = vld [vmem:[%s1871_s15 + $0x170] ss:$8 sps:$4 sm:$0xff]   ;;  %v1413_v42 = vld [vmem:[%s1871_s15 + $0x184] ss:$8 sps:$4 sm:$0xff]   ;;  %v1416_v44 = vld [vmem:[%s1871_s15 + $0x180] ss:$8 sps:$4 sm:$0xff]  }
  0x9c   : > { %826 = vmatprep.subr.bf16.mxu0 %v1383_v22  ;;  %v1417_v45 = vld [vmem:[%s1871_s15 + $0x94] ss:$8 sps:$4 sm:$0xff]   ;;  %v1421_v47 = vld [vmem:[%s1871_s15 + $0x90] ss:$8 sps:$4 sm:$0xff]   ;;  %v1423_v49 = vld [vmem:[%s1871_s15 + $0xa4] ss:$8 sps:$4 sm:$0xff]  }
  0x9d   : > { %v1419_v46 = vld [vmem:[%s1871_s15 + $0x194] ss:$8 sps:$4 sm:$0xff]   ;;  %v1422_v48 = vld [vmem:[%s1871_s15 + $0x190] ss:$8 sps:$4 sm:$0xff]   ;;  %v1425_v50 = vld [vmem:[%s1871_s15 + $0x1a4] ss:$8 sps:$4 sm:$0xff]  }
  0x9e   : > { %774 = vmatpush1.bf16.msra.mxu1 %v1385_v23  ;;  %v1427_v51 = vld [vmem:[%s1871_s15 + $0xa0] ss:$8 sps:$4 sm:$0xff]   ;;  %v1429_v53 = vld [vmem:[%s1871_s15 + $0xb4] ss:$8 sps:$4 sm:$0xff]   ;;  %v1433_v55 = vld [vmem:[%s1871_s15 + $0xb0] ss:$8 sps:$4 sm:$0xff]  }
  0x9f   : > { %827 = vmatpush1.bf16.msra.mxu0 %v1386_v24  ;;  %775 = vmatprep.subr.bf16.mxu1 %v1387_v25  ;;  %v1428_v52 = vld [vmem:[%s1871_s15 + $0x1a0] ss:$8 sps:$4 sm:$0xff]   ;;  %v1431_v54 = vld [vmem:[%s1871_s15 + $0x1b4] ss:$8 sps:$4 sm:$0xff]   ;;  %v1434_v56 = vld [vmem:[%s1871_s15 + $0x1b0] ss:$8 sps:$4 sm:$0xff]  }
  0xa0   : > { %828 = vmatprep.subr.bf16.mxu0 %v1389_v26  ;;  %v1435_v57 = vld [vmem:[%s1871_s15 + $0xc4] ss:$8 sps:$4 sm:$0xff]   ;;  %v1439_v61 = vld [vmem:[%s1871_s15 + $0xc0] ss:$8 sps:$4 sm:$0xff]   ;;  %v1441_v63 = vld [vmem:[%s1871_s15 + $0xd4] ss:$8 sps:$4 sm:$0xff]  }
  0xa1   : > { %v1461_v58 = vld [vmem:[%s1869_s30 + $0x4] ss:$16 sps:$4 sm:$0xff]   ;;  %v1464_v60 = vld [vmem:[%s1869_s30 + $0xc] ss:$16 sps:$4 sm:$0xff]   ;;  %v1440_v62 = vld [vmem:[%s1871_s15 + $0x1c0] ss:$8 sps:$4 sm:$0xff]  }
  0xa2   : > { %776 = vmatpush1.bf16.msra.mxu1 %v1391_v27  ;;  %v1437_v59 = vld [vmem:[%s1871_s15 + $0x1c4] ss:$8 sps:$4 sm:$0xff]   ;;  %799 = vmatprep.mubr.bf16.mxu1 %v1461_v58  ;;  %v1443_v0 = vld [vmem:[%s1871_s15 + $0x1d4] ss:$8 sps:$4 sm:$0xff]   ;;  %v1445_v1 = vld [vmem:[%s1871_s15 + $0xd0] ss:$8 sps:$4 sm:$0xff]  }
  0xa3   : > { %829 = vmatpush1.bf16.msra.mxu0 %v1392_v28  ;;  %777 = vmatprep.subr.bf16.mxu1 %v1393_v29  ;;  %v1446_v2 = vld [vmem:[%s1871_s15 + $0x1d0] ss:$8 sps:$4 sm:$0xff]   ;;  %v1447_v3 = vld [vmem:[%s1871_s15 + $0xe4] ss:$8 sps:$4 sm:$0xff]   ;;  %v1451_v5 = vld [vmem:[%s1871_s15 + $0xe0] ss:$8 sps:$4 sm:$0xff]  }
  0xa4   : > { %830 = vmatprep.subr.bf16.mxu0 %v1395_v30  ;;  %852 = vmatprep.mubr.bf16.mxu0 %v1464_v60  ;;  %v1449_v4 = vld [vmem:[%s1871_s15 + $0x1e4] ss:$8 sps:$4 sm:$0xff]   ;;  %v1452_v6 = vld [vmem:[%s1871_s15 + $0x1e0] ss:$8 sps:$4 sm:$0xff]   ;;  %v1453_v7 = vld [vmem:[%s1871_s15 + $0xf4] ss:$8 sps:$4 sm:$0xff]  }
  0xa5   : > { %v1455_v8 = vld [vmem:[%s1871_s15 + $0x1f4] ss:$8 sps:$4 sm:$0xff]   ;;  %v1457_v9 = vld [vmem:[%s1871_s15 + $0xf0] ss:$8 sps:$4 sm:$0xff]   ;;  %v327_v18 = vld [vmem:[#allocation2] sm:$0xff]  ;;  %p1225_p7 = scmp.ne.s32.totalorder %s1621_s20, 1 }
  0xa6   : > { %778 = vmatpush1.bf16.msra.mxu1 %v1397_v31  ;;  %v1458_v10 = vld [vmem:[%s1871_s15 + $0x1f0] ss:$8 sps:$4 sm:$0xff]   ;;  %v1465_v13 = vld [vmem:[%s1869_s30 + $0x24] ss:$16 sps:$4 sm:$0xff]   ;;  %v1467_v14 = vld [vmem:[%s1869_s30 + $0x2c] ss:$16 sps:$4 sm:$0xff]  }
  0xa7   : > { %831 = vmatpush1.bf16.msra.mxu0 %v1398_v32  ;;  %779 = vmatprep.subr.bf16.mxu1 %v1399_v33  ;;  %v1459_v11 = vld [vmem:[%s1869_s30] ss:$16 sps:$4 sm:$0xff]   ;;  %v1462_v12 = vld [vmem:[%s1869_s30 + $0x8] ss:$16 sps:$4 sm:$0xff]  }
  0xa8   : > { %832 = vmatprep.subr.bf16.mxu0 %v1401_v34  ;;  %v1469_v15 = vld [vmem:[%s1869_s30 + $0x20] ss:$16 sps:$4 sm:$0xff]   ;;  %v1470_v16 = vld [vmem:[%s1869_s30 + $0x28] ss:$16 sps:$4 sm:$0xff]  }
  0xa9   : > { %v328_v22 = vld [vmem:[#allocation2 + $0x8] sm:$0xff]  ;;  %v329_v26 = vld [vmem:[#allocation2 + $0x10] sm:$0xff]  ;;  %v330_v31 = vld [vmem:[#allocation2 + $0x18] sm:$0xff] }
  0xaa   : > { %780 = vmatpush1.bf16.msra.mxu1 %v1403_v35 }
  0xab   : > { %833 = vmatpush1.bf16.msra.mxu0 %v1404_v36  ;;  %781 = vmatprep.subr.bf16.mxu1 %v1405_v37 }
  0xac   : > { %834 = vmatprep.subr.bf16.mxu0 %v1407_v38  ;;  %v331_v38 = vld [vmem:[#allocation2 + $0x20] sm:$0xff] }
  0xae   : > { %782 = vmatpush1.bf16.msra.mxu1 %v1409_v39 }
  0xaf   : > { %835 = vmatpush1.bf16.msra.mxu0 %v1410_v40  ;;  %783 = vmatprep.subr.bf16.mxu1 %v1411_v41 }
  0xb0   : > { %836 = vmatprep.subr.bf16.mxu0 %v1413_v42  ;;  %v332_v42 = vld [vmem:[#allocation2 + $0x28] sm:$0xff] }
  0xb2   : > { %784 = vmatpush1.bf16.msra.mxu1 %v1415_v43 }
  0xb3   : > { %837 = vmatpush1.bf16.msra.mxu0 %v1416_v44  ;;  %785 = vmatprep.subr.bf16.mxu1 %v1417_v45 }
  0xb4   : > { %838 = vmatprep.subr.bf16.mxu0 %v1419_v46  ;;  %v333_v46 = vld [vmem:[#allocation2 + $0x30] sm:$0xff] }
  0xb6   : > { %786 = vmatpush1.bf16.msra.mxu1 %v1421_v47 }
  0xb7   : > { %839 = vmatpush1.bf16.msra.mxu0 %v1422_v48  ;;  %787 = vmatprep.subr.bf16.mxu1 %v1423_v49 }
  0xb8   : > { %840 = vmatprep.subr.bf16.mxu0 %v1425_v50 }
  0xba   : > { %788 = vmatpush1.bf16.msra.mxu1 %v1427_v51  ;;  %v334_v51 = vld [vmem:[#allocation2 + $0x38] sm:$0xff] }
  0xbb   : > { %841 = vmatpush1.bf16.msra.mxu0 %v1428_v52  ;;  %789 = vmatprep.subr.bf16.mxu1 %v1429_v53 }
  0xbc   : > { %842 = vmatprep.subr.bf16.mxu0 %v1431_v54 }
  0xbe   : > { %790 = vmatpush1.bf16.msra.mxu1 %v1433_v55 }
  0xbf   : > { %843 = vmatpush1.bf16.msra.mxu0 %v1434_v56  ;;  %791 = vmatprep.subr.bf16.mxu1 %v1435_v57  ;;  %v903_v57 = vlaneseq (!%p1225_p7) }
  0xc0   : > { %844 = vmatprep.subr.bf16.mxu0 %v1437_v59  ;;  %v901_v59 = vld [vmem:[%s1878_s8] sm:$0x3] (!%p1225_p7) }
  0xc1   : > { %v904_v58 = vshrl.u32 (!%p1225_p7), %v903_v57, 7 }
  0xc2   : > { %792 = vmatpush1.bf16.msra.mxu1 %v1439_v61 }
  0xc3   : > { %845 = vmatpush1.bf16.msra.mxu0 %v1440_v62  ;;  %793 = vmatprep.subr.bf16.mxu1 %v1441_v63  ;;  %v905_v62 = vsub.s32 (!%p1225_p7), 0, %v904_v58  ;;  %v909_v63 = vsub.s32 (!%p1225_p7), 1, %v904_v58 }
  0xc4   : > { %846 = vmatprep.subr.bf16.mxu0 %v1443_v0 }
  0xc6   : > { %794 = vmatpush1.bf16.msra.mxu1 %v1445_v1 }
  0xc7   : > { %847 = vmatpush1.bf16.msra.mxu0 %v1446_v2  ;;  %795 = vmatprep.subr.bf16.mxu1 %v1447_v3  ;;  %v906_v3 = vrot.slane (!%p1225_p7), %v901_v59, %v905_v62 }
  0xc8   : > { %848 = vmatprep.subr.bf16.mxu0 %v1449_v4  ;;  %v910_v4 = vrot.slane (!%p1225_p7), %v901_v59, %v909_v63 }
  0xca   : > { %796 = vmatpush1.bf16.msra.mxu1 %v1451_v5 }
  0xcb   : > { %849 = vmatpush1.bf16.msra.mxu0 %v1452_v6  ;;  %797 = vmatprep.subr.bf16.mxu1 %v1453_v7 }
  0xcc   : > { %850 = vmatprep.subr.bf16.mxu0 %v1455_v8 }
  0xce   : > { %798 = vmatpush1.bf16.msra.mxu1 %v1457_v9 }
  0xcf   : > { %851 = vmatpush1.bf16.msra.mxu0 %v1458_v10 }
  0xd1   : > { %800 = vmatmul.mubr.bf16.vlgmr.msra.gmra.mrb[0].mxu1 %v1459_v11 }
  0xd2   : > { %853 = vmatmul.mubr.bf16.vlgmr.msra.gmra.mrb[0].mxu0 %v1462_v12  ;;  %809 = vmatprep.mubr.bf16.mxu1 %v1465_v13 }
  0xd3   : > { %862 = vmatprep.mubr.bf16.mxu0 %v1467_v14 }
  0xd9   : > { %810 = vmatmul.mubr.bf16.gmra.mrb[4].mxu1 %v1469_v15 }
  0xda   : > { %863 = vmatmul.mubr.bf16.gmra.mrb[4].mxu0 %v1470_v16 }
 0x1a4   : > { %v801_v17 = vpop.f32.mrb[0].mxu1 }
 0x1a5   : > { %v854_v19 = vpop.f32.mrb[0].mxu0  ;;  %v803_v21 = vpop.f32.mrb[1].mxu1 }
 0x1a6   : > { %v855_v20 = vadd.f32 %v854_v19, %v801_v17  ;;  %v856_v23 = vpop.f32.mrb[1].mxu0  ;;  %v805_v25 = vpop.f32.mrb[2].mxu1 }
 0x1a7   : > { %v857_v24 = vadd.f32 %v856_v23, %v803_v21  ;;  %v858_v27 = vpop.f32.mrb[2].mxu0  ;;  %v807_v30 = vpop.f32.mrb[3].mxu1 }
 0x1a8   : > { %v873_v28 = vadd.f32 %v855_v20, %v327_v18  ;;  %v859_v29 = vadd.f32 %v858_v27, %v805_v25  ;;  %v860_v32 = vpop.f32.mrb[3].mxu0 }
 0x1a9   : > { %v874_v33 = vadd.f32 %v857_v24, %v328_v22  ;;  %v861_v34 = vadd.f32 %v860_v32, %v807_v30 }
 0x1aa   : > { %881 = vst [vmem:[#allocation2] sm:$0xff] %v873_v28  ;;  %v875_v35 = vadd.f32 %v859_v29, %v329_v26 }
 0x1ab   : > { %882 = vst [vmem:[#allocation2 + $0x8] sm:$0xff] %v874_v33  ;;  %v876_v36 = vadd.f32 %v861_v34, %v330_v31 }
 0x1ac   : > { %883 = vst [vmem:[#allocation2 + $0x10] sm:$0xff] %v875_v35  ;;  %v811_v37 = vpop.f32.mrb[4].mxu1 }
 0x1ad   : > { %884 = vst [vmem:[#allocation2 + $0x18] sm:$0xff] %v876_v36  ;;  %v864_v39 = vpop.f32.mrb[4].mxu0  ;;  %v813_v41 = vpop.f32.mrb[5].mxu1 }
 0x1ae   : > { %v865_v40 = vadd.f32 %v864_v39, %v811_v37  ;;  %v866_v43 = vpop.f32.mrb[5].mxu0  ;;  %v815_v45 = vpop.f32.mrb[6].mxu1 }
 0x1af   : > { %v867_v44 = vadd.f32 %v866_v43, %v813_v41  ;;  %v868_v47 = vpop.f32.mrb[6].mxu0  ;;  %v817_v50 = vpop.f32.mrb[7].mxu1  ;;  %892 = sbr.rel (%p1225_p7) target bundleno = 450 (0x1c2), region = 71 }
 0x1b0   : > { %v877_v48 = vadd.f32 %v865_v40, %v331_v38  ;;  %v869_v49 = vadd.f32 %v868_v47, %v815_v45  ;;  %v870_v52 = vpop.f32.mrb[7].mxu0 }
 0x1b1   : > { %v878_v53 = vadd.f32 %v867_v44, %v332_v42  ;;  %v871_v54 = vadd.f32 %v870_v52, %v817_v50  ;;  %v893_v60 = vld [vmem:[#allocation2] sm:$0xff] (!%p1225_p7) }
 0x1b2   : > { %885 = vst [vmem:[#allocation2 + $0x20] sm:$0xff] %v877_v48  ;;  %v879_v55 = vadd.f32 %v869_v49, %v333_v46  ;;  %v894_v61 = vld [vmem:[#allocation2 + $0x8] sm:$0xff] (!%p1225_p7)  ;;  %v913_v8 = vadd.f32 (!%p1225_p7), %v906_v3, %v893_v60 }
 0x1b3   : > { %886 = vst [vmem:[#allocation2 + $0x28] sm:$0xff] %v878_v53  ;;  %v880_v56 = vadd.f32 %v871_v54, %v334_v51  ;;  %v895_v0 = vld [vmem:[#allocation2 + $0x10] sm:$0xff] (!%p1225_p7)  ;;  %v914_v9 = vadd.f32 (!%p1225_p7), %v910_v4, %v894_v61 }
 0x1b4   : > { %887 = vst [vmem:[#allocation2 + $0x30] sm:$0xff] %v879_v55  ;;  %v896_v1 = vld [vmem:[#allocation2 + $0x18] sm:$0xff] (!%p1225_p7)  ;;  %v915_v10 = vadd.f32 (!%p1225_p7), %v906_v3, %v895_v0 }
 0x1b5   : > { %888 = vst [vmem:[#allocation2 + $0x38] sm:$0xff] %v880_v56  ;;  %v916_v11 = vadd.f32 (!%p1225_p7), %v910_v4, %v896_v1  ;;  %v1238_v16 = vpack.c.bf16 (!%p1225_p7), %v914_v9, %v913_v8 }
 0x1b7   : > { %v1239_v17 = vpack.c.bf16 %v916_v11, %v915_v10  ;;  %945 = vst [vmem:[%s1884_s27] sm:$0xff] %v1238_v16 }
 0x1b9   : > { %v897_v2 = vld [vmem:[#allocation2 + $0x20] sm:$0xff]  ;;  %946 = vst [vmem:[%s1884_s27 + $0x8] sm:$0xff] %v1239_v17 }
 0x1ba   : > { %v898_v5 = vld [vmem:[#allocation2 + $0x28] sm:$0xff]  ;;  %v917_v12 = vadd.f32 %v906_v3, %v897_v2 }
 0x1bb   : > { %v899_v6 = vld [vmem:[#allocation2 + $0x30] sm:$0xff]  ;;  %v918_v13 = vadd.f32 %v910_v4, %v898_v5 }
 0x1bc   : > { %v900_v7 = vld [vmem:[#allocation2 + $0x38] sm:$0xff]  ;;  %v919_v14 = vadd.f32 %v906_v3, %v899_v6 }
 0x1bd   : > { %v920_v15 = vadd.f32 %v910_v4, %v900_v7  ;;  %v1240_v18 = vpack.c.bf16 %v918_v13, %v917_v12 }
 0x1bf   : > { %v1241_v19 = vpack.c.bf16 %v920_v15, %v919_v14  ;;  %947 = vst [vmem:[%s1884_s27 + $0x10] sm:$0xff] %v1240_v18 }
 0x1c1   : > { %948 = vst [vmem:[%s1884_s27 + $0x18] sm:$0xff] %v1241_v19 }
 0x1c2 PF: > { %p2051_p2 = scmp.ne.s32.totalorder %s2046_s4, 0 }
 0x1c3   : > { %s1242_s20 = sshll.u32 (%p2051_p2), %s1625_s21, 3  ;;  %v995_v20 = vld [vmem:[%s1884_s27] sm:$0xff] (%p2051_p2)  ;;  %v997_v21 = vld [vmem:[%s1884_s27 + $0x8] sm:$0xff] (%p2051_p2) }
 0x1c4   : > { %955 = sbr.rel (!%p2051_p2) target bundleno = 459 (0x1cb), region = 75  ;;  %s961_s26 = scalar_lea.vmem (%p2051_p2), %s2023_s3, %s1242_s20 }
 0x1c5   : > { %996 = vst [vmem:[%s961_s26] sm:$0xff] (%p2051_p2), %v995_v20  ;;  %998 = vst [vmem:[%s961_s26 + $0x40] sm:$0xff] (%p2051_p2), %v997_v21 }
 0x1c6   : > { %v999_v22 = vld [vmem:[%s1884_s27 + $0x10] sm:$0xff] (%p2051_p2) }
 0x1c7   : > { %1000 = vst [vmem:[%s961_s26 + $0x80] sm:$0xff] (%p2051_p2), %v999_v22 }
 0x1c8   : > { %v1001_v23 = vld [vmem:[%s1884_s27 + $0x18] sm:$0xff] (%p2051_p2) }
 0x1c9   : > { %1002 = vst [vmem:[%s961_s26 + $0xc0] sm:$0xff] (%p2051_p2), %v1001_v23 }
 0x1cb PF: > { %s19_s24 = sadd.s32 1, %s1637_s24   ;;  %s2053_s21 = sld [smem:[#allocation18_spill]] }
 0x1cc   : > { %p1976_p5 = scmp.ge.s32.totalorder %s19_s24, 18   ;;  %s2054_s17 = sld [smem:[#allocation11_spill]] }
 0x1cd   : > { %s2055_s25 = sld [smem:[#allocation17_spill]]  ;;  %s2056_s18 = sld [smem:[#allocation12_spill]] }
 0x1ce   : > { %s2057_s19 = sld [smem:[#allocation16_spill]]  ;;  %s2058_s20 = sld [smem:[#allocation13_spill]] }
 0x1cf   : > { %s2059_s22 = sld [smem:[#allocation14_spill]]  ;;  %s2060_s6 = sld [smem:[#allocation15_spill]] }
 0x1d0   : > { %s2061_s12 = smov %s1593_s13  ;;  %s2062_s13 = smov %s1597_s14 }
 0x1d1   : > { %s2063_s14 = smov %s2053_s21  ;;  %s2064_s15 = smov %s1605_s16 }
 0x1d2   : > { %s2065_s16 = smov %s2054_s17  ;;  %s2067_s21 = smov %s1633_s23 }
 0x1d3   : > { %s2066_s17 = smov %s2055_s25  ;;  %18 = sbr.rel (!%p1976_p5) target bundleno = 13 (0xd), region = 162 }
 0x1d5   : > { %s2068_s23 = smov %s2060_s6 }
 0x1da   :  { %1018 = vsyncpa [#allocation5], 1 }
 0x1db   :  { %1020 = vsyncpa [#allocation5 + $0x1], 1 }
 0x1dc   :  { %1021 = vsyncpa [#allocation7], 1 }
 0x1dd   :  { %1023 = vsyncpa [#allocation7 + $0x1], 1 }

// kernel: f_classification_forward.11
= control target key start
LH: loop header
LB: loop body
LE: loop exit
PB: predicated region body
PF: predicated region fallthrough
CT: control target
= control target key end

     0   :  { %s3051_s0 = inlined_call_operand.vmem [shape: bf16[128,1024], index: 0, kind: input, shape index: {}]   ;;  %s3052_s1 = inlined_call_operand.vmem [shape: bf16[1024,512], index: 1, kind: input, shape index: {}]   ;;  %s3053_s2 = inlined_call_operand.vmem [shape: f32[1,512], index: 2, kind: input, shape index: {}]   ;;  %s3054_s3 = inlined_call_operand.vmem [shape: bf16[128,512], index: 3, kind: output, shape index: {}]  }
   0x1   :  { %3056 = sst [smem:[#allocation7_spill]] %s3051_s0 }
   0x2   :  { %3057 = sst [smem:[#allocation8_spill]] %s3052_s1 }
   0x3   :  { %s2509_s12 = smov 0   ;;  %s2511_s13 = smov 0  }
   0x4   :  { %s2513_s14 = smov 0   ;;  %s2515_s15 = smov 0  }
   0x5   :  { %s2517_s16 = smov 0   ;;  %s2519_s17 = smov 0  }
   0x6   :  { %s2521_s18 = smov 0   ;;  %s2523_s19 = smov 0  }
   0x7   :  { %s2525_s20 = smov 0   ;;  %s2527_s21 = smov 0  }
   0x8   :  { %s2529_s22 = smov 0  }
   0x9 LB: > { %s1980_s23 = sadd.s32 4294967295, %s2486_s22   ;;  %s25_s24 = sadd.s32 1, %s2478_s20  ;;  %s2486_s22 = sphi %s2529_s22, %s13_s22   ;;  %s2482_s21 = sphi %s2527_s21, %s3074_s21   ;;  %s2478_s20 = sphi %s2525_s20, %s3073_s20   ;;  %s2474_s19 = sphi %s2523_s19, %s3072_s19   ;;  %s2470_s18 = sphi %s2521_s18, %s3071_s18   ;;  %s2466_s17 = sphi %s2519_s17, %s3070_s17   ;;  %s2462_s16 = sphi %s2517_s16, %s3069_s16   ;;  %s2458_s15 = sphi %s2515_s15, %s3068_s15   ;;  %s2454_s14 = sphi %s2513_s14, %s3067_s14   ;;  %s2450_s13 = sphi %s2511_s13, %s3066_s13   ;;  %s2446_s12 = sphi %s2509_s12, %s3065_s12  }
   0xa   : > { %p26_p0 = scmp.ge.s32.totalorder %s25_s24, 2  ;;  %s28_s25 = sadd.s32 1, %s2482_s21 }
   0xb   : > { %s41_s26 = sadd.s32 1, %s2466_s17  ;;  %p48_p1 = scmp.ne.s32.totalorder %s2466_s17, %s2462_s16 }
   0xc   : > { %s3076_s24 = smov (%p26_p0, %s25_s24), 0  ;;  %s3078_s25 = smov (!%p26_p0, %s28_s25), %s2482_s21 }
   0xd   : > { %s37_s27 = ssub.s32 %s2478_s20, %s3076_s24  ;;  %p49_p2 = scmp.eq.s32.totalorder %s2486_s22, 0 }
   0xe   : > { %p30_p3 = scmp.ge.s32.totalorder %s3078_s25, 2  ;;  %p39_p4 = scmp.eq.s32.totalorder %s37_s27, 0 }
   0xf   : > { %p2576_p5 = por %p49_p2, %p48_p1  ;;  %s69_s29 = sadd.s32 1, %s2458_s15 }
  0x10   : > { %s3080_s25 = smov (%p30_p3, %s3078_s25), 0  ;;  %p76_p6 = scmp.ne.s32.totalorder %s2458_s15, %s2454_s14 }
  0x11   : > { %3059 = sst [smem:[#allocation6_spill]] %s3080_s25  ;;  %s65_s4 = ssub.s32 %s2482_s21, %s3080_s25 }
  0x12   : > { %s2584_s30 = scalar_select %p39_p4, %s2466_s17, %s41_s26  }
  0x13   : > { %s66_s5 = sor.u32 %s65_s4, %s37_s27  ;;  %p121_p7 = scmp.eq.s32.totalorder %s65_s4, 0 }
  0x14   : > { %p67_p8 = scmp.eq.s32.totalorder %s66_s5, 0  ;;  %p2590_p9 = por %p76_p6, %p49_p2 }
  0x15   : > { %s123_s7 = sadd.s32 1, %s2450_s13  ;;  %p133_p10 = scmp.ne.s32.totalorder %s2450_s13, %s2446_s12 }
  0x16   : > { %s2598_s8 = scalar_select %p67_p8, %s2458_s15, %s69_s29  }
  0x17   : > { %s2601_s9 = scalar_select %p121_p7, %s2450_s13, %s123_s7  }
  0x18   : > { %p134_p11 = scmp.eq.s32.totalorder %s1980_s23, 3  ;;  %p1983_p13 = scmp.ge.s32.totalorder %s2486_s22, 4 }
  0x1a   : > { %p2603_p12 = por %p134_p11, %p133_p10  ;;  %156 = sbr.rel (%p1983_p13) target bundleno = 101 (0x65), region = 16 }
  0x21   : > { %159 = sbr.rel (!%p2576_p5) target bundleno = 59 (0x3b), region = 20  ;;  %s161_s11 = sand.u32 (%p2576_p5), 1, %s2466_s17  }
  0x22   : > { %s2116_s26 = sshll.u32 (%p2576_p5), %s2478_s20, 4  ;;  %s1984_s27 = sshll.u32 (%p2576_p5), %s161_s11, 8 }
  0x23   : > { %s3062_s0 = sld [smem:[#allocation7_spill]] (%p2576_p5)  ;;  %s2620_s23 = scalar_lea.vmem (%p2576_p5), [#allocation3], %s1984_s27 }
  0x29   : > { %s2615_s5 = scalar_lea.vmem %s3062_s0, %s2116_s26 }
  0x2a   : > { %v182_v0 = vld [vmem:[%s2615_s5] sm:$0xff]  ;;  %v184_v1 = vld [vmem:[%s2615_s5 + $0x8] sm:$0xff] }
  0x2b   : > { %v186_v2 = vld [vmem:[%s2615_s5 + $0x20] sm:$0xff]  ;;  %183 = vst [vmem:[%s2620_s23] sm:$0xff] %v182_v0  ;;  %185 = vst [vmem:[%s2620_s23 + $0x8] sm:$0xff] %v184_v1  ;;  %v188_v3 = vld [vmem:[%s2615_s5 + $0x28] sm:$0xff] }
  0x2c   : > { %187 = vst [vmem:[%s2620_s23 + $0x10] sm:$0xff] %v186_v2  ;;  %v190_v4 = vld [vmem:[%s2615_s5 + $0x40] sm:$0xff]  ;;  %v192_v5 = vld [vmem:[%s2615_s5 + $0x48] sm:$0xff]  ;;  %189 = vst [vmem:[%s2620_s23 + $0x18] sm:$0xff] %v188_v3 }
  0x2d   : > { %191 = vst [vmem:[%s2620_s23 + $0x20] sm:$0xff] %v190_v4  ;;  %193 = vst [vmem:[%s2620_s23 + $0x28] sm:$0xff] %v192_v5  ;;  %v194_v6 = vld [vmem:[%s2615_s5 + $0x60] sm:$0xff]  ;;  %v196_v7 = vld [vmem:[%s2615_s5 + $0x68] sm:$0xff] }
  0x2e   : > { %v198_v8 = vld [vmem:[%s2615_s5 + $0x80] sm:$0xff]  ;;  %195 = vst [vmem:[%s2620_s23 + $0x30] sm:$0xff] %v194_v6  ;;  %197 = vst [vmem:[%s2620_s23 + $0x38] sm:$0xff] %v196_v7  ;;  %v200_v9 = vld [vmem:[%s2615_s5 + $0x88] sm:$0xff] }
  0x2f   : > { %199 = vst [vmem:[%s2620_s23 + $0x40] sm:$0xff] %v198_v8  ;;  %v202_v10 = vld [vmem:[%s2615_s5 + $0xa0] sm:$0xff]  ;;  %v204_v11 = vld [vmem:[%s2615_s5 + $0xa8] sm:$0xff]  ;;  %201 = vst [vmem:[%s2620_s23 + $0x48] sm:$0xff] %v200_v9 }
  0x30   : > { %203 = vst [vmem:[%s2620_s23 + $0x50] sm:$0xff] %v202_v10  ;;  %205 = vst [vmem:[%s2620_s23 + $0x58] sm:$0xff] %v204_v11  ;;  %v206_v12 = vld [vmem:[%s2615_s5 + $0xc0] sm:$0xff]  ;;  %v208_v13 = vld [vmem:[%s2615_s5 + $0xc8] sm:$0xff] }
  0x31   : > { %v210_v14 = vld [vmem:[%s2615_s5 + $0xe0] sm:$0xff]  ;;  %207 = vst [vmem:[%s2620_s23 + $0x60] sm:$0xff] %v206_v12  ;;  %209 = vst [vmem:[%s2620_s23 + $0x68] sm:$0xff] %v208_v13  ;;  %v212_v15 = vld [vmem:[%s2615_s5 + $0xe8] sm:$0xff] }
  0x32   : > { %211 = vst [vmem:[%s2620_s23 + $0x70] sm:$0xff] %v210_v14  ;;  %v214_v16 = vld [vmem:[%s2615_s5 + $0x100] sm:$0xff]  ;;  %v216_v17 = vld [vmem:[%s2615_s5 + $0x108] sm:$0xff]  ;;  %213 = vst [vmem:[%s2620_s23 + $0x78] sm:$0xff] %v212_v15 }
  0x33   : > { %215 = vst [vmem:[%s2620_s23 + $0x80] sm:$0xff] %v214_v16  ;;  %217 = vst [vmem:[%s2620_s23 + $0x88] sm:$0xff] %v216_v17  ;;  %v218_v18 = vld [vmem:[%s2615_s5 + $0x120] sm:$0xff]  ;;  %v220_v19 = vld [vmem:[%s2615_s5 + $0x128] sm:$0xff] }
  0x34   : > { %v222_v20 = vld [vmem:[%s2615_s5 + $0x140] sm:$0xff]  ;;  %219 = vst [vmem:[%s2620_s23 + $0x90] sm:$0xff] %v218_v18  ;;  %221 = vst [vmem:[%s2620_s23 + $0x98] sm:$0xff] %v220_v19  ;;  %v224_v21 = vld [vmem:[%s2615_s5 + $0x148] sm:$0xff] }
  0x35   : > { %223 = vst [vmem:[%s2620_s23 + $0xa0] sm:$0xff] %v222_v20  ;;  %v226_v22 = vld [vmem:[%s2615_s5 + $0x160] sm:$0xff]  ;;  %v228_v23 = vld [vmem:[%s2615_s5 + $0x168] sm:$0xff]  ;;  %225 = vst [vmem:[%s2620_s23 + $0xa8] sm:$0xff] %v224_v21 }
  0x36   : > { %227 = vst [vmem:[%s2620_s23 + $0xb0] sm:$0xff] %v226_v22  ;;  %229 = vst [vmem:[%s2620_s23 + $0xb8] sm:$0xff] %v228_v23  ;;  %v230_v24 = vld [vmem:[%s2615_s5 + $0x180] sm:$0xff]  ;;  %v232_v25 = vld [vmem:[%s2615_s5 + $0x188] sm:$0xff] }
  0x37   : > { %v234_v26 = vld [vmem:[%s2615_s5 + $0x1a0] sm:$0xff]  ;;  %231 = vst [vmem:[%s2620_s23 + $0xc0] sm:$0xff] %v230_v24  ;;  %233 = vst [vmem:[%s2620_s23 + $0xc8] sm:$0xff] %v232_v25  ;;  %v236_v27 = vld [vmem:[%s2615_s5 + $0x1a8] sm:$0xff] }
  0x38   : > { %235 = vst [vmem:[%s2620_s23 + $0xd0] sm:$0xff] %v234_v26  ;;  %v238_v28 = vld [vmem:[%s2615_s5 + $0x1c0] sm:$0xff]  ;;  %v240_v29 = vld [vmem:[%s2615_s5 + $0x1c8] sm:$0xff]  ;;  %237 = vst [vmem:[%s2620_s23 + $0xd8] sm:$0xff] %v236_v27 }
  0x39   : > { %239 = vst [vmem:[%s2620_s23 + $0xe0] sm:$0xff] %v238_v28  ;;  %241 = vst [vmem:[%s2620_s23 + $0xe8] sm:$0xff] %v240_v29  ;;  %v242_v30 = vld [vmem:[%s2615_s5 + $0x1e0] sm:$0xff]  ;;  %v244_v31 = vld [vmem:[%s2615_s5 + $0x1e8] sm:$0xff] }
  0x3a   : > { %243 = vst [vmem:[%s2620_s23 + $0xf0] sm:$0xff] %v242_v30  ;;  %245 = vst [vmem:[%s2620_s23 + $0xf8] sm:$0xff] %v244_v31 }
  0x3b PF: > { %251 = sbr.rel (!%p2590_p9) target bundleno = 101 (0x65), region = 43  ;;  %s253_s28 = sand.u32 (%p2590_p9), 1, %s2458_s15  }
  0x3c   : > { %s1989_s7 = sshll.u32 (%p2590_p9), %s2482_s21, 1  ;;  %s1987_s11 = sshll.u32 (%p2590_p9), %s253_s28, 9 }
  0x3d   : > { %s2117_s26 = sshll.u32 (%p2590_p9), %s2478_s20, 8  ;;  %s3063_s1 = sld [smem:[#allocation8_spill]] (%p2590_p9) }
  0x3e   : > { %s259_s27 = sadd.s32 (%p2590_p9), %s2117_s26, %s1989_s7  ;;  %s2696_s6 = scalar_lea.vmem (%p2590_p9), [#allocation4], %s1987_s11 }
  0x3f   : > { %s1991_s29 = sshll.u32 (%p2590_p9), %s259_s27, 2 }
  0x43   : > { %s2691_s25 = scalar_lea.vmem %s3063_s1, %s1991_s29 }
  0x44   : > { %v415_v32 = vld [vmem:[%s2691_s25] sm:$0xff]  ;;  %v417_v33 = vld [vmem:[%s2691_s25 + $0x10] sm:$0xff] }
  0x45   : > { %v419_v34 = vld [vmem:[%s2691_s25 + $0x20] sm:$0xff]  ;;  %416 = vst [vmem:[%s2696_s6] sm:$0xff] %v415_v32  ;;  %418 = vst [vmem:[%s2696_s6 + $0x8] sm:$0xff] %v417_v33  ;;  %v421_v35 = vld [vmem:[%s2691_s25 + $0x30] sm:$0xff] }
  0x46   : > { %420 = vst [vmem:[%s2696_s6 + $0x10] sm:$0xff] %v419_v34  ;;  %v423_v36 = vld [vmem:[%s2691_s25 + $0x40] sm:$0xff]  ;;  %v425_v37 = vld [vmem:[%s2691_s25 + $0x50] sm:$0xff]  ;;  %422 = vst [vmem:[%s2696_s6 + $0x18] sm:$0xff] %v421_v35 }
  0x47   : > { %424 = vst [vmem:[%s2696_s6 + $0x20] sm:$0xff] %v423_v36  ;;  %426 = vst [vmem:[%s2696_s6 + $0x28] sm:$0xff] %v425_v37  ;;  %v427_v38 = vld [vmem:[%s2691_s25 + $0x60] sm:$0xff]  ;;  %v429_v39 = vld [vmem:[%s2691_s25 + $0x70] sm:$0xff] }
  0x48   : > { %v431_v40 = vld [vmem:[%s2691_s25 + $0x80] sm:$0xff]  ;;  %428 = vst [vmem:[%s2696_s6 + $0x30] sm:$0xff] %v427_v38  ;;  %430 = vst [vmem:[%s2696_s6 + $0x38] sm:$0xff] %v429_v39  ;;  %v433_v41 = vld [vmem:[%s2691_s25 + $0x90] sm:$0xff] }
  0x49   : > { %432 = vst [vmem:[%s2696_s6 + $0x40] sm:$0xff] %v431_v40  ;;  %v435_v42 = vld [vmem:[%s2691_s25 + $0xa0] sm:$0xff]  ;;  %v437_v43 = vld [vmem:[%s2691_s25 + $0xb0] sm:$0xff]  ;;  %434 = vst [vmem:[%s2696_s6 + $0x48] sm:$0xff] %v433_v41 }
  0x4a   : > { %436 = vst [vmem:[%s2696_s6 + $0x50] sm:$0xff] %v435_v42  ;;  %438 = vst [vmem:[%s2696_s6 + $0x58] sm:$0xff] %v437_v43  ;;  %v439_v44 = vld [vmem:[%s2691_s25 + $0xc0] sm:$0xff]  ;;  %v441_v45 = vld [vmem:[%s2691_s25 + $0xd0] sm:$0xff] }
  0x4b   : > { %v443_v46 = vld [vmem:[%s2691_s25 + $0xe0] sm:$0xff]  ;;  %440 = vst [vmem:[%s2696_s6 + $0x60] sm:$0xff] %v439_v44  ;;  %442 = vst [vmem:[%s2696_s6 + $0x68] sm:$0xff] %v441_v45  ;;  %v445_v47 = vld [vmem:[%s2691_s25 + $0xf0] sm:$0xff] }
  0x4c   : > { %444 = vst [vmem:[%s2696_s6 + $0x70] sm:$0xff] %v443_v46  ;;  %v447_v48 = vld [vmem:[%s2691_s25 + $0x100] sm:$0xff]  ;;  %v449_v49 = vld [vmem:[%s2691_s25 + $0x110] sm:$0xff]  ;;  %446 = vst [vmem:[%s2696_s6 + $0x78] sm:$0xff] %v445_v47 }
  0x4d   : > { %448 = vst [vmem:[%s2696_s6 + $0x80] sm:$0xff] %v447_v48  ;;  %450 = vst [vmem:[%s2696_s6 + $0x88] sm:$0xff] %v449_v49  ;;  %v451_v50 = vld [vmem:[%s2691_s25 + $0x120] sm:$0xff]  ;;  %v453_v51 = vld [vmem:[%s2691_s25 + $0x130] sm:$0xff] }
  0x4e   : > { %v455_v52 = vld [vmem:[%s2691_s25 + $0x140] sm:$0xff]  ;;  %452 = vst [vmem:[%s2696_s6 + $0x90] sm:$0xff] %v451_v50  ;;  %454 = vst [vmem:[%s2696_s6 + $0x98] sm:$0xff] %v453_v51  ;;  %v457_v53 = vld [vmem:[%s2691_s25 + $0x150] sm:$0xff] }
  0x4f   : > { %456 = vst [vmem:[%s2696_s6 + $0xa0] sm:$0xff] %v455_v52  ;;  %v459_v54 = vld [vmem:[%s2691_s25 + $0x160] sm:$0xff]  ;;  %v461_v55 = vld [vmem:[%s2691_s25 + $0x170] sm:$0xff]  ;;  %458 = vst [vmem:[%s2696_s6 + $0xa8] sm:$0xff] %v457_v53 }
  0x50   : > { %460 = vst [vmem:[%s2696_s6 + $0xb0] sm:$0xff] %v459_v54  ;;  %462 = vst [vmem:[%s2696_s6 + $0xb8] sm:$0xff] %v461_v55  ;;  %v463_v56 = vld [vmem:[%s2691_s25 + $0x180] sm:$0xff]  ;;  %v465_v57 = vld [vmem:[%s2691_s25 + $0x190] sm:$0xff] }
  0x51   : > { %v467_v58 = vld [vmem:[%s2691_s25 + $0x1a0] sm:$0xff]  ;;  %464 = vst [vmem:[%s2696_s6 + $0xc0] sm:$0xff] %v463_v56  ;;  %466 = vst [vmem:[%s2696_s6 + $0xc8] sm:$0xff] %v465_v57  ;;  %v469_v59 = vld [vmem:[%s2691_s25 + $0x1b0] sm:$0xff] }
  0x52   : > { %468 = vst [vmem:[%s2696_s6 + $0xd0] sm:$0xff] %v467_v58  ;;  %v471_v60 = vld [vmem:[%s2691_s25 + $0x1c0] sm:$0xff]  ;;  %v473_v61 = vld [vmem:[%s2691_s25 + $0x1d0] sm:$0xff]  ;;  %470 = vst [vmem:[%s2696_s6 + $0xd8] sm:$0xff] %v469_v59 }
  0x53   : > { %472 = vst [vmem:[%s2696_s6 + $0xe0] sm:$0xff] %v471_v60  ;;  %474 = vst [vmem:[%s2696_s6 + $0xe8] sm:$0xff] %v473_v61  ;;  %v475_v62 = vld [vmem:[%s2691_s25 + $0x1e0] sm:$0xff]  ;;  %v477_v63 = vld [vmem:[%s2691_s25 + $0x1f0] sm:$0xff] }
  0x54   : > { %v479_v0 = vld [vmem:[%s2691_s25 + $0x200] sm:$0xff]  ;;  %476 = vst [vmem:[%s2696_s6 + $0xf0] sm:$0xff] %v475_v62  ;;  %478 = vst [vmem:[%s2696_s6 + $0xf8] sm:$0xff] %v477_v63  ;;  %v481_v1 = vld [vmem:[%s2691_s25 + $0x210] sm:$0xff] }
  0x55   : > { %480 = vst [vmem:[%s2696_s6 + $0x100] sm:$0xff] %v479_v0  ;;  %v483_v2 = vld [vmem:[%s2691_s25 + $0x220] sm:$0xff]  ;;  %v485_v3 = vld [vmem:[%s2691_s25 + $0x230] sm:$0xff]  ;;  %482 = vst [vmem:[%s2696_s6 + $0x108] sm:$0xff] %v481_v1 }
  0x56   : > { %484 = vst [vmem:[%s2696_s6 + $0x110] sm:$0xff] %v483_v2  ;;  %486 = vst [vmem:[%s2696_s6 + $0x118] sm:$0xff] %v485_v3  ;;  %v487_v4 = vld [vmem:[%s2691_s25 + $0x240] sm:$0xff]  ;;  %v489_v5 = vld [vmem:[%s2691_s25 + $0x250] sm:$0xff] }
  0x57   : > { %v491_v6 = vld [vmem:[%s2691_s25 + $0x260] sm:$0xff]  ;;  %488 = vst [vmem:[%s2696_s6 + $0x120] sm:$0xff] %v487_v4  ;;  %490 = vst [vmem:[%s2696_s6 + $0x128] sm:$0xff] %v489_v5  ;;  %v493_v7 = vld [vmem:[%s2691_s25 + $0x270] sm:$0xff] }
  0x58   : > { %492 = vst [vmem:[%s2696_s6 + $0x130] sm:$0xff] %v491_v6  ;;  %v495_v8 = vld [vmem:[%s2691_s25 + $0x280] sm:$0xff]  ;;  %v497_v9 = vld [vmem:[%s2691_s25 + $0x290] sm:$0xff]  ;;  %494 = vst [vmem:[%s2696_s6 + $0x138] sm:$0xff] %v493_v7 }
  0x59   : > { %496 = vst [vmem:[%s2696_s6 + $0x140] sm:$0xff] %v495_v8  ;;  %498 = vst [vmem:[%s2696_s6 + $0x148] sm:$0xff] %v497_v9  ;;  %v499_v10 = vld [vmem:[%s2691_s25 + $0x2a0] sm:$0xff]  ;;  %v501_v11 = vld [vmem:[%s2691_s25 + $0x2b0] sm:$0xff] }
  0x5a   : > { %v503_v12 = vld [vmem:[%s2691_s25 + $0x2c0] sm:$0xff]  ;;  %500 = vst [vmem:[%s2696_s6 + $0x150] sm:$0xff] %v499_v10  ;;  %502 = vst [vmem:[%s2696_s6 + $0x158] sm:$0xff] %v501_v11  ;;  %v505_v13 = vld [vmem:[%s2691_s25 + $0x2d0] sm:$0xff] }
  0x5b   : > { %504 = vst [vmem:[%s2696_s6 + $0x160] sm:$0xff] %v503_v12  ;;  %v507_v14 = vld [vmem:[%s2691_s25 + $0x2e0] sm:$0xff]  ;;  %v509_v15 = vld [vmem:[%s2691_s25 + $0x2f0] sm:$0xff]  ;;  %506 = vst [vmem:[%s2696_s6 + $0x168] sm:$0xff] %v505_v13 }
  0x5c   : > { %508 = vst [vmem:[%s2696_s6 + $0x170] sm:$0xff] %v507_v14  ;;  %510 = vst [vmem:[%s2696_s6 + $0x178] sm:$0xff] %v509_v15  ;;  %v511_v16 = vld [vmem:[%s2691_s25 + $0x300] sm:$0xff]  ;;  %v513_v17 = vld [vmem:[%s2691_s25 + $0x310] sm:$0xff] }
  0x5d   : > { %v515_v18 = vld [vmem:[%s2691_s25 + $0x320] sm:$0xff]  ;;  %512 = vst [vmem:[%s2696_s6 + $0x180] sm:$0xff] %v511_v16  ;;  %514 = vst [vmem:[%s2696_s6 + $0x188] sm:$0xff] %v513_v17  ;;  %v517_v19 = vld [vmem:[%s2691_s25 + $0x330] sm:$0xff] }
  0x5e   : > { %516 = vst [vmem:[%s2696_s6 + $0x190] sm:$0xff] %v515_v18  ;;  %v519_v20 = vld [vmem:[%s2691_s25 + $0x340] sm:$0xff]  ;;  %v521_v21 = vld [vmem:[%s2691_s25 + $0x350] sm:$0xff]  ;;  %518 = vst [vmem:[%s2696_s6 + $0x198] sm:$0xff] %v517_v19 }
  0x5f   : > { %520 = vst [vmem:[%s2696_s6 + $0x1a0] sm:$0xff] %v519_v20  ;;  %522 = vst [vmem:[%s2696_s6 + $0x1a8] sm:$0xff] %v521_v21  ;;  %v523_v22 = vld [vmem:[%s2691_s25 + $0x360] sm:$0xff]  ;;  %v525_v23 = vld [vmem:[%s2691_s25 + $0x370] sm:$0xff] }
  0x60   : > { %v527_v24 = vld [vmem:[%s2691_s25 + $0x380] sm:$0xff]  ;;  %524 = vst [vmem:[%s2696_s6 + $0x1b0] sm:$0xff] %v523_v22  ;;  %526 = vst [vmem:[%s2696_s6 + $0x1b8] sm:$0xff] %v525_v23  ;;  %v529_v25 = vld [vmem:[%s2691_s25 + $0x390] sm:$0xff] }
  0x61   : > { %528 = vst [vmem:[%s2696_s6 + $0x1c0] sm:$0xff] %v527_v24  ;;  %v531_v26 = vld [vmem:[%s2691_s25 + $0x3a0] sm:$0xff]  ;;  %v533_v27 = vld [vmem:[%s2691_s25 + $0x3b0] sm:$0xff]  ;;  %530 = vst [vmem:[%s2696_s6 + $0x1c8] sm:$0xff] %v529_v25 }
  0x62   : > { %532 = vst [vmem:[%s2696_s6 + $0x1d0] sm:$0xff] %v531_v26  ;;  %534 = vst [vmem:[%s2696_s6 + $0x1d8] sm:$0xff] %v533_v27  ;;  %v535_v28 = vld [vmem:[%s2691_s25 + $0x3c0] sm:$0xff]  ;;  %v537_v29 = vld [vmem:[%s2691_s25 + $0x3d0] sm:$0xff] }
  0x63   : > { %v539_v30 = vld [vmem:[%s2691_s25 + $0x3e0] sm:$0xff]  ;;  %536 = vst [vmem:[%s2696_s6 + $0x1e0] sm:$0xff] %v535_v28  ;;  %538 = vst [vmem:[%s2696_s6 + $0x1e8] sm:$0xff] %v537_v29  ;;  %v541_v31 = vld [vmem:[%s2691_s25 + $0x3f0] sm:$0xff] }
  0x64   : > { %540 = vst [vmem:[%s2696_s6 + $0x1f0] sm:$0xff] %v539_v30  ;;  %542 = vst [vmem:[%s2696_s6 + $0x1f8] sm:$0xff] %v541_v31 }
  0x65 PF: > { %p1992_p0 = scmp.ge.s32.totalorder %s2486_s22, 1  ;;  %p555_p1 = scmp.lt.s32.totalorder %s2486_s22, 5 }
  0x67   : > { %p556_p2 = pnand %p1992_p0, %p555_p1 }
  0x68   : > { %s562_s0 = sand.u32 (!%p556_p2), 1, %s2462_s16   ;;  %s569_s5 = sand.u32 (!%p556_p2), 1, %s2454_s14  }
  0x69   : > { %559 = sbr.rel (%p556_p2) target bundleno = 496 (0x1f0), region = 85  ;;  %s1993_s23 = sshll.u32 (!%p556_p2), %s562_s0, 8 }
  0x6a   : > { %s1994_s28 = sshll.u32 (!%p556_p2), %s569_s5, 9  ;;  %s596_s7 = sand.u32 (!%p556_p2), 1, %s2446_s12  }
  0x6b   : > { %s1996_s11 = sshll.u32 (!%p556_p2), %s2474_s19, 1  ;;  %s1995_s25 = sshll.u32 (!%p556_p2), %s596_s7, 7 }
  0x6c   : > { %p604_p3 = scmp.lt.s32.totalorder (!%p556_p2), %s1996_s11, 3  ;;  %s2835_s4 = scalar_lea.vmem (!%p556_p2), [#allocation3], %s1993_s23 }
  0x6d   : > { %s2837_s6 = scalar_lea.vmem (!%p556_p2), [#allocation4], %s1994_s28  ;;  %s2839_s1 = scalar_lea.vmem (!%p556_p2), [#allocation5], %s1995_s25 }
  0x6e   : > { %p1997_p4 = scmp.ne.s32.totalorder (!%p556_p2), %s2470_s18, 0 }
  0x70   : > { %s3082_s11 = smov (!%p604_p3, %s1996_s11), 3  ;;  %613 = sbr.rel (%p1997_p4) target bundleno = 130 (0x82), region = 97 }
  0x71   : > { %s606_s29 = scalar_lea.vmem %s3053_s2, %s3082_s11  ;;  %v2488_v32 = vmov (!%p1997_p4), 0.0  }
  0x72   : > { %614 = vst [vmem:[#allocation2] sm:$0xff] (!%p1997_p4), %v2488_v32  ;;  %615 = vst [vmem:[#allocation2 + $0x8] sm:$0xff] (!%p1997_p4), %v2488_v32 }
  0x73   : > { %616 = vst [vmem:[#allocation2 + $0x10] sm:$0xff] (!%p1997_p4), %v2488_v32  ;;  %617 = vst [vmem:[#allocation2 + $0x18] sm:$0xff] (!%p1997_p4), %v2488_v32 }
  0x74   : > { %618 = vst [vmem:[#allocation2 + $0x20] sm:$0xff] (!%p1997_p4), %v2488_v32  ;;  %619 = vst [vmem:[#allocation2 + $0x28] sm:$0xff] (!%p1997_p4), %v2488_v32 }
  0x75   : > { %620 = vst [vmem:[#allocation2 + $0x30] sm:$0xff] (!%p1997_p4), %v2488_v32  ;;  %621 = vst [vmem:[#allocation2 + $0x38] sm:$0xff] (!%p1997_p4), %v2488_v32 }
  0x76   : > { %622 = vst [vmem:[#allocation2 + $0x40] sm:$0xff] (!%p1997_p4), %v2488_v32  ;;  %623 = vst [vmem:[#allocation2 + $0x48] sm:$0xff] (!%p1997_p4), %v2488_v32 }
  0x77   : > { %624 = vst [vmem:[#allocation2 + $0x50] sm:$0xff] %v2488_v32  ;;  %625 = vst [vmem:[#allocation2 + $0x58] sm:$0xff] %v2488_v32 }
  0x78   : > { %626 = vst [vmem:[#allocation2 + $0x60] sm:$0xff] %v2488_v32  ;;  %627 = vst [vmem:[#allocation2 + $0x68] sm:$0xff] %v2488_v32 }
  0x79   : > { %628 = vst [vmem:[#allocation2 + $0x70] sm:$0xff] %v2488_v32  ;;  %629 = vst [vmem:[#allocation2 + $0x78] sm:$0xff] %v2488_v32 }
  0x7a   : > { %630 = vst [vmem:[#allocation2 + $0x80] sm:$0xff] %v2488_v32  ;;  %631 = vst [vmem:[#allocation2 + $0x88] sm:$0xff] %v2488_v32 }
  0x7b   : > { %632 = vst [vmem:[#allocation2 + $0x90] sm:$0xff] %v2488_v32  ;;  %633 = vst [vmem:[#allocation2 + $0x98] sm:$0xff] %v2488_v32 }
  0x7c   : > { %634 = vst [vmem:[#allocation2 + $0xa0] sm:$0xff] %v2488_v32  ;;  %635 = vst [vmem:[#allocation2 + $0xa8] sm:$0xff] %v2488_v32 }
  0x7d   : > { %636 = vst [vmem:[#allocation2 + $0xb0] sm:$0xff] %v2488_v32  ;;  %637 = vst [vmem:[#allocation2 + $0xb8] sm:$0xff] %v2488_v32 }
  0x7e   : > { %638 = vst [vmem:[#allocation2 + $0xc0] sm:$0xff] %v2488_v32  ;;  %639 = vst [vmem:[#allocation2 + $0xc8] sm:$0xff] %v2488_v32 }
  0x7f   : > { %640 = vst [vmem:[#allocation2 + $0xd0] sm:$0xff] %v2488_v32  ;;  %641 = vst [vmem:[#allocation2 + $0xd8] sm:$0xff] %v2488_v32 }
  0x80   : > { %642 = vst [vmem:[#allocation2 + $0xe0] sm:$0xff] %v2488_v32  ;;  %643 = vst [vmem:[#allocation2 + $0xe8] sm:$0xff] %v2488_v32 }
  0x81   : > { %644 = vst [vmem:[#allocation2 + $0xf0] sm:$0xff] %v2488_v32  ;;  %645 = vst [vmem:[#allocation2 + $0xf8] sm:$0xff] %v2488_v32 }
  0x82 PF: > { %v2256_v33 = vld [vmem:[%s2837_s6 + $0x4] ss:$8 sps:$4 sm:$0xff]   ;;  %v2260_v35 = vld [vmem:[%s2837_s6] ss:$8 sps:$4 sm:$0xff]   ;;  %v2262_v37 = vld [vmem:[%s2837_s6 + $0x14] ss:$8 sps:$4 sm:$0xff]  }
  0x83   : > { %v2258_v34 = vld [vmem:[%s2837_s6 + $0x104] ss:$8 sps:$4 sm:$0xff]   ;;  %1254 = vmatprep.subr.bf16.mxu1 %v2256_v33  ;;  %v2261_v36 = vld [vmem:[%s2837_s6 + $0x100] ss:$8 sps:$4 sm:$0xff]   ;;  %v2264_v38 = vld [vmem:[%s2837_s6 + $0x114] ss:$8 sps:$4 sm:$0xff]  }
  0x84   : > { %1367 = vmatprep.subr.bf16.mxu0 %v2258_v34  ;;  %1255 = vmatpush1.bf16.msra.mxu1 %v2260_v35  ;;  %v2266_v39 = vld [vmem:[%s2837_s6 + $0x10] ss:$8 sps:$4 sm:$0xff]   ;;  %v2268_v41 = vld [vmem:[%s2837_s6 + $0x24] ss:$8 sps:$4 sm:$0xff]   ;;  %v2272_v43 = vld [vmem:[%s2837_s6 + $0x20] ss:$8 sps:$4 sm:$0xff]  }
  0x85   : > { %1368 = vmatpush1.bf16.msra.mxu0 %v2261_v36  ;;  %1256 = vmatprep.subr.bf16.mxu1 %v2262_v37  ;;  %v2267_v40 = vld [vmem:[%s2837_s6 + $0x110] ss:$8 sps:$4 sm:$0xff]   ;;  %v2270_v42 = vld [vmem:[%s2837_s6 + $0x124] ss:$8 sps:$4 sm:$0xff]   ;;  %v2273_v44 = vld [vmem:[%s2837_s6 + $0x120] ss:$8 sps:$4 sm:$0xff]  }
  0x86   : > { %1369 = vmatprep.subr.bf16.mxu0 %v2264_v38  ;;  %v2274_v45 = vld [vmem:[%s2837_s6 + $0x34] ss:$8 sps:$4 sm:$0xff]   ;;  %v2278_v47 = vld [vmem:[%s2837_s6 + $0x30] ss:$8 sps:$4 sm:$0xff]   ;;  %v2280_v49 = vld [vmem:[%s2837_s6 + $0x44] ss:$8 sps:$4 sm:$0xff]  }
  0x87   : > { %v2276_v46 = vld [vmem:[%s2837_s6 + $0x134] ss:$8 sps:$4 sm:$0xff]   ;;  %v2279_v48 = vld [vmem:[%s2837_s6 + $0x130] ss:$8 sps:$4 sm:$0xff]   ;;  %v2282_v50 = vld [vmem:[%s2837_s6 + $0x144] ss:$8 sps:$4 sm:$0xff]  }
  0x88   : > { %1257 = vmatpush1.bf16.msra.mxu1 %v2266_v39  ;;  %v2284_v51 = vld [vmem:[%s2837_s6 + $0x40] ss:$8 sps:$4 sm:$0xff]   ;;  %v2286_v53 = vld [vmem:[%s2837_s6 + $0x54] ss:$8 sps:$4 sm:$0xff]   ;;  %v2290_v55 = vld [vmem:[%s2837_s6 + $0x50] ss:$8 sps:$4 sm:$0xff]  }
  0x89   : > { %1370 = vmatpush1.bf16.msra.mxu0 %v2267_v40  ;;  %1258 = vmatprep.subr.bf16.mxu1 %v2268_v41  ;;  %v2285_v52 = vld [vmem:[%s2837_s6 + $0x140] ss:$8 sps:$4 sm:$0xff]   ;;  %v2288_v54 = vld [vmem:[%s2837_s6 + $0x154] ss:$8 sps:$4 sm:$0xff]   ;;  %v2291_v56 = vld [vmem:[%s2837_s6 + $0x150] ss:$8 sps:$4 sm:$0xff]  }
  0x8a   : > { %1371 = vmatprep.subr.bf16.mxu0 %v2270_v42  ;;  %v2292_v57 = vld [vmem:[%s2837_s6 + $0x64] ss:$8 sps:$4 sm:$0xff]   ;;  %v2296_v59 = vld [vmem:[%s2837_s6 + $0x60] ss:$8 sps:$4 sm:$0xff]   ;;  %v2298_v61 = vld [vmem:[%s2837_s6 + $0x74] ss:$8 sps:$4 sm:$0xff]  }
  0x8b   : > { %v2294_v58 = vld [vmem:[%s2837_s6 + $0x164] ss:$8 sps:$4 sm:$0xff]   ;;  %v2297_v60 = vld [vmem:[%s2837_s6 + $0x160] ss:$8 sps:$4 sm:$0xff]   ;;  %v2300_v62 = vld [vmem:[%s2837_s6 + $0x174] ss:$8 sps:$4 sm:$0xff]  }
  0x8c   : > { %1259 = vmatpush1.bf16.msra.mxu1 %v2272_v43  ;;  %v2302_v63 = vld [vmem:[%s2837_s6 + $0x70] ss:$8 sps:$4 sm:$0xff]   ;;  %v2304_v1 = vld [vmem:[%s2837_s6 + $0x84] ss:$8 sps:$4 sm:$0xff]   ;;  %v2308_v3 = vld [vmem:[%s2837_s6 + $0x80] ss:$8 sps:$4 sm:$0xff]  }
  0x8d   : > { %1372 = vmatpush1.bf16.msra.mxu0 %v2273_v44  ;;  %1260 = vmatprep.subr.bf16.mxu1 %v2274_v45  ;;  %v2303_v0 = vld [vmem:[%s2837_s6 + $0x170] ss:$8 sps:$4 sm:$0xff]   ;;  %v2306_v2 = vld [vmem:[%s2837_s6 + $0x184] ss:$8 sps:$4 sm:$0xff]   ;;  %v2309_v4 = vld [vmem:[%s2837_s6 + $0x180] ss:$8 sps:$4 sm:$0xff]  }
  0x8e   : > { %1373 = vmatprep.subr.bf16.mxu0 %v2276_v46  ;;  %v2310_v5 = vld [vmem:[%s2837_s6 + $0x94] ss:$8 sps:$4 sm:$0xff]   ;;  %v2314_v7 = vld [vmem:[%s2837_s6 + $0x90] ss:$8 sps:$4 sm:$0xff]   ;;  %v2316_v9 = vld [vmem:[%s2837_s6 + $0xa4] ss:$8 sps:$4 sm:$0xff]  }
  0x8f   : > { %v2312_v6 = vld [vmem:[%s2837_s6 + $0x194] ss:$8 sps:$4 sm:$0xff]   ;;  %v2315_v8 = vld [vmem:[%s2837_s6 + $0x190] ss:$8 sps:$4 sm:$0xff]   ;;  %v2318_v10 = vld [vmem:[%s2837_s6 + $0x1a4] ss:$8 sps:$4 sm:$0xff]  }
  0x90   : > { %1261 = vmatpush1.bf16.msra.mxu1 %v2278_v47  ;;  %v2320_v11 = vld [vmem:[%s2837_s6 + $0xa0] ss:$8 sps:$4 sm:$0xff]   ;;  %v2322_v13 = vld [vmem:[%s2837_s6 + $0xb4] ss:$8 sps:$4 sm:$0xff]   ;;  %v2326_v15 = vld [vmem:[%s2837_s6 + $0xb0] ss:$8 sps:$4 sm:$0xff]  }
  0x91   : > { %1374 = vmatpush1.bf16.msra.mxu0 %v2279_v48  ;;  %1262 = vmatprep.subr.bf16.mxu1 %v2280_v49  ;;  %v2321_v12 = vld [vmem:[%s2837_s6 + $0x1a0] ss:$8 sps:$4 sm:$0xff]   ;;  %v2324_v14 = vld [vmem:[%s2837_s6 + $0x1b4] ss:$8 sps:$4 sm:$0xff]   ;;  %v2327_v16 = vld [vmem:[%s2837_s6 + $0x1b0] ss:$8 sps:$4 sm:$0xff]  }
  0x92   : > { %1375 = vmatprep.subr.bf16.mxu0 %v2282_v50  ;;  %v2328_v17 = vld [vmem:[%s2837_s6 + $0xc4] ss:$8 sps:$4 sm:$0xff]   ;;  %v2332_v21 = vld [vmem:[%s2837_s6 + $0xc0] ss:$8 sps:$4 sm:$0xff]   ;;  %v2334_v23 = vld [vmem:[%s2837_s6 + $0xd4] ss:$8 sps:$4 sm:$0xff]  }
  0x93   : > { %v2354_v18 = vld [vmem:[%s2835_s4 + $0x4] ss:$16 sps:$4 sm:$0xff]   ;;  %v2357_v20 = vld [vmem:[%s2835_s4 + $0xc] ss:$16 sps:$4 sm:$0xff]   ;;  %v2333_v22 = vld [vmem:[%s2837_s6 + $0x1c0] ss:$8 sps:$4 sm:$0xff]  }
  0x94   : > { %1263 = vmatpush1.bf16.msra.mxu1 %v2284_v51  ;;  %v2330_v19 = vld [vmem:[%s2837_s6 + $0x1c4] ss:$8 sps:$4 sm:$0xff]   ;;  %1286 = vmatprep.mubr.bf16.mxu1 %v2354_v18  ;;  %v2336_v24 = vld [vmem:[%s2837_s6 + $0x1d4] ss:$8 sps:$4 sm:$0xff]   ;;  %v2338_v25 = vld [vmem:[%s2837_s6 + $0xd0] ss:$8 sps:$4 sm:$0xff]  }
  0x95   : > { %1376 = vmatpush1.bf16.msra.mxu0 %v2285_v52  ;;  %1264 = vmatprep.subr.bf16.mxu1 %v2286_v53  ;;  %v2339_v26 = vld [vmem:[%s2837_s6 + $0x1d0] ss:$8 sps:$4 sm:$0xff]   ;;  %v2340_v27 = vld [vmem:[%s2837_s6 + $0xe4] ss:$8 sps:$4 sm:$0xff]   ;;  %v2344_v29 = vld [vmem:[%s2837_s6 + $0xe0] ss:$8 sps:$4 sm:$0xff]  }
  0x96   : > { %1377 = vmatprep.subr.bf16.mxu0 %v2288_v54  ;;  %1399 = vmatprep.mubr.bf16.mxu0 %v2357_v20  ;;  %v2342_v28 = vld [vmem:[%s2837_s6 + $0x1e4] ss:$8 sps:$4 sm:$0xff]   ;;  %v2345_v30 = vld [vmem:[%s2837_s6 + $0x1e0] ss:$8 sps:$4 sm:$0xff]   ;;  %v2346_v31 = vld [vmem:[%s2837_s6 + $0xf4] ss:$8 sps:$4 sm:$0xff]  }
  0x97   : > { %v2348_v32 = vld [vmem:[%s2837_s6 + $0x1f4] ss:$8 sps:$4 sm:$0xff]   ;;  %v2350_v33 = vld [vmem:[%s2837_s6 + $0xf0] ss:$8 sps:$4 sm:$0xff]   ;;  %p2094_p5 = scmp.ne.s32.totalorder %s2470_s18, 1 }
  0x98   : > { %1265 = vmatpush1.bf16.msra.mxu1 %v2290_v55  ;;  %v2351_v34 = vld [vmem:[%s2837_s6 + $0x1f0] ss:$8 sps:$4 sm:$0xff]   ;;  %v2358_v37 = vld [vmem:[%s2835_s4 + $0x24] ss:$16 sps:$4 sm:$0xff]   ;;  %v2360_v38 = vld [vmem:[%s2835_s4 + $0x2c] ss:$16 sps:$4 sm:$0xff]  }
  0x99   : > { %1378 = vmatpush1.bf16.msra.mxu0 %v2291_v56  ;;  %1266 = vmatprep.subr.bf16.mxu1 %v2292_v57  ;;  %v2352_v35 = vld [vmem:[%s2835_s4] ss:$16 sps:$4 sm:$0xff]   ;;  %v2355_v36 = vld [vmem:[%s2835_s4 + $0x8] ss:$16 sps:$4 sm:$0xff]   ;;  %v2364_v41 = vld [vmem:[%s2835_s4 + $0x44] ss:$16 sps:$4 sm:$0xff]  }
  0x9a   : > { %1379 = vmatprep.subr.bf16.mxu0 %v2294_v58  ;;  %v2362_v39 = vld [vmem:[%s2835_s4 + $0x20] ss:$16 sps:$4 sm:$0xff]   ;;  %v2363_v40 = vld [vmem:[%s2835_s4 + $0x28] ss:$16 sps:$4 sm:$0xff]   ;;  %v2366_v42 = vld [vmem:[%s2835_s4 + $0x4c] ss:$16 sps:$4 sm:$0xff]  }
  0x9b   : > { %v2368_v43 = vld [vmem:[%s2835_s4 + $0x40] ss:$16 sps:$4 sm:$0xff]   ;;  %v2369_v44 = vld [vmem:[%s2835_s4 + $0x48] ss:$16 sps:$4 sm:$0xff]   ;;  %v2370_v45 = vld [vmem:[%s2835_s4 + $0x64] ss:$16 sps:$4 sm:$0xff]  }
  0x9c   : > { %1267 = vmatpush1.bf16.msra.mxu1 %v2296_v59  ;;  %v2372_v46 = vld [vmem:[%s2835_s4 + $0x6c] ss:$16 sps:$4 sm:$0xff]   ;;  %v2374_v47 = vld [vmem:[%s2835_s4 + $0x60] ss:$16 sps:$4 sm:$0xff]   ;;  %v2375_v48 = vld [vmem:[%s2835_s4 + $0x68] ss:$16 sps:$4 sm:$0xff]  }
  0x9d   : > { %1380 = vmatpush1.bf16.msra.mxu0 %v2297_v60  ;;  %1268 = vmatprep.subr.bf16.mxu1 %v2298_v61  ;;  %v2376_v49 = vld [vmem:[%s2835_s4 + $0x84] ss:$16 sps:$4 sm:$0xff]   ;;  %v2378_v50 = vld [vmem:[%s2835_s4 + $0x8c] ss:$16 sps:$4 sm:$0xff]   ;;  %v2380_v51 = vld [vmem:[%s2835_s4 + $0x80] ss:$16 sps:$4 sm:$0xff]  }
  0x9e   : > { %1381 = vmatprep.subr.bf16.mxu0 %v2300_v62  ;;  %v2381_v52 = vld [vmem:[%s2835_s4 + $0x88] ss:$16 sps:$4 sm:$0xff]   ;;  %v2382_v53 = vld [vmem:[%s2835_s4 + $0xa4] ss:$16 sps:$4 sm:$0xff]   ;;  %v2384_v54 = vld [vmem:[%s2835_s4 + $0xac] ss:$16 sps:$4 sm:$0xff]  }
  0x9f   : > { %v2386_v55 = vld [vmem:[%s2835_s4 + $0xa0] ss:$16 sps:$4 sm:$0xff]   ;;  %v2387_v56 = vld [vmem:[%s2835_s4 + $0xa8] ss:$16 sps:$4 sm:$0xff]   ;;  %v2388_v57 = vld [vmem:[%s2835_s4 + $0xc4] ss:$16 sps:$4 sm:$0xff]  }
  0xa0   : > { %1269 = vmatpush1.bf16.msra.mxu1 %v2302_v63  ;;  %v2390_v58 = vld [vmem:[%s2835_s4 + $0xcc] ss:$16 sps:$4 sm:$0xff]   ;;  %v2392_v59 = vld [vmem:[%s2835_s4 + $0xc0] ss:$16 sps:$4 sm:$0xff]   ;;  %v2393_v60 = vld [vmem:[%s2835_s4 + $0xc8] ss:$16 sps:$4 sm:$0xff]  }
  0xa1   : > { %1382 = vmatpush1.bf16.msra.mxu0 %v2303_v0  ;;  %1270 = vmatprep.subr.bf16.mxu1 %v2304_v1  ;;  %v2394_v61 = vld [vmem:[%s2835_s4 + $0xe4] ss:$16 sps:$4 sm:$0xff]   ;;  %v2396_v62 = vld [vmem:[%s2835_s4 + $0xec] ss:$16 sps:$4 sm:$0xff]   ;;  %v2398_v63 = vld [vmem:[%s2835_s4 + $0xe0] ss:$16 sps:$4 sm:$0xff]  }
  0xa2   : > { %1383 = vmatprep.subr.bf16.mxu0 %v2306_v2  ;;  %v2399_v0 = vld [vmem:[%s2835_s4 + $0xe8] ss:$16 sps:$4 sm:$0xff]   ;;  %v646_v2 = vld [vmem:[#allocation2] sm:$0xff] }
  0xa4   : > { %1271 = vmatpush1.bf16.msra.mxu1 %v2308_v3 }
  0xa5   : > { %1384 = vmatpush1.bf16.msra.mxu0 %v2309_v4  ;;  %1272 = vmatprep.subr.bf16.mxu1 %v2310_v5 }
  0xa6   : > { %1385 = vmatprep.subr.bf16.mxu0 %v2312_v6  ;;  %v647_v6 = vld [vmem:[#allocation2 + $0x8] sm:$0xff] }
  0xa8   : > { %1273 = vmatpush1.bf16.msra.mxu1 %v2314_v7 }
  0xa9   : > { %1386 = vmatpush1.bf16.msra.mxu0 %v2315_v8  ;;  %1274 = vmatprep.subr.bf16.mxu1 %v2316_v9 }
  0xaa   : > { %1387 = vmatprep.subr.bf16.mxu0 %v2318_v10  ;;  %v648_v10 = vld [vmem:[#allocation2 + $0x10] sm:$0xff] }
  0xac   : > { %1275 = vmatpush1.bf16.msra.mxu1 %v2320_v11 }
  0xad   : > { %1388 = vmatpush1.bf16.msra.mxu0 %v2321_v12  ;;  %1276 = vmatprep.subr.bf16.mxu1 %v2322_v13 }
  0xae   : > { %1389 = vmatprep.subr.bf16.mxu0 %v2324_v14 }
  0xb0   : > { %1277 = vmatpush1.bf16.msra.mxu1 %v2326_v15  ;;  %v649_v15 = vld [vmem:[#allocation2 + $0x18] sm:$0xff] }
  0xb1   : > { %1390 = vmatpush1.bf16.msra.mxu0 %v2327_v16  ;;  %1278 = vmatprep.subr.bf16.mxu1 %v2328_v17 }
  0xb2   : > { %1391 = vmatprep.subr.bf16.mxu0 %v2330_v19 }
  0xb4   : > { %1279 = vmatpush1.bf16.msra.mxu1 %v2332_v21 }
  0xb5   : > { %1392 = vmatpush1.bf16.msra.mxu0 %v2333_v22  ;;  %1280 = vmatprep.subr.bf16.mxu1 %v2334_v23  ;;  %v650_v22 = vld [vmem:[#allocation2 + $0x20] sm:$0xff] }
  0xb6   : > { %1393 = vmatprep.subr.bf16.mxu0 %v2336_v24 }
  0xb8   : > { %1281 = vmatpush1.bf16.msra.mxu1 %v2338_v25 }
  0xb9   : > { %1394 = vmatpush1.bf16.msra.mxu0 %v2339_v26  ;;  %1282 = vmatprep.subr.bf16.mxu1 %v2340_v27  ;;  %v651_v26 = vld [vmem:[#allocation2 + $0x28] sm:$0xff] }
  0xba   : > { %1395 = vmatprep.subr.bf16.mxu0 %v2342_v28 }
  0xbc   : > { %1283 = vmatpush1.bf16.msra.mxu1 %v2344_v29 }
  0xbd   : > { %1396 = vmatpush1.bf16.msra.mxu0 %v2345_v30  ;;  %1284 = vmatprep.subr.bf16.mxu1 %v2346_v31  ;;  %v652_v30 = vld [vmem:[#allocation2 + $0x30] sm:$0xff] }
  0xbe   : > { %1397 = vmatprep.subr.bf16.mxu0 %v2348_v32 }
  0xc0   : > { %1285 = vmatpush1.bf16.msra.mxu1 %v2350_v33 }
  0xc1   : > { %1398 = vmatpush1.bf16.msra.mxu0 %v2351_v34 }
  0xc3   : > { %1287 = vmatmul.mubr.bf16.vlgmr.msra.gmra.mrb[0].mxu1 %v2352_v35  ;;  %v653_v35 = vld [vmem:[#allocation2 + $0x38] sm:$0xff] }
  0xc4   : > { %1400 = vmatmul.mubr.bf16.vlgmr.msra.gmra.mrb[0].mxu0 %v2355_v36  ;;  %1296 = vmatprep.mubr.bf16.mxu1 %v2358_v37 }
  0xc5   : > { %1409 = vmatprep.mubr.bf16.mxu0 %v2360_v38 }
  0xcb   : > { %1297 = vmatmul.mubr.bf16.gmra.mrb[4].mxu1 %v2362_v39 }
  0xcc   : > { %1410 = vmatmul.mubr.bf16.gmra.mrb[4].mxu0 %v2363_v40  ;;  %1306 = vmatprep.mubr.bf16.mxu1 %v2364_v41 }
  0xcd   : > { %1419 = vmatprep.mubr.bf16.mxu0 %v2366_v42  ;;  %v654_v42 = vld [vmem:[#allocation2 + $0x40] sm:$0xff] }
  0xd3   : > { %1307 = vmatmul.mubr.bf16.gmra.mrb[8].mxu1 %v2368_v43 }
  0xd4   : > { %1420 = vmatmul.mubr.bf16.gmra.mrb[8].mxu0 %v2369_v44  ;;  %1316 = vmatprep.mubr.bf16.mxu1 %v2370_v45 }
  0xd5   : > { %1429 = vmatprep.mubr.bf16.mxu0 %v2372_v46  ;;  %v655_v46 = vld [vmem:[#allocation2 + $0x48] sm:$0xff] }
  0xdb   : > { %1317 = vmatmul.mubr.bf16.gmra.mrb[12].mxu1 %v2374_v47 }
  0xdc   : > { %1430 = vmatmul.mubr.bf16.gmra.mrb[12].mxu0 %v2375_v48  ;;  %1326 = vmatprep.mubr.bf16.mxu1 %v2376_v49 }
  0xdd   : > { %1439 = vmatprep.mubr.bf16.mxu0 %v2378_v50  ;;  %v656_v50 = vld [vmem:[#allocation2 + $0x50] sm:$0xff] }
  0xe3   : > { %1327 = vmatmul.mubr.bf16.gmra.mrb[16].mxu1 %v2380_v51 }
  0xe4   : > { %1440 = vmatmul.mubr.bf16.gmra.mrb[16].mxu0 %v2381_v52  ;;  %1336 = vmatprep.mubr.bf16.mxu1 %v2382_v53 }
  0xe5   : > { %1449 = vmatprep.mubr.bf16.mxu0 %v2384_v54 }
  0xeb   : > { %1337 = vmatmul.mubr.bf16.gmra.mrb[20].mxu1 %v2386_v55  ;;  %v657_v55 = vld [vmem:[#allocation2 + $0x58] sm:$0xff] }
  0xec   : > { %1450 = vmatmul.mubr.bf16.gmra.mrb[20].mxu0 %v2387_v56  ;;  %1346 = vmatprep.mubr.bf16.mxu1 %v2388_v57 }
  0xed   : > { %1459 = vmatprep.mubr.bf16.mxu0 %v2390_v58 }
  0xf3   : > { %1347 = vmatmul.mubr.bf16.gmra.mrb[24].mxu1 %v2392_v59 }
  0xf4   : > { %1460 = vmatmul.mubr.bf16.gmra.mrb[24].mxu0 %v2393_v60  ;;  %1356 = vmatprep.mubr.bf16.mxu1 %v2394_v61 }
  0xf5   : > { %1469 = vmatprep.mubr.bf16.mxu0 %v2396_v62  ;;  %v658_v62 = vld [vmem:[#allocation2 + $0x60] sm:$0xff] }
  0xfb   : > { %1357 = vmatmul.mubr.bf16.gmra.mrb[28].mxu1 %v2398_v63 }
  0xfc   : > { %1470 = vmatmul.mubr.bf16.gmra.mrb[28].mxu0 %v2399_v0 }
 0x196   : > { %v1288_v1 = vpop.f32.mrb[0].mxu1 }
 0x197   : > { %v1401_v3 = vpop.f32.mrb[0].mxu0  ;;  %v1290_v5 = vpop.f32.mrb[1].mxu1 }
 0x198   : > { %v1402_v4 = vadd.f32 %v1401_v3, %v1288_v1  ;;  %v1403_v7 = vpop.f32.mrb[1].mxu0  ;;  %v1292_v9 = vpop.f32.mrb[2].mxu1 }
 0x199   : > { %v1404_v8 = vadd.f32 %v1403_v7, %v1290_v5  ;;  %v1405_v11 = vpop.f32.mrb[2].mxu0  ;;  %v1294_v14 = vpop.f32.mrb[3].mxu1 }
 0x19a   : > { %v1480_v12 = vadd.f32 %v1402_v4, %v646_v2  ;;  %v1406_v13 = vadd.f32 %v1405_v11, %v1292_v9  ;;  %v1407_v16 = vpop.f32.mrb[3].mxu0  ;;  %v659_v2 = vld [vmem:[#allocation2 + $0x68] sm:$0xff]  ;;  %v661_v11 = vld [vmem:[#allocation2 + $0x78] sm:$0xff] }
 0x19b   : > { %v1481_v17 = vadd.f32 %v1404_v8, %v647_v6  ;;  %v1408_v18 = vadd.f32 %v1407_v16, %v1294_v14  ;;  %v660_v6 = vld [vmem:[#allocation2 + $0x70] sm:$0xff] }
 0x19c   : > { %1512 = vst [vmem:[#allocation2] sm:$0xff] %v1480_v12  ;;  %v1482_v19 = vadd.f32 %v1406_v13, %v648_v10 }
 0x19d   : > { %1513 = vst [vmem:[#allocation2 + $0x8] sm:$0xff] %v1481_v17  ;;  %v1483_v20 = vadd.f32 %v1408_v18, %v649_v15  ;;  %v662_v18 = vld [vmem:[#allocation2 + $0x80] sm:$0xff] }
 0x19e   : > { %1514 = vst [vmem:[#allocation2 + $0x10] sm:$0xff] %v1482_v19  ;;  %v1298_v21 = vpop.f32.mrb[4].mxu1 }
 0x19f   : > { %1515 = vst [vmem:[#allocation2 + $0x18] sm:$0xff] %v1483_v20  ;;  %v1411_v23 = vpop.f32.mrb[4].mxu0  ;;  %v1300_v25 = vpop.f32.mrb[5].mxu1 }
 0x1a0   : > { %v1412_v24 = vadd.f32 %v1411_v23, %v1298_v21  ;;  %v1413_v27 = vpop.f32.mrb[5].mxu0  ;;  %v1302_v29 = vpop.f32.mrb[6].mxu1 }
 0x1a1   : > { %v1414_v28 = vadd.f32 %v1413_v27, %v1300_v25  ;;  %v1415_v31 = vpop.f32.mrb[6].mxu0  ;;  %v1304_v34 = vpop.f32.mrb[7].mxu1 }
 0x1a2   : > { %v1484_v32 = vadd.f32 %v1412_v24, %v650_v22  ;;  %v1416_v33 = vadd.f32 %v1415_v31, %v1302_v29  ;;  %v1417_v36 = vpop.f32.mrb[7].mxu0  ;;  %v663_v22 = vld [vmem:[#allocation2 + $0x88] sm:$0xff]  ;;  %v665_v31 = vld [vmem:[#allocation2 + $0x98] sm:$0xff] }
 0x1a3   : > { %v1485_v37 = vadd.f32 %v1414_v28, %v651_v26  ;;  %v1418_v38 = vadd.f32 %v1417_v36, %v1304_v34  ;;  %v664_v26 = vld [vmem:[#allocation2 + $0x90] sm:$0xff] }
 0x1a4   : > { %1516 = vst [vmem:[#allocation2 + $0x20] sm:$0xff] %v1484_v32  ;;  %v1486_v39 = vadd.f32 %v1416_v33, %v652_v30 }
 0x1a5   : > { %1517 = vst [vmem:[#allocation2 + $0x28] sm:$0xff] %v1485_v37  ;;  %v1487_v40 = vadd.f32 %v1418_v38, %v653_v35  ;;  %v666_v38 = vld [vmem:[#allocation2 + $0xa0] sm:$0xff] }
 0x1a6   : > { %1518 = vst [vmem:[#allocation2 + $0x30] sm:$0xff] %v1486_v39  ;;  %v1308_v41 = vpop.f32.mrb[8].mxu1 }
 0x1a7   : > { %1519 = vst [vmem:[#allocation2 + $0x38] sm:$0xff] %v1487_v40  ;;  %v1421_v43 = vpop.f32.mrb[8].mxu0  ;;  %v1310_v45 = vpop.f32.mrb[9].mxu1 }
 0x1a8   : > { %v1422_v44 = vadd.f32 %v1421_v43, %v1308_v41  ;;  %v1423_v47 = vpop.f32.mrb[9].mxu0  ;;  %v1312_v49 = vpop.f32.mrb[10].mxu1 }
 0x1a9   : > { %v1424_v48 = vadd.f32 %v1423_v47, %v1310_v45  ;;  %v1425_v51 = vpop.f32.mrb[10].mxu0  ;;  %v1314_v54 = vpop.f32.mrb[11].mxu1 }
 0x1aa   : > { %v1488_v52 = vadd.f32 %v1422_v44, %v654_v42  ;;  %v1426_v53 = vadd.f32 %v1425_v51, %v1312_v49  ;;  %v1427_v56 = vpop.f32.mrb[11].mxu0  ;;  %v667_v42 = vld [vmem:[#allocation2 + $0xa8] sm:$0xff]  ;;  %v669_v51 = vld [vmem:[#allocation2 + $0xb8] sm:$0xff] }
 0x1ab   : > { %v1489_v57 = vadd.f32 %v1424_v48, %v655_v46  ;;  %v1428_v58 = vadd.f32 %v1427_v56, %v1314_v54  ;;  %v668_v46 = vld [vmem:[#allocation2 + $0xb0] sm:$0xff] }
 0x1ac   : > { %1520 = vst [vmem:[#allocation2 + $0x40] sm:$0xff] %v1488_v52  ;;  %v1490_v59 = vadd.f32 %v1426_v53, %v656_v50 }
 0x1ad   : > { %1521 = vst [vmem:[#allocation2 + $0x48] sm:$0xff] %v1489_v57  ;;  %v1491_v60 = vadd.f32 %v1428_v58, %v657_v55  ;;  %v670_v58 = vld [vmem:[#allocation2 + $0xc0] sm:$0xff] }
 0x1ae   : > { %1522 = vst [vmem:[#allocation2 + $0x50] sm:$0xff] %v1490_v59  ;;  %v1318_v61 = vpop.f32.mrb[12].mxu1 }
 0x1af   : > { %1523 = vst [vmem:[#allocation2 + $0x58] sm:$0xff] %v1491_v60  ;;  %v1431_v63 = vpop.f32.mrb[12].mxu0  ;;  %v1320_v1 = vpop.f32.mrb[13].mxu1 }
 0x1b0   : > { %v1432_v0 = vadd.f32 %v1431_v63, %v1318_v61  ;;  %v1433_v3 = vpop.f32.mrb[13].mxu0  ;;  %v1322_v5 = vpop.f32.mrb[14].mxu1 }
 0x1b1   : > { %v1434_v4 = vadd.f32 %v1433_v3, %v1320_v1  ;;  %v1435_v7 = vpop.f32.mrb[14].mxu0  ;;  %v1324_v10 = vpop.f32.mrb[15].mxu1 }
 0x1b2   : > { %v1492_v8 = vadd.f32 %v1432_v0, %v658_v62  ;;  %v1436_v9 = vadd.f32 %v1435_v7, %v1322_v5  ;;  %v1437_v12 = vpop.f32.mrb[15].mxu0  ;;  %v671_v62 = vld [vmem:[#allocation2 + $0xc8] sm:$0xff]  ;;  %v673_v7 = vld [vmem:[#allocation2 + $0xd8] sm:$0xff] }
 0x1b3   : > { %v1493_v13 = vadd.f32 %v1434_v4, %v659_v2  ;;  %v1438_v14 = vadd.f32 %v1437_v12, %v1324_v10  ;;  %v672_v2 = vld [vmem:[#allocation2 + $0xd0] sm:$0xff] }
 0x1b4   : > { %1524 = vst [vmem:[#allocation2 + $0x60] sm:$0xff] %v1492_v8  ;;  %v1494_v15 = vadd.f32 %v1436_v9, %v660_v6 }
 0x1b5   : > { %1525 = vst [vmem:[#allocation2 + $0x68] sm:$0xff] %v1493_v13  ;;  %v1495_v16 = vadd.f32 %v1438_v14, %v661_v11  ;;  %v674_v14 = vld [vmem:[#allocation2 + $0xe0] sm:$0xff] }
 0x1b6   : > { %1526 = vst [vmem:[#allocation2 + $0x70] sm:$0xff] %v1494_v15  ;;  %v1328_v17 = vpop.f32.mrb[16].mxu1 }
 0x1b7   : > { %1527 = vst [vmem:[#allocation2 + $0x78] sm:$0xff] %v1495_v16  ;;  %v1441_v19 = vpop.f32.mrb[16].mxu0  ;;  %v1330_v21 = vpop.f32.mrb[17].mxu1 }
 0x1b8   : > { %v1442_v20 = vadd.f32 %v1441_v19, %v1328_v17  ;;  %v1443_v23 = vpop.f32.mrb[17].mxu0  ;;  %v1332_v25 = vpop.f32.mrb[18].mxu1 }
 0x1b9   : > { %v1444_v24 = vadd.f32 %v1443_v23, %v1330_v21  ;;  %v1445_v27 = vpop.f32.mrb[18].mxu0  ;;  %v1334_v30 = vpop.f32.mrb[19].mxu1 }
 0x1ba   : > { %v1496_v28 = vadd.f32 %v1442_v20, %v662_v18  ;;  %v1446_v29 = vadd.f32 %v1445_v27, %v1332_v25  ;;  %v1447_v32 = vpop.f32.mrb[19].mxu0  ;;  %v675_v18 = vld [vmem:[#allocation2 + $0xe8] sm:$0xff]  ;;  %v677_v27 = vld [vmem:[#allocation2 + $0xf8] sm:$0xff] }
 0x1bb   : > { %v1497_v33 = vadd.f32 %v1444_v24, %v663_v22  ;;  %v1448_v34 = vadd.f32 %v1447_v32, %v1334_v30  ;;  %v676_v22 = vld [vmem:[#allocation2 + $0xf0] sm:$0xff] }
 0x1bc   : > { %1528 = vst [vmem:[#allocation2 + $0x80] sm:$0xff] %v1496_v28  ;;  %v1498_v35 = vadd.f32 %v1446_v29, %v664_v26 }
 0x1bd   : > { %1529 = vst [vmem:[#allocation2 + $0x88] sm:$0xff] %v1497_v33  ;;  %v1499_v36 = vadd.f32 %v1448_v34, %v665_v31  ;;  %v1582_v33 = vlaneseq (!%p2094_p5) }
 0x1be   : > { %1530 = vst [vmem:[#allocation2 + $0x90] sm:$0xff] %v1498_v35  ;;  %v1338_v37 = vpop.f32.mrb[20].mxu1  ;;  %v1580_v35 = vld [vmem:[%s606_s29] sm:$0x3] (!%p2094_p5) }
 0x1bf   : > { %1531 = vst [vmem:[#allocation2 + $0x98] sm:$0xff] %v1499_v36  ;;  %v1451_v39 = vpop.f32.mrb[20].mxu0  ;;  %v1340_v41 = vpop.f32.mrb[21].mxu1  ;;  %v1583_v34 = vshrl.u32 (!%p2094_p5), %v1582_v33, 7  ;;  %v1548_v36 = vld [vmem:[#allocation2] sm:$0xff] (!%p2094_p5) }
 0x1c0   : > { %v1452_v40 = vadd.f32 %v1451_v39, %v1338_v37  ;;  %v1453_v43 = vpop.f32.mrb[21].mxu0  ;;  %v1342_v45 = vpop.f32.mrb[22].mxu1  ;;  %v1549_v37 = vld [vmem:[#allocation2 + $0x8] sm:$0xff] (!%p2094_p5) }
 0x1c1   : > { %v1454_v44 = vadd.f32 %v1453_v43, %v1340_v41  ;;  %v1455_v47 = vpop.f32.mrb[22].mxu0  ;;  %v1344_v50 = vpop.f32.mrb[23].mxu1  ;;  %v1588_v39 = vsub.s32 (!%p2094_p5), 1, %v1583_v34  ;;  %v1551_v41 = vld [vmem:[#allocation2 + $0x18] sm:$0xff] (!%p2094_p5) }
 0x1c2   : > { %v1500_v48 = vadd.f32 %v1452_v40, %v666_v38  ;;  %v1456_v49 = vadd.f32 %v1455_v47, %v1342_v45  ;;  %v1457_v52 = vpop.f32.mrb[23].mxu0  ;;  %v1584_v38 = vsub.s32 (!%p2094_p5), 0, %v1583_v34  ;;  %v1550_v40 = vld [vmem:[#allocation2 + $0x10] sm:$0xff] (!%p2094_p5)  ;;  %v1553_v45 = vld [vmem:[#allocation2 + $0x28] sm:$0xff] (!%p2094_p5)  ;;  %v1555_v47 = vld [vmem:[#allocation2 + $0x38] sm:$0xff] (!%p2094_p5) }
 0x1c3   : > { %v1501_v53 = vadd.f32 %v1454_v44, %v667_v42  ;;  %v1458_v54 = vadd.f32 %v1457_v52, %v1344_v50  ;;  %v1552_v42 = vld [vmem:[#allocation2 + $0x20] sm:$0xff] (!%p2094_p5)  ;;  %v2946_v44 = vrot.slane (!%p2094_p5), %v1580_v35, %v1588_v39 }
 0x1c4   : > { %1532 = vst [vmem:[#allocation2 + $0xa0] sm:$0xff] %v1500_v48  ;;  %v1502_v55 = vadd.f32 %v1456_v49, %v668_v46  ;;  %v2944_v43 = vrot.slane (!%p2094_p5), %v1580_v35, %v1584_v38  ;;  %v1554_v46 = vld [vmem:[#allocation2 + $0x30] sm:$0xff] (!%p2094_p5) }
 0x1c5   : > { %1533 = vst [vmem:[#allocation2 + $0xa8] sm:$0xff] %v1501_v53  ;;  %v1503_v56 = vadd.f32 %v1458_v54, %v669_v51  ;;  %v1593_v49 = vadd.f32 (!%p2094_p5), %v2946_v44, %v1549_v37  ;;  %v1595_v51 = vadd.f32 (!%p2094_p5), %v2946_v44, %v1551_v41  ;;  %v1597_v53 = vadd.f32 (!%p2094_p5), %v2946_v44, %v1553_v45 }
 0x1c6   : > { %1534 = vst [vmem:[#allocation2 + $0xb0] sm:$0xff] %v1502_v55  ;;  %v1348_v57 = vpop.f32.mrb[24].mxu1  ;;  %v1592_v48 = vadd.f32 (!%p2094_p5), %v2944_v43, %v1548_v36  ;;  %v1594_v50 = vadd.f32 (!%p2094_p5), %v2944_v43, %v1550_v40  ;;  %v1596_v52 = vadd.f32 (!%p2094_p5), %v2944_v43, %v1552_v42  ;;  %v1598_v54 = vadd.f32 (!%p2094_p5), %v2944_v43, %v1554_v46 }
 0x1c7   : > { %1535 = vst [vmem:[#allocation2 + $0xb8] sm:$0xff] %v1503_v56  ;;  %v1461_v59 = vpop.f32.mrb[24].mxu0  ;;  %v1350_v61 = vpop.f32.mrb[25].mxu1  ;;  %v1599_v55 = vadd.f32 (!%p2094_p5), %v2946_v44, %v1555_v47  ;;  %v1556_v56 = vld [vmem:[#allocation2 + $0x40] sm:$0xff] (!%p2094_p5) }
 0x1c8   : > { %v1462_v60 = vadd.f32 %v1461_v59, %v1348_v57  ;;  %v1463_v63 = vpop.f32.mrb[25].mxu0  ;;  %v1352_v1 = vpop.f32.mrb[26].mxu1  ;;  %v1557_v57 = vld [vmem:[#allocation2 + $0x48] sm:$0xff] (!%p2094_p5)  ;;  %v1625_v59 = vmax.f32 (!%p2094_p5), %v1593_v49, 0.0 }
 0x1c9   : > { %v1464_v0 = vadd.f32 %v1463_v63, %v1350_v61  ;;  %v1465_v3 = vpop.f32.mrb[26].mxu0  ;;  %v1354_v6 = vpop.f32.mrb[27].mxu1  ;;  %v1627_v61 = vmax.f32 (!%p2094_p5), %v1595_v51, 0.0  ;;  %v1559_v63 = vld [vmem:[#allocation2 + $0x58] sm:$0xff] (!%p2094_p5) }
 0x1ca   : > { %v1504_v4 = vadd.f32 %v1462_v60, %v670_v58  ;;  %v1466_v5 = vadd.f32 %v1465_v3, %v1352_v1  ;;  %v1467_v8 = vpop.f32.mrb[27].mxu0  ;;  %v1624_v58 = vmax.f32 (!%p2094_p5), %v1592_v48, 0.0  ;;  %v1626_v60 = vmax.f32 (!%p2094_p5), %v1594_v50, 0.0 }
 0x1cb   : > { %v1505_v9 = vadd.f32 %v1464_v0, %v671_v62  ;;  %v1468_v10 = vadd.f32 %v1467_v8, %v1354_v6  ;;  %v1558_v62 = vld [vmem:[#allocation2 + $0x50] sm:$0xff] (!%p2094_p5)  ;;  %v1628_v0 = vmax.f32 (!%p2094_p5), %v1596_v52, 0.0  ;;  %v1629_v1 = vmax.f32 (!%p2094_p5), %v1597_v53, 0.0 }
 0x1cc   : > { %1536 = vst [vmem:[#allocation2 + $0xc0] sm:$0xff] %v1504_v4  ;;  %v1506_v11 = vadd.f32 %v1466_v5, %v672_v2  ;;  %v1630_v2 = vmax.f32 (!%p2094_p5), %v1598_v54, 0.0  ;;  %v1631_v3 = vmax.f32 (!%p2094_p5), %v1599_v55, 0.0  ;;  %v1560_v4 = vld [vmem:[#allocation2 + $0x60] sm:$0xff] (!%p2094_p5)  ;;  %v1561_v5 = vld [vmem:[#allocation2 + $0x68] sm:$0xff] (!%p2094_p5)  ;;  %v2118_v6 = vpack.c.bf16 (!%p2094_p5), %v1625_v59, %v1624_v58 }
 0x1cd   : > { %1537 = vst [vmem:[#allocation2 + $0xc8] sm:$0xff] %v1505_v9  ;;  %v1507_v12 = vadd.f32 %v1468_v10, %v673_v7  ;;  %v2119_v7 = vpack.c.bf16 (!%p2094_p5), %v1627_v61, %v1626_v60  ;;  %v1600_v8 = vadd.f32 (!%p2094_p5), %v2944_v43, %v1556_v56  ;;  %v1601_v9 = vadd.f32 (!%p2094_p5), %v2946_v44, %v1557_v57  ;;  %v1562_v10 = vld [vmem:[#allocation2 + $0x70] sm:$0xff] (!%p2094_p5)  ;;  %v1569_v33 = vld [vmem:[#allocation2 + $0xa8] sm:$0xff] (!%p2094_p5) }
 0x1ce   : > { %1538 = vst [vmem:[#allocation2 + $0xd0] sm:$0xff] %v1506_v11  ;;  %v1358_v13 = vpop.f32.mrb[28].mxu1  ;;  %v1563_v11 = vld [vmem:[#allocation2 + $0x78] sm:$0xff] (!%p2094_p5)  ;;  %1752 = vst [vmem:[%s2839_s1] sm:$0xff] (!%p2094_p5), %v2118_v6  ;;  %v1570_v38 = vld [vmem:[#allocation2 + $0xb0] sm:$0xff] (!%p2094_p5)  ;;  %v1613_v50 = vadd.f32 (!%p2094_p5), %v2946_v44, %v1569_v33 }
 0x1cf   : > { %1539 = vst [vmem:[#allocation2 + $0xd8] sm:$0xff] %v1507_v12  ;;  %v1471_v15 = vpop.f32.mrb[28].mxu0  ;;  %v1360_v17 = vpop.f32.mrb[29].mxu1  ;;  %v2120_v12 = vpack.c.bf16 (!%p2094_p5), %v1629_v1, %v1628_v0  ;;  %1753 = vst [vmem:[%s2839_s1 + $0x8] sm:$0xff] (!%p2094_p5), %v2119_v7  ;;  %v1571_v39 = vld [vmem:[#allocation2 + $0xb8] sm:$0xff] (!%p2094_p5)  ;;  %v1614_v54 = vadd.f32 (!%p2094_p5), %v2944_v43, %v1570_v38 }
 0x1d0   : > { %v1472_v16 = vadd.f32 %v1471_v15, %v1358_v13  ;;  %v1473_v19 = vpop.f32.mrb[29].mxu0  ;;  %v1362_v21 = vpop.f32.mrb[30].mxu1  ;;  %v2121_v13 = vpack.c.bf16 (!%p2094_p5), %v1631_v3, %v1630_v2  ;;  %v1603_v15 = vadd.f32 (!%p2094_p5), %v2946_v44, %v1559_v63  ;;  %v1615_v55 = vadd.f32 (!%p2094_p5), %v2946_v44, %v1571_v39 }
 0x1d1   : > { %v1474_v20 = vadd.f32 %v1473_v19, %v1360_v17  ;;  %v1475_v23 = vpop.f32.mrb[30].mxu0  ;;  %v1364_v26 = vpop.f32.mrb[31].mxu1  ;;  %1547 = sbr.rel (%p2094_p5) target bundleno = 486 (0x1e6), region = 101  ;;  %v1632_v17 = vmax.f32 (!%p2094_p5), %v1600_v8, 0.0  ;;  %v1604_v19 = vadd.f32 (!%p2094_p5), %v2944_v43, %v1560_v4  ;;  %1754 = vst [vmem:[%s2839_s1 + $0x10] sm:$0xff] (!%p2094_p5), %v2120_v12  ;;  %v1645_v60 = vmax.f32 (!%p2094_p5), %v1613_v50, 0.0 }
 0x1d2   : > { %v1508_v24 = vadd.f32 %v1472_v16, %v674_v14  ;;  %v1476_v25 = vadd.f32 %v1475_v23, %v1362_v21  ;;  %v1477_v28 = vpop.f32.mrb[31].mxu0  ;;  %v1602_v14 = vadd.f32 (!%p2094_p5), %v2944_v43, %v1558_v62  ;;  %v1564_v16 = vld [vmem:[#allocation2 + $0x80] sm:$0xff] (!%p2094_p5)  ;;  %v1565_v21 = vld [vmem:[#allocation2 + $0x88] sm:$0xff] (!%p2094_p5)  ;;  %1755 = vst [vmem:[%s2839_s1 + $0x18] sm:$0xff] (!%p2094_p5), %v2121_v13  ;;  %v1635_v23 = vmax.f32 (!%p2094_p5), %v1603_v15, 0.0 }
 0x1d3   : > { %v1509_v29 = vadd.f32 %v1474_v20, %v675_v18  ;;  %v1478_v30 = vadd.f32 %v1477_v28, %v1364_v26  ;;  %v1633_v18 = vmax.f32 (!%p2094_p5), %v1601_v9, 0.0  ;;  %v1605_v20 = vadd.f32 (!%p2094_p5), %v2946_v44, %v1561_v5  ;;  %v1566_v26 = vld [vmem:[#allocation2 + $0x90] sm:$0xff] (!%p2094_p5)  ;;  %v1572_v46 = vld [vmem:[#allocation2 + $0xc0] sm:$0xff] (!%p2094_p5) }
 0x1d4   : > { %1540 = vst [vmem:[#allocation2 + $0xe0] sm:$0xff] %v1508_v24  ;;  %v1510_v31 = vadd.f32 %v1476_v25, %v676_v22  ;;  %v1634_v22 = vmax.f32 (!%p2094_p5), %v1602_v14, 0.0  ;;  %v1606_v24 = vadd.f32 (!%p2094_p5), %v2944_v43, %v1562_v10  ;;  %v1607_v25 = vadd.f32 (!%p2094_p5), %v2946_v44, %v1563_v11  ;;  %v1573_v51 = vld [vmem:[#allocation2 + $0xc8] sm:$0xff] (!%p2094_p5) }
 0x1d5   : > { %1541 = vst [vmem:[#allocation2 + $0xe8] sm:$0xff] %v1509_v29  ;;  %v1511_v32 = vadd.f32 %v1478_v30, %v677_v27  ;;  %v1567_v27 = vld [vmem:[#allocation2 + $0x98] sm:$0xff] (!%p2094_p5)  ;;  %v2122_v28 = vpack.c.bf16 (!%p2094_p5), %v1633_v18, %v1632_v17  ;;  %v1636_v29 = vmax.f32 (!%p2094_p5), %v1604_v19, 0.0  ;;  %v1637_v30 = vmax.f32 (!%p2094_p5), %v1605_v20, 0.0  ;;  %v1574_v56 = vld [vmem:[#allocation2 + $0xd0] sm:$0xff] (!%p2094_p5) }
 0x1d6   : > { %1542 = vst [vmem:[#allocation2 + $0xf0] sm:$0xff] %v1510_v31  ;;  %v1608_v31 = vadd.f32 (!%p2094_p5), %v2944_v43, %v1564_v16  ;;  %v2123_v34 = vpack.c.bf16 (!%p2094_p5), %v1635_v23, %v1634_v22  ;;  %v1638_v35 = vmax.f32 (!%p2094_p5), %v1606_v24, 0.0  ;;  %v1639_v36 = vmax.f32 (!%p2094_p5), %v1607_v25, 0.0  ;;  %v1575_v57 = vld [vmem:[#allocation2 + $0xd8] sm:$0xff] (!%p2094_p5) }
 0x1d7   : > { %1543 = vst [vmem:[#allocation2 + $0xf8] sm:$0xff] %v1511_v32  ;;  %v1568_v32 = vld [vmem:[#allocation2 + $0xa0] sm:$0xff] (!%p2094_p5)  ;;  %v1609_v37 = vadd.f32 (!%p2094_p5), %v2946_v44, %v1565_v21  ;;  %1756 = vst [vmem:[%s2839_s1 + $0x20] sm:$0xff] (!%p2094_p5), %v2122_v28  ;;  %v2124_v40 = vpack.c.bf16 (!%p2094_p5), %v1637_v30, %v1636_v29  ;;  %v1610_v42 = vadd.f32 (!%p2094_p5), %v2944_v43, %v1566_v26  ;;  %v1646_v1 = vmax.f32 (!%p2094_p5), %v1614_v54, 0.0 }
 0x1d8   : > { %v1640_v41 = vmax.f32 %v1608_v31, 0.0  ;;  %v1611_v45 = vadd.f32 %v2946_v44, %v1567_v27  ;;  %1757 = vst [vmem:[%s2839_s1 + $0x28] sm:$0xff] %v2123_v34  ;;  %v2125_v47 = vpack.c.bf16 %v1639_v36, %v1638_v35  ;;  %v1612_v49 = vadd.f32 %v2944_v43, %v1568_v32 }
 0x1d9   : > { %v1641_v48 = vmax.f32 %v1609_v37, 0.0  ;;  %1758 = vst [vmem:[%s2839_s1 + $0x30] sm:$0xff] %v2124_v40  ;;  %v1642_v52 = vmax.f32 %v1610_v42, 0.0  ;;  %v1616_v61 = vadd.f32 %v2944_v43, %v1572_v46  ;;  %v1647_v2 = vmax.f32 %v1615_v55, 0.0 }
 0x1da   : > { %v1643_v53 = vmax.f32 %v1611_v45, 0.0  ;;  %1759 = vst [vmem:[%s2839_s1 + $0x38] sm:$0xff] %v2125_v47  ;;  %v1644_v59 = vmax.f32 %v1612_v49, 0.0  ;;  %v1617_v3 = vadd.f32 %v2946_v44, %v1573_v51  ;;  %v1618_v8 = vadd.f32 %v2944_v43, %v1574_v56 }
 0x1db   : > { %v2126_v58 = vpack.c.bf16 %v1641_v48, %v1640_v41  ;;  %v1576_v62 = vld [vmem:[#allocation2 + $0xe0] sm:$0xff]  ;;  %v1648_v7 = vmax.f32 %v1616_v61, 0.0  ;;  %v1619_v9 = vadd.f32 %v2946_v44, %v1575_v57  ;;  %v2129_v10 = vpack.c.bf16 %v1647_v2, %v1646_v1 }
 0x1dc   : > { %v1577_v63 = vld [vmem:[#allocation2 + $0xe8] sm:$0xff]  ;;  %v2127_v0 = vpack.c.bf16 %v1643_v53, %v1642_v52  ;;  %v2128_v6 = vpack.c.bf16 %v1645_v60, %v1644_v59  ;;  %v1649_v11 = vmax.f32 %v1617_v3, 0.0  ;;  %v1620_v12 = vadd.f32 %v2944_v43, %v1576_v62 }
 0x1dd   : > { %v1578_v4 = vld [vmem:[#allocation2 + $0xf0] sm:$0xff]  ;;  %1760 = vst [vmem:[%s2839_s1 + $0x40] sm:$0xff] %v2126_v58  ;;  %v1621_v13 = vadd.f32 %v2946_v44, %v1577_v63  ;;  %v1650_v14 = vmax.f32 %v1618_v8, 0.0  ;;  %v1651_v15 = vmax.f32 %v1619_v9, 0.0  ;;  %1763 = vst [vmem:[%s2839_s1 + $0x58] sm:$0xff] %v2129_v10 }
 0x1de   : > { %v1579_v5 = vld [vmem:[#allocation2 + $0xf8] sm:$0xff]  ;;  %1761 = vst [vmem:[%s2839_s1 + $0x48] sm:$0xff] %v2127_v0  ;;  %1762 = vst [vmem:[%s2839_s1 + $0x50] sm:$0xff] %v2128_v6  ;;  %v1622_v16 = vadd.f32 %v2944_v43, %v1578_v4  ;;  %v2130_v18 = vpack.c.bf16 %v1649_v11, %v1648_v7  ;;  %v1652_v19 = vmax.f32 %v1620_v12, 0.0 }
 0x1df   : > { %v1623_v17 = vadd.f32 %v2946_v44, %v1579_v5  ;;  %v1653_v20 = vmax.f32 %v1621_v13, 0.0  ;;  %v2131_v21 = vpack.c.bf16 %v1651_v15, %v1650_v14 }
 0x1e0   : > { %v1654_v22 = vmax.f32 %v1622_v16, 0.0  ;;  %1764 = vst [vmem:[%s2839_s1 + $0x60] sm:$0xff] %v2130_v18 }
 0x1e1   : > { %v1655_v23 = vmax.f32 %v1623_v17, 0.0  ;;  %v2132_v24 = vpack.c.bf16 %v1653_v20, %v1652_v19  ;;  %1765 = vst [vmem:[%s2839_s1 + $0x68] sm:$0xff] %v2131_v21 }
 0x1e3   : > { %v2133_v25 = vpack.c.bf16 %v1655_v23, %v1654_v22  ;;  %1766 = vst [vmem:[%s2839_s1 + $0x70] sm:$0xff] %v2132_v24 }
 0x1e5   : > { %1767 = vst [vmem:[%s2839_s1 + $0x78] sm:$0xff] %v2133_v25 }
 0x1e6 PF: > { %1774 = sbr.rel (!%p2603_p12) target bundleno = 496 (0x1f0), region = 105  ;;  %s2134_s16 = sshll.u32 (%p2603_p12), %s2474_s19, 3  ;;  %v1838_v43 = vld [vmem:[%s2839_s1] sm:$0xff] (%p2603_p12)  ;;  %v1840_v44 = vld [vmem:[%s2839_s1 + $0x8] sm:$0xff] (%p2603_p12)  ;;  %v1842_v26 = vld [vmem:[%s2839_s1 + $0x10] sm:$0xff] (%p2603_p12) }
 0x1e7   : > { %s1780_s5 = scalar_lea.vmem (%p2603_p12), %s3054_s3, %s2134_s16  ;;  %v1844_v27 = vld [vmem:[%s2839_s1 + $0x18] sm:$0xff] (%p2603_p12)  ;;  %v1850_v30 = vld [vmem:[%s2839_s1 + $0x30] sm:$0xff] (%p2603_p12)  ;;  %v1854_v32 = vld [vmem:[%s2839_s1 + $0x40] sm:$0xff] (%p2603_p12) }
 0x1e8   : > { %1839 = vst [vmem:[%s1780_s5] sm:$0xff] (%p2603_p12), %v1838_v43  ;;  %1841 = vst [vmem:[%s1780_s5 + $0x10] sm:$0xff] (%p2603_p12), %v1840_v44  ;;  %v1852_v31 = vld [vmem:[%s2839_s1 + $0x38] sm:$0xff] (%p2603_p12)  ;;  %v1856_v33 = vld [vmem:[%s2839_s1 + $0x48] sm:$0xff] (%p2603_p12) }
 0x1e9   : > { %1843 = vst [vmem:[%s1780_s5 + $0x20] sm:$0xff] (%p2603_p12), %v1842_v26  ;;  %1845 = vst [vmem:[%s1780_s5 + $0x30] sm:$0xff] (%p2603_p12), %v1844_v27  ;;  %v1858_v34 = vld [vmem:[%s2839_s1 + $0x50] sm:$0xff] (%p2603_p12)  ;;  %v1860_v35 = vld [vmem:[%s2839_s1 + $0x58] sm:$0xff] (%p2603_p12) }
 0x1ea   : > { %1851 = vst [vmem:[%s1780_s5 + $0x60] sm:$0xff] (%p2603_p12), %v1850_v30  ;;  %1853 = vst [vmem:[%s1780_s5 + $0x70] sm:$0xff] (%p2603_p12), %v1852_v31  ;;  %v1862_v36 = vld [vmem:[%s2839_s1 + $0x60] sm:$0xff] (%p2603_p12)  ;;  %v1864_v37 = vld [vmem:[%s2839_s1 + $0x68] sm:$0xff] (%p2603_p12) }
 0x1eb   : > { %1855 = vst [vmem:[%s1780_s5 + $0x80] sm:$0xff] (%p2603_p12), %v1854_v32  ;;  %1857 = vst [vmem:[%s1780_s5 + $0x90] sm:$0xff] (%p2603_p12), %v1856_v33  ;;  %v1866_v38 = vld [vmem:[%s2839_s1 + $0x70] sm:$0xff] (%p2603_p12) }
 0x1ec   : > { %v1846_v28 = vld [vmem:[%s2839_s1 + $0x20] sm:$0xff] (%p2603_p12)  ;;  %1859 = vst [vmem:[%s1780_s5 + $0xa0] sm:$0xff] (%p2603_p12), %v1858_v34  ;;  %1861 = vst [vmem:[%s1780_s5 + $0xb0] sm:$0xff] (%p2603_p12), %v1860_v35  ;;  %v1868_v39 = vld [vmem:[%s2839_s1 + $0x78] sm:$0xff] (%p2603_p12) }
 0x1ed   : > { %v1848_v29 = vld [vmem:[%s2839_s1 + $0x28] sm:$0xff]  ;;  %1847 = vst [vmem:[%s1780_s5 + $0x40] sm:$0xff] %v1846_v28  ;;  %1863 = vst [vmem:[%s1780_s5 + $0xc0] sm:$0xff] %v1862_v36 }
 0x1ee   : > { %1849 = vst [vmem:[%s1780_s5 + $0x50] sm:$0xff] %v1848_v29  ;;  %1865 = vst [vmem:[%s1780_s5 + $0xd0] sm:$0xff] %v1864_v37 }
 0x1ef   : > { %1867 = vst [vmem:[%s1780_s5 + $0xe0] sm:$0xff] %v1866_v38  ;;  %1869 = vst [vmem:[%s1780_s5 + $0xf0] sm:$0xff] %v1868_v39 }
 0x1f0 PF: > { %s13_s22 = sadd.s32 1, %s2486_s22   ;;  %s3064_s10 = sld [smem:[#allocation6_spill]] }
 0x1f1   : > { %p10_p6 = scmp.ge.s32.totalorder %s13_s22, 6   ;;  %s3065_s12 = smov %s2450_s13 }
 0x1f2   : > { %s3066_s13 = smov %s2601_s9  ;;  %s3067_s14 = smov %s2458_s15 }
 0x1f3   : > { %s3068_s15 = smov %s2598_s8  ;;  %s3069_s16 = smov %s2466_s17 }
 0x1f4   : > { %s3070_s17 = smov %s2584_s30  ;;  %s3071_s18 = smov %s2478_s20 }
 0x1f5   : > { %s3072_s19 = smov %s2482_s21  ;;  %s3073_s20 = smov %s3076_s24 }
 0x1f6   : > { %s3074_s21 = smov %s3064_s10  ;;  %12 = sbr.rel (!%p10_p6) target bundleno = 9 (0x9), region = 185 }

// kernel: f_classification_forward.12
= control target key start
LH: loop header
LB: loop body
LE: loop exit
PB: predicated region body
PF: predicated region fallthrough
CT: control target
= control target key end

     0   :  { %s2179_s0 = inlined_call_operand.vmem [shape: bf16[32,4608], index: 0, kind: input, shape index: {}]   ;;  %s2180_s1 = inlined_call_operand.vmem [shape: bf16[4608,512], index: 1, kind: input, shape index: {}]   ;;  %s2181_s2 = inlined_call_operand.vmem [shape: f32[1,512], index: 2, kind: input, shape index: {}]   ;;  %s2182_s3 = inlined_call_operand.vmem [shape: bf16[32,512], index: 3, kind: output, shape index: {}]  }
   0x1   :  { %2184 = sst [smem:[#allocation7_spill]] %s2179_s0 }
   0x2   :  { %2185 = sst [smem:[#allocation8_spill]] %s2180_s1 }
   0x3   :  { %s1789_s12 = smov 0   ;;  %s1791_s13 = smov 0  }
   0x4   :  { %s1793_s14 = smov 0   ;;  %s1795_s15 = smov 0  }
   0x5   :  { %s1797_s16 = smov 0   ;;  %s1799_s17 = smov 0  }
   0x6   :  { %s1801_s18 = smov 0   ;;  %s1803_s19 = smov 0  }
   0x7   :  { %s1805_s20 = smov 0   ;;  %s1807_s21 = smov 0  }
   0x8   :  { %s1809_s22 = smov 0  }
   0x9 LB: > { %s1368_s23 = sadd.s32 4294967295, %s1766_s22   ;;  %s25_s24 = sadd.s32 1, %s1758_s20  ;;  %s1766_s22 = sphi %s1809_s22, %s13_s22   ;;  %s1762_s21 = sphi %s1807_s21, %s2202_s21   ;;  %s1758_s20 = sphi %s1805_s20, %s2201_s20   ;;  %s1754_s19 = sphi %s1803_s19, %s2200_s19   ;;  %s1750_s18 = sphi %s1801_s18, %s2199_s18   ;;  %s1746_s17 = sphi %s1799_s17, %s2198_s17   ;;  %s1742_s16 = sphi %s1797_s16, %s2197_s16   ;;  %s1738_s15 = sphi %s1795_s15, %s2196_s15   ;;  %s1734_s14 = sphi %s1793_s14, %s2195_s14   ;;  %s1730_s13 = sphi %s1791_s13, %s2194_s13   ;;  %s1726_s12 = sphi %s1789_s12, %s2193_s12  }
   0xa   : > { %p26_p0 = scmp.ge.s32.totalorder %s25_s24, 9  ;;  %s28_s25 = sadd.s32 1, %s1762_s21 }
   0xb   : > { %s41_s26 = sadd.s32 1, %s1746_s17  ;;  %p48_p1 = scmp.ne.s32.totalorder %s1746_s17, %s1742_s16 }
   0xc   : > { %s2204_s24 = smov (%p26_p0, %s25_s24), 0  ;;  %s2206_s25 = smov (!%p26_p0, %s28_s25), %s1762_s21 }
   0xd   : > { %s37_s27 = ssub.s32 %s1758_s20, %s2204_s24  ;;  %p49_p2 = scmp.eq.s32.totalorder %s1766_s22, 0 }
   0xe   : > { %p30_p3 = scmp.ge.s32.totalorder %s2206_s25, 2  ;;  %p39_p4 = scmp.eq.s32.totalorder %s37_s27, 0 }
   0xf   : > { %p1856_p5 = por %p49_p2, %p48_p1  ;;  %s69_s29 = sadd.s32 1, %s1738_s15 }
  0x10   : > { %s2208_s25 = smov (%p30_p3, %s2206_s25), 0  ;;  %p76_p6 = scmp.ne.s32.totalorder %s1738_s15, %s1734_s14 }
  0x11   : > { %2187 = sst [smem:[#allocation6_spill]] %s2208_s25  ;;  %s65_s4 = ssub.s32 %s1762_s21, %s2208_s25 }
  0x12   : > { %s1864_s30 = scalar_select %p39_p4, %s1746_s17, %s41_s26  }
  0x13   : > { %s66_s5 = sor.u32 %s65_s4, %s37_s27  ;;  %p121_p7 = scmp.eq.s32.totalorder %s65_s4, 0 }
  0x14   : > { %p67_p8 = scmp.eq.s32.totalorder %s66_s5, 0  ;;  %p1870_p9 = por %p76_p6, %p49_p2 }
  0x15   : > { %s123_s7 = sadd.s32 1, %s1730_s13  ;;  %p133_p10 = scmp.ne.s32.totalorder %s1730_s13, %s1726_s12 }
  0x16   : > { %s1878_s8 = scalar_select %p67_p8, %s1738_s15, %s69_s29  }
  0x17   : > { %s1881_s9 = scalar_select %p121_p7, %s1730_s13, %s123_s7  }
  0x18   : > { %p134_p11 = scmp.eq.s32.totalorder %s1368_s23, 17  ;;  %p1371_p13 = scmp.ge.s32.totalorder %s1766_s22, 18 }
  0x1a   : > { %p1883_p12 = por %p134_p11, %p133_p10  ;;  %156 = sbr.rel (%p1371_p13) target bundleno = 89 (0x59), region = 16 }
  0x21   : > { %159 = sbr.rel (!%p1856_p5) target bundleno = 47 (0x2f), region = 20  ;;  %s161_s11 = sand.u32 (%p1856_p5), 1, %s1746_s17  }
  0x22   : > { %s1468_s26 = sshll.u32 (%p1856_p5), %s1758_s20, 4  ;;  %s1372_s27 = sshll.u32 (%p1856_p5), %s161_s11, 6 }
  0x23   : > { %s2190_s0 = sld [smem:[#allocation7_spill]] (%p1856_p5)  ;;  %s163_s23 = scalar_lea.vmem (%p1856_p5), [#allocation3], %s1372_s27 }
  0x29   : > { %s169_s5 = scalar_lea.vmem %s2190_s0, %s1468_s26 }
  0x2a   : > { %v182_v0 = vld [vmem:[%s169_s5] sm:$0xff]  ;;  %v184_v1 = vld [vmem:[%s169_s5 + $0x8] sm:$0xff]  ;;  %v186_v2 = vld [vmem:[%s169_s5 + $0x90] sm:$0xff] }
  0x2b   : > { %183 = vst [vmem:[%s163_s23] sm:$0xff] %v182_v0  ;;  %185 = vst [vmem:[%s163_s23 + $0x8] sm:$0xff] %v184_v1  ;;  %v188_v3 = vld [vmem:[%s169_s5 + $0x98] sm:$0xff]  ;;  %v190_v4 = vld [vmem:[%s169_s5 + $0x120] sm:$0xff] }
  0x2c   : > { %187 = vst [vmem:[%s163_s23 + $0x10] sm:$0xff] %v186_v2  ;;  %v192_v5 = vld [vmem:[%s169_s5 + $0x128] sm:$0xff]  ;;  %189 = vst [vmem:[%s163_s23 + $0x18] sm:$0xff] %v188_v3  ;;  %v194_v6 = vld [vmem:[%s169_s5 + $0x1b0] sm:$0xff] }
  0x2d   : > { %191 = vst [vmem:[%s163_s23 + $0x20] sm:$0xff] %v190_v4  ;;  %193 = vst [vmem:[%s163_s23 + $0x28] sm:$0xff] %v192_v5  ;;  %v196_v7 = vld [vmem:[%s169_s5 + $0x1b8] sm:$0xff] }
  0x2e   : > { %195 = vst [vmem:[%s163_s23 + $0x30] sm:$0xff] %v194_v6  ;;  %197 = vst [vmem:[%s163_s23 + $0x38] sm:$0xff] %v196_v7 }
  0x2f PF: > { %203 = sbr.rel (!%p1870_p9) target bundleno = 89 (0x59), region = 43  ;;  %s205_s28 = sand.u32 (%p1870_p9), 1, %s1738_s15  }
  0x30   : > { %s1377_s7 = sshll.u32 (%p1870_p9), %s1762_s21, 1  ;;  %s1375_s11 = sshll.u32 (%p1870_p9), %s205_s28, 9 }
  0x31   : > { %s1469_s26 = sshll.u32 (%p1870_p9), %s1758_s20, 8  ;;  %s2191_s1 = sld [smem:[#allocation8_spill]] (%p1870_p9) }
  0x32   : > { %s211_s27 = sadd.s32 (%p1870_p9), %s1469_s26, %s1377_s7  ;;  %s1908_s6 = scalar_lea.vmem (%p1870_p9), [#allocation4], %s1375_s11 }
  0x33   : > { %s1379_s29 = sshll.u32 (%p1870_p9), %s211_s27, 2 }
  0x37   : > { %s1903_s25 = scalar_lea.vmem %s2191_s1, %s1379_s29 }
  0x38   : > { %v367_v8 = vld [vmem:[%s1903_s25] sm:$0xff]  ;;  %v369_v9 = vld [vmem:[%s1903_s25 + $0x10] sm:$0xff] }
  0x39   : > { %v371_v10 = vld [vmem:[%s1903_s25 + $0x20] sm:$0xff]  ;;  %368 = vst [vmem:[%s1908_s6] sm:$0xff] %v367_v8  ;;  %370 = vst [vmem:[%s1908_s6 + $0x8] sm:$0xff] %v369_v9  ;;  %v373_v11 = vld [vmem:[%s1903_s25 + $0x30] sm:$0xff] }
  0x3a   : > { %372 = vst [vmem:[%s1908_s6 + $0x10] sm:$0xff] %v371_v10  ;;  %v375_v12 = vld [vmem:[%s1903_s25 + $0x40] sm:$0xff]  ;;  %v377_v13 = vld [vmem:[%s1903_s25 + $0x50] sm:$0xff]  ;;  %374 = vst [vmem:[%s1908_s6 + $0x18] sm:$0xff] %v373_v11 }
  0x3b   : > { %376 = vst [vmem:[%s1908_s6 + $0x20] sm:$0xff] %v375_v12  ;;  %378 = vst [vmem:[%s1908_s6 + $0x28] sm:$0xff] %v377_v13  ;;  %v379_v14 = vld [vmem:[%s1903_s25 + $0x60] sm:$0xff]  ;;  %v381_v15 = vld [vmem:[%s1903_s25 + $0x70] sm:$0xff] }
  0x3c   : > { %v383_v16 = vld [vmem:[%s1903_s25 + $0x80] sm:$0xff]  ;;  %380 = vst [vmem:[%s1908_s6 + $0x30] sm:$0xff] %v379_v14  ;;  %382 = vst [vmem:[%s1908_s6 + $0x38] sm:$0xff] %v381_v15  ;;  %v385_v17 = vld [vmem:[%s1903_s25 + $0x90] sm:$0xff] }
  0x3d   : > { %384 = vst [vmem:[%s1908_s6 + $0x40] sm:$0xff] %v383_v16  ;;  %v387_v18 = vld [vmem:[%s1903_s25 + $0xa0] sm:$0xff]  ;;  %v389_v19 = vld [vmem:[%s1903_s25 + $0xb0] sm:$0xff]  ;;  %386 = vst [vmem:[%s1908_s6 + $0x48] sm:$0xff] %v385_v17 }
  0x3e   : > { %388 = vst [vmem:[%s1908_s6 + $0x50] sm:$0xff] %v387_v18  ;;  %390 = vst [vmem:[%s1908_s6 + $0x58] sm:$0xff] %v389_v19  ;;  %v391_v20 = vld [vmem:[%s1903_s25 + $0xc0] sm:$0xff]  ;;  %v393_v21 = vld [vmem:[%s1903_s25 + $0xd0] sm:$0xff] }
  0x3f   : > { %v395_v22 = vld [vmem:[%s1903_s25 + $0xe0] sm:$0xff]  ;;  %392 = vst [vmem:[%s1908_s6 + $0x60] sm:$0xff] %v391_v20  ;;  %394 = vst [vmem:[%s1908_s6 + $0x68] sm:$0xff] %v393_v21  ;;  %v397_v23 = vld [vmem:[%s1903_s25 + $0xf0] sm:$0xff] }
  0x40   : > { %396 = vst [vmem:[%s1908_s6 + $0x70] sm:$0xff] %v395_v22  ;;  %v399_v24 = vld [vmem:[%s1903_s25 + $0x100] sm:$0xff]  ;;  %v401_v25 = vld [vmem:[%s1903_s25 + $0x110] sm:$0xff]  ;;  %398 = vst [vmem:[%s1908_s6 + $0x78] sm:$0xff] %v397_v23 }
  0x41   : > { %400 = vst [vmem:[%s1908_s6 + $0x80] sm:$0xff] %v399_v24  ;;  %402 = vst [vmem:[%s1908_s6 + $0x88] sm:$0xff] %v401_v25  ;;  %v403_v26 = vld [vmem:[%s1903_s25 + $0x120] sm:$0xff]  ;;  %v405_v27 = vld [vmem:[%s1903_s25 + $0x130] sm:$0xff] }
  0x42   : > { %v407_v28 = vld [vmem:[%s1903_s25 + $0x140] sm:$0xff]  ;;  %404 = vst [vmem:[%s1908_s6 + $0x90] sm:$0xff] %v403_v26  ;;  %406 = vst [vmem:[%s1908_s6 + $0x98] sm:$0xff] %v405_v27  ;;  %v409_v29 = vld [vmem:[%s1903_s25 + $0x150] sm:$0xff] }
  0x43   : > { %408 = vst [vmem:[%s1908_s6 + $0xa0] sm:$0xff] %v407_v28  ;;  %v411_v30 = vld [vmem:[%s1903_s25 + $0x160] sm:$0xff]  ;;  %v413_v31 = vld [vmem:[%s1903_s25 + $0x170] sm:$0xff]  ;;  %410 = vst [vmem:[%s1908_s6 + $0xa8] sm:$0xff] %v409_v29 }
  0x44   : > { %412 = vst [vmem:[%s1908_s6 + $0xb0] sm:$0xff] %v411_v30  ;;  %414 = vst [vmem:[%s1908_s6 + $0xb8] sm:$0xff] %v413_v31  ;;  %v415_v32 = vld [vmem:[%s1903_s25 + $0x180] sm:$0xff]  ;;  %v417_v33 = vld [vmem:[%s1903_s25 + $0x190] sm:$0xff] }
  0x45   : > { %v419_v34 = vld [vmem:[%s1903_s25 + $0x1a0] sm:$0xff]  ;;  %416 = vst [vmem:[%s1908_s6 + $0xc0] sm:$0xff] %v415_v32  ;;  %418 = vst [vmem:[%s1908_s6 + $0xc8] sm:$0xff] %v417_v33  ;;  %v421_v35 = vld [vmem:[%s1903_s25 + $0x1b0] sm:$0xff] }
  0x46   : > { %420 = vst [vmem:[%s1908_s6 + $0xd0] sm:$0xff] %v419_v34  ;;  %v423_v36 = vld [vmem:[%s1903_s25 + $0x1c0] sm:$0xff]  ;;  %v425_v37 = vld [vmem:[%s1903_s25 + $0x1d0] sm:$0xff]  ;;  %422 = vst [vmem:[%s1908_s6 + $0xd8] sm:$0xff] %v421_v35 }
  0x47   : > { %424 = vst [vmem:[%s1908_s6 + $0xe0] sm:$0xff] %v423_v36  ;;  %426 = vst [vmem:[%s1908_s6 + $0xe8] sm:$0xff] %v425_v37  ;;  %v427_v38 = vld [vmem:[%s1903_s25 + $0x1e0] sm:$0xff]  ;;  %v429_v39 = vld [vmem:[%s1903_s25 + $0x1f0] sm:$0xff] }
  0x48   : > { %v431_v40 = vld [vmem:[%s1903_s25 + $0x200] sm:$0xff]  ;;  %428 = vst [vmem:[%s1908_s6 + $0xf0] sm:$0xff] %v427_v38  ;;  %430 = vst [vmem:[%s1908_s6 + $0xf8] sm:$0xff] %v429_v39  ;;  %v433_v41 = vld [vmem:[%s1903_s25 + $0x210] sm:$0xff] }
  0x49   : > { %432 = vst [vmem:[%s1908_s6 + $0x100] sm:$0xff] %v431_v40  ;;  %v435_v42 = vld [vmem:[%s1903_s25 + $0x220] sm:$0xff]  ;;  %v437_v43 = vld [vmem:[%s1903_s25 + $0x230] sm:$0xff]  ;;  %434 = vst [vmem:[%s1908_s6 + $0x108] sm:$0xff] %v433_v41 }
  0x4a   : > { %436 = vst [vmem:[%s1908_s6 + $0x110] sm:$0xff] %v435_v42  ;;  %438 = vst [vmem:[%s1908_s6 + $0x118] sm:$0xff] %v437_v43  ;;  %v439_v44 = vld [vmem:[%s1903_s25 + $0x240] sm:$0xff]  ;;  %v441_v45 = vld [vmem:[%s1903_s25 + $0x250] sm:$0xff] }
  0x4b   : > { %v443_v46 = vld [vmem:[%s1903_s25 + $0x260] sm:$0xff]  ;;  %440 = vst [vmem:[%s1908_s6 + $0x120] sm:$0xff] %v439_v44  ;;  %442 = vst [vmem:[%s1908_s6 + $0x128] sm:$0xff] %v441_v45  ;;  %v445_v47 = vld [vmem:[%s1903_s25 + $0x270] sm:$0xff] }
  0x4c   : > { %444 = vst [vmem:[%s1908_s6 + $0x130] sm:$0xff] %v443_v46  ;;  %v447_v48 = vld [vmem:[%s1903_s25 + $0x280] sm:$0xff]  ;;  %v449_v49 = vld [vmem:[%s1903_s25 + $0x290] sm:$0xff]  ;;  %446 = vst [vmem:[%s1908_s6 + $0x138] sm:$0xff] %v445_v47 }
  0x4d   : > { %448 = vst [vmem:[%s1908_s6 + $0x140] sm:$0xff] %v447_v48  ;;  %450 = vst [vmem:[%s1908_s6 + $0x148] sm:$0xff] %v449_v49  ;;  %v451_v50 = vld [vmem:[%s1903_s25 + $0x2a0] sm:$0xff]  ;;  %v453_v51 = vld [vmem:[%s1903_s25 + $0x2b0] sm:$0xff] }
  0x4e   : > { %v455_v52 = vld [vmem:[%s1903_s25 + $0x2c0] sm:$0xff]  ;;  %452 = vst [vmem:[%s1908_s6 + $0x150] sm:$0xff] %v451_v50  ;;  %454 = vst [vmem:[%s1908_s6 + $0x158] sm:$0xff] %v453_v51  ;;  %v457_v53 = vld [vmem:[%s1903_s25 + $0x2d0] sm:$0xff] }
  0x4f   : > { %456 = vst [vmem:[%s1908_s6 + $0x160] sm:$0xff] %v455_v52  ;;  %v459_v54 = vld [vmem:[%s1903_s25 + $0x2e0] sm:$0xff]  ;;  %v461_v55 = vld [vmem:[%s1903_s25 + $0x2f0] sm:$0xff]  ;;  %458 = vst [vmem:[%s1908_s6 + $0x168] sm:$0xff] %v457_v53 }
  0x50   : > { %460 = vst [vmem:[%s1908_s6 + $0x170] sm:$0xff] %v459_v54  ;;  %462 = vst [vmem:[%s1908_s6 + $0x178] sm:$0xff] %v461_v55  ;;  %v463_v56 = vld [vmem:[%s1903_s25 + $0x300] sm:$0xff]  ;;  %v465_v57 = vld [vmem:[%s1903_s25 + $0x310] sm:$0xff] }
  0x51   : > { %v467_v58 = vld [vmem:[%s1903_s25 + $0x320] sm:$0xff]  ;;  %464 = vst [vmem:[%s1908_s6 + $0x180] sm:$0xff] %v463_v56  ;;  %466 = vst [vmem:[%s1908_s6 + $0x188] sm:$0xff] %v465_v57  ;;  %v469_v59 = vld [vmem:[%s1903_s25 + $0x330] sm:$0xff] }
  0x52   : > { %468 = vst [vmem:[%s1908_s6 + $0x190] sm:$0xff] %v467_v58  ;;  %v471_v60 = vld [vmem:[%s1903_s25 + $0x340] sm:$0xff]  ;;  %v473_v61 = vld [vmem:[%s1903_s25 + $0x350] sm:$0xff]  ;;  %470 = vst [vmem:[%s1908_s6 + $0x198] sm:$0xff] %v469_v59 }
  0x53   : > { %472 = vst [vmem:[%s1908_s6 + $0x1a0] sm:$0xff] %v471_v60  ;;  %474 = vst [vmem:[%s1908_s6 + $0x1a8] sm:$0xff] %v473_v61  ;;  %v475_v62 = vld [vmem:[%s1903_s25 + $0x360] sm:$0xff]  ;;  %v477_v63 = vld [vmem:[%s1903_s25 + $0x370] sm:$0xff] }
  0x54   : > { %v479_v0 = vld [vmem:[%s1903_s25 + $0x380] sm:$0xff]  ;;  %476 = vst [vmem:[%s1908_s6 + $0x1b0] sm:$0xff] %v475_v62  ;;  %478 = vst [vmem:[%s1908_s6 + $0x1b8] sm:$0xff] %v477_v63  ;;  %v481_v1 = vld [vmem:[%s1903_s25 + $0x390] sm:$0xff] }
  0x55   : > { %480 = vst [vmem:[%s1908_s6 + $0x1c0] sm:$0xff] %v479_v0  ;;  %v483_v2 = vld [vmem:[%s1903_s25 + $0x3a0] sm:$0xff]  ;;  %v485_v3 = vld [vmem:[%s1903_s25 + $0x3b0] sm:$0xff]  ;;  %482 = vst [vmem:[%s1908_s6 + $0x1c8] sm:$0xff] %v481_v1 }
  0x56   : > { %484 = vst [vmem:[%s1908_s6 + $0x1d0] sm:$0xff] %v483_v2  ;;  %486 = vst [vmem:[%s1908_s6 + $0x1d8] sm:$0xff] %v485_v3  ;;  %v487_v4 = vld [vmem:[%s1903_s25 + $0x3c0] sm:$0xff]  ;;  %v489_v5 = vld [vmem:[%s1903_s25 + $0x3d0] sm:$0xff] }
  0x57   : > { %v491_v6 = vld [vmem:[%s1903_s25 + $0x3e0] sm:$0xff]  ;;  %488 = vst [vmem:[%s1908_s6 + $0x1e0] sm:$0xff] %v487_v4  ;;  %490 = vst [vmem:[%s1908_s6 + $0x1e8] sm:$0xff] %v489_v5  ;;  %v493_v7 = vld [vmem:[%s1903_s25 + $0x3f0] sm:$0xff] }
  0x58   : > { %492 = vst [vmem:[%s1908_s6 + $0x1f0] sm:$0xff] %v491_v6  ;;  %494 = vst [vmem:[%s1908_s6 + $0x1f8] sm:$0xff] %v493_v7 }
  0x59 PF: > { %p1380_p0 = scmp.ge.s32.totalorder %s1766_s22, 1  ;;  %p507_p1 = scmp.lt.s32.totalorder %s1766_s22, 19 }
  0x5b   : > { %p508_p2 = pnand %p1380_p0, %p507_p1 }
  0x5c   : > { %s514_s0 = sand.u32 (!%p508_p2), 1, %s1742_s16   ;;  %s521_s5 = sand.u32 (!%p508_p2), 1, %s1734_s14  }
  0x5d   : > { %511 = sbr.rel (%p508_p2) target bundleno = 423 (0x1a7), region = 85  ;;  %s1381_s23 = sshll.u32 (!%p508_p2), %s514_s0, 6 }
  0x5e   : > { %s1382_s28 = sshll.u32 (!%p508_p2), %s521_s5, 9  ;;  %s548_s7 = sand.u32 (!%p508_p2), 1, %s1726_s12  }
  0x5f   : > { %s1384_s11 = sshll.u32 (!%p508_p2), %s1754_s19, 1  ;;  %s1383_s25 = sshll.u32 (!%p508_p2), %s548_s7, 5 }
  0x60   : > { %p556_p3 = scmp.lt.s32.totalorder (!%p508_p2), %s1384_s11, 3  ;;  %s2047_s4 = scalar_lea.vmem (!%p508_p2), [#allocation3], %s1381_s23 }
  0x61   : > { %s2049_s6 = scalar_lea.vmem (!%p508_p2), [#allocation4], %s1382_s28  ;;  %s2051_s1 = scalar_lea.vmem (!%p508_p2), [#allocation5], %s1383_s25 }
  0x62   : > { %p1385_p4 = scmp.ne.s32.totalorder (!%p508_p2), %s1750_s18, 0 }
  0x64   : > { %s2210_s11 = smov (!%p556_p3, %s1384_s11), 3  ;;  %565 = sbr.rel (%p1385_p4) target bundleno = 107 (0x6b), region = 97 }
  0x65   : > { %s558_s29 = scalar_lea.vmem %s2181_s2, %s2210_s11  ;;  %v1768_v8 = vmov (!%p1385_p4), 0.0  }
  0x66   : > { %566 = vst [vmem:[#allocation2] sm:$0xff] (!%p1385_p4), %v1768_v8  ;;  %567 = vst [vmem:[#allocation2 + $0x8] sm:$0xff] (!%p1385_p4), %v1768_v8 }
  0x67   : > { %568 = vst [vmem:[#allocation2 + $0x10] sm:$0xff] (!%p1385_p4), %v1768_v8  ;;  %569 = vst [vmem:[#allocation2 + $0x18] sm:$0xff] (!%p1385_p4), %v1768_v8 }
  0x68   : > { %570 = vst [vmem:[#allocation2 + $0x20] sm:$0xff] (!%p1385_p4), %v1768_v8  ;;  %571 = vst [vmem:[#allocation2 + $0x28] sm:$0xff] (!%p1385_p4), %v1768_v8 }
  0x69   : > { %572 = vst [vmem:[#allocation2 + $0x30] sm:$0xff] (!%p1385_p4), %v1768_v8  ;;  %573 = vst [vmem:[#allocation2 + $0x38] sm:$0xff] (!%p1385_p4), %v1768_v8 }
  0x6b PF: > { %v1572_v9 = vld [vmem:[%s2049_s6 + $0x4] ss:$8 sps:$4 sm:$0xff]   ;;  %v1576_v11 = vld [vmem:[%s2049_s6] ss:$8 sps:$4 sm:$0xff]   ;;  %v1578_v13 = vld [vmem:[%s2049_s6 + $0x14] ss:$8 sps:$4 sm:$0xff]  }
  0x6c   : > { %v1574_v10 = vld [vmem:[%s2049_s6 + $0x104] ss:$8 sps:$4 sm:$0xff]   ;;  %1014 = vmatprep.subr.bf16.mxu1 %v1572_v9  ;;  %v1577_v12 = vld [vmem:[%s2049_s6 + $0x100] ss:$8 sps:$4 sm:$0xff]   ;;  %v1580_v14 = vld [vmem:[%s2049_s6 + $0x114] ss:$8 sps:$4 sm:$0xff]  }
  0x6d   : > { %1067 = vmatprep.subr.bf16.mxu0 %v1574_v10  ;;  %1015 = vmatpush1.bf16.msra.mxu1 %v1576_v11  ;;  %v1582_v15 = vld [vmem:[%s2049_s6 + $0x10] ss:$8 sps:$4 sm:$0xff]   ;;  %v1584_v17 = vld [vmem:[%s2049_s6 + $0x24] ss:$8 sps:$4 sm:$0xff]   ;;  %v1588_v19 = vld [vmem:[%s2049_s6 + $0x20] ss:$8 sps:$4 sm:$0xff]  }
  0x6e   : > { %1068 = vmatpush1.bf16.msra.mxu0 %v1577_v12  ;;  %1016 = vmatprep.subr.bf16.mxu1 %v1578_v13  ;;  %v1583_v16 = vld [vmem:[%s2049_s6 + $0x110] ss:$8 sps:$4 sm:$0xff]   ;;  %v1586_v18 = vld [vmem:[%s2049_s6 + $0x124] ss:$8 sps:$4 sm:$0xff]   ;;  %v1589_v20 = vld [vmem:[%s2049_s6 + $0x120] ss:$8 sps:$4 sm:$0xff]  }
  0x6f   : > { %1069 = vmatprep.subr.bf16.mxu0 %v1580_v14  ;;  %v1590_v21 = vld [vmem:[%s2049_s6 + $0x34] ss:$8 sps:$4 sm:$0xff]   ;;  %v1594_v23 = vld [vmem:[%s2049_s6 + $0x30] ss:$8 sps:$4 sm:$0xff]   ;;  %v1596_v25 = vld [vmem:[%s2049_s6 + $0x44] ss:$8 sps:$4 sm:$0xff]  }
  0x70   : > { %v1592_v22 = vld [vmem:[%s2049_s6 + $0x134] ss:$8 sps:$4 sm:$0xff]   ;;  %v1595_v24 = vld [vmem:[%s2049_s6 + $0x130] ss:$8 sps:$4 sm:$0xff]   ;;  %v1598_v26 = vld [vmem:[%s2049_s6 + $0x144] ss:$8 sps:$4 sm:$0xff]  }
  0x71   : > { %1017 = vmatpush1.bf16.msra.mxu1 %v1582_v15  ;;  %v1600_v27 = vld [vmem:[%s2049_s6 + $0x40] ss:$8 sps:$4 sm:$0xff]   ;;  %v1602_v29 = vld [vmem:[%s2049_s6 + $0x54] ss:$8 sps:$4 sm:$0xff]   ;;  %v1606_v31 = vld [vmem:[%s2049_s6 + $0x50] ss:$8 sps:$4 sm:$0xff]  }
  0x72   : > { %1070 = vmatpush1.bf16.msra.mxu0 %v1583_v16  ;;  %1018 = vmatprep.subr.bf16.mxu1 %v1584_v17  ;;  %v1601_v28 = vld [vmem:[%s2049_s6 + $0x140] ss:$8 sps:$4 sm:$0xff]   ;;  %v1604_v30 = vld [vmem:[%s2049_s6 + $0x154] ss:$8 sps:$4 sm:$0xff]   ;;  %v1607_v32 = vld [vmem:[%s2049_s6 + $0x150] ss:$8 sps:$4 sm:$0xff]  }
  0x73   : > { %1071 = vmatprep.subr.bf16.mxu0 %v1586_v18  ;;  %v1608_v33 = vld [vmem:[%s2049_s6 + $0x64] ss:$8 sps:$4 sm:$0xff]   ;;  %v1612_v35 = vld [vmem:[%s2049_s6 + $0x60] ss:$8 sps:$4 sm:$0xff]   ;;  %v1614_v37 = vld [vmem:[%s2049_s6 + $0x74] ss:$8 sps:$4 sm:$0xff]  }
  0x74   : > { %v1610_v34 = vld [vmem:[%s2049_s6 + $0x164] ss:$8 sps:$4 sm:$0xff]   ;;  %v1613_v36 = vld [vmem:[%s2049_s6 + $0x160] ss:$8 sps:$4 sm:$0xff]   ;;  %v1616_v38 = vld [vmem:[%s2049_s6 + $0x174] ss:$8 sps:$4 sm:$0xff]  }
  0x75   : > { %1019 = vmatpush1.bf16.msra.mxu1 %v1588_v19  ;;  %v1618_v39 = vld [vmem:[%s2049_s6 + $0x70] ss:$8 sps:$4 sm:$0xff]   ;;  %v1620_v41 = vld [vmem:[%s2049_s6 + $0x84] ss:$8 sps:$4 sm:$0xff]   ;;  %v1624_v43 = vld [vmem:[%s2049_s6 + $0x80] ss:$8 sps:$4 sm:$0xff]  }
  0x76   : > { %1072 = vmatpush1.bf16.msra.mxu0 %v1589_v20  ;;  %1020 = vmatprep.subr.bf16.mxu1 %v1590_v21  ;;  %v1619_v40 = vld [vmem:[%s2049_s6 + $0x170] ss:$8 sps:$4 sm:$0xff]   ;;  %v1622_v42 = vld [vmem:[%s2049_s6 + $0x184] ss:$8 sps:$4 sm:$0xff]   ;;  %v1625_v44 = vld [vmem:[%s2049_s6 + $0x180] ss:$8 sps:$4 sm:$0xff]  }
  0x77   : > { %1073 = vmatprep.subr.bf16.mxu0 %v1592_v22  ;;  %v1626_v45 = vld [vmem:[%s2049_s6 + $0x94] ss:$8 sps:$4 sm:$0xff]   ;;  %v1630_v47 = vld [vmem:[%s2049_s6 + $0x90] ss:$8 sps:$4 sm:$0xff]   ;;  %v1632_v49 = vld [vmem:[%s2049_s6 + $0xa4] ss:$8 sps:$4 sm:$0xff]  }
  0x78   : > { %v1628_v46 = vld [vmem:[%s2049_s6 + $0x194] ss:$8 sps:$4 sm:$0xff]   ;;  %v1631_v48 = vld [vmem:[%s2049_s6 + $0x190] ss:$8 sps:$4 sm:$0xff]   ;;  %v1634_v50 = vld [vmem:[%s2049_s6 + $0x1a4] ss:$8 sps:$4 sm:$0xff]  }
  0x79   : > { %1021 = vmatpush1.bf16.msra.mxu1 %v1594_v23  ;;  %v1636_v51 = vld [vmem:[%s2049_s6 + $0xa0] ss:$8 sps:$4 sm:$0xff]   ;;  %v1638_v53 = vld [vmem:[%s2049_s6 + $0xb4] ss:$8 sps:$4 sm:$0xff]   ;;  %v1642_v55 = vld [vmem:[%s2049_s6 + $0xb0] ss:$8 sps:$4 sm:$0xff]  }
  0x7a   : > { %1074 = vmatpush1.bf16.msra.mxu0 %v1595_v24  ;;  %1022 = vmatprep.subr.bf16.mxu1 %v1596_v25  ;;  %v1637_v52 = vld [vmem:[%s2049_s6 + $0x1a0] ss:$8 sps:$4 sm:$0xff]   ;;  %v1640_v54 = vld [vmem:[%s2049_s6 + $0x1b4] ss:$8 sps:$4 sm:$0xff]   ;;  %v1643_v56 = vld [vmem:[%s2049_s6 + $0x1b0] ss:$8 sps:$4 sm:$0xff]  }
  0x7b   : > { %1075 = vmatprep.subr.bf16.mxu0 %v1598_v26  ;;  %v1644_v57 = vld [vmem:[%s2049_s6 + $0xc4] ss:$8 sps:$4 sm:$0xff]   ;;  %v1648_v61 = vld [vmem:[%s2049_s6 + $0xc0] ss:$8 sps:$4 sm:$0xff]   ;;  %v1650_v63 = vld [vmem:[%s2049_s6 + $0xd4] ss:$8 sps:$4 sm:$0xff]  }
  0x7c   : > { %v1670_v58 = vld [vmem:[%s2047_s4 + $0x4] ss:$16 sps:$4 sm:$0xff]   ;;  %v1673_v60 = vld [vmem:[%s2047_s4 + $0xc] ss:$16 sps:$4 sm:$0xff]   ;;  %v1649_v62 = vld [vmem:[%s2049_s6 + $0x1c0] ss:$8 sps:$4 sm:$0xff]  }
  0x7d   : > { %1023 = vmatpush1.bf16.msra.mxu1 %v1600_v27  ;;  %v1646_v59 = vld [vmem:[%s2049_s6 + $0x1c4] ss:$8 sps:$4 sm:$0xff]   ;;  %1046 = vmatprep.mubr.bf16.mxu1 %v1670_v58  ;;  %v1652_v0 = vld [vmem:[%s2049_s6 + $0x1d4] ss:$8 sps:$4 sm:$0xff]   ;;  %v1654_v1 = vld [vmem:[%s2049_s6 + $0xd0] ss:$8 sps:$4 sm:$0xff]  }
  0x7e   : > { %1076 = vmatpush1.bf16.msra.mxu0 %v1601_v28  ;;  %1024 = vmatprep.subr.bf16.mxu1 %v1602_v29  ;;  %v1655_v2 = vld [vmem:[%s2049_s6 + $0x1d0] ss:$8 sps:$4 sm:$0xff]   ;;  %v1656_v3 = vld [vmem:[%s2049_s6 + $0xe4] ss:$8 sps:$4 sm:$0xff]   ;;  %v1660_v5 = vld [vmem:[%s2049_s6 + $0xe0] ss:$8 sps:$4 sm:$0xff]  }
  0x7f   : > { %1077 = vmatprep.subr.bf16.mxu0 %v1604_v30  ;;  %1099 = vmatprep.mubr.bf16.mxu0 %v1673_v60  ;;  %v1658_v4 = vld [vmem:[%s2049_s6 + $0x1e4] ss:$8 sps:$4 sm:$0xff]   ;;  %v1661_v6 = vld [vmem:[%s2049_s6 + $0x1e0] ss:$8 sps:$4 sm:$0xff]   ;;  %v1662_v7 = vld [vmem:[%s2049_s6 + $0xf4] ss:$8 sps:$4 sm:$0xff]  }
  0x80   : > { %v1664_v8 = vld [vmem:[%s2049_s6 + $0x1f4] ss:$8 sps:$4 sm:$0xff]   ;;  %v1666_v9 = vld [vmem:[%s2049_s6 + $0xf0] ss:$8 sps:$4 sm:$0xff]   ;;  %v574_v18 = vld [vmem:[#allocation2] sm:$0xff]  ;;  %p1458_p5 = scmp.ne.s32.totalorder %s1750_s18, 8 }
  0x81   : > { %1025 = vmatpush1.bf16.msra.mxu1 %v1606_v31  ;;  %v1667_v10 = vld [vmem:[%s2049_s6 + $0x1f0] ss:$8 sps:$4 sm:$0xff]   ;;  %v1674_v13 = vld [vmem:[%s2047_s4 + $0x24] ss:$16 sps:$4 sm:$0xff]   ;;  %v1676_v14 = vld [vmem:[%s2047_s4 + $0x2c] ss:$16 sps:$4 sm:$0xff]  }
  0x82   : > { %1078 = vmatpush1.bf16.msra.mxu0 %v1607_v32  ;;  %1026 = vmatprep.subr.bf16.mxu1 %v1608_v33  ;;  %v1668_v11 = vld [vmem:[%s2047_s4] ss:$16 sps:$4 sm:$0xff]   ;;  %v1671_v12 = vld [vmem:[%s2047_s4 + $0x8] ss:$16 sps:$4 sm:$0xff]  }
  0x83   : > { %1079 = vmatprep.subr.bf16.mxu0 %v1610_v34  ;;  %v1678_v15 = vld [vmem:[%s2047_s4 + $0x20] ss:$16 sps:$4 sm:$0xff]   ;;  %v1679_v16 = vld [vmem:[%s2047_s4 + $0x28] ss:$16 sps:$4 sm:$0xff]  }
  0x84   : > { %v575_v22 = vld [vmem:[#allocation2 + $0x8] sm:$0xff]  ;;  %v576_v26 = vld [vmem:[#allocation2 + $0x10] sm:$0xff]  ;;  %v577_v31 = vld [vmem:[#allocation2 + $0x18] sm:$0xff] }
  0x85   : > { %1027 = vmatpush1.bf16.msra.mxu1 %v1612_v35 }
  0x86   : > { %1080 = vmatpush1.bf16.msra.mxu0 %v1613_v36  ;;  %1028 = vmatprep.subr.bf16.mxu1 %v1614_v37 }
  0x87   : > { %1081 = vmatprep.subr.bf16.mxu0 %v1616_v38  ;;  %v578_v38 = vld [vmem:[#allocation2 + $0x20] sm:$0xff] }
  0x89   : > { %1029 = vmatpush1.bf16.msra.mxu1 %v1618_v39 }
  0x8a   : > { %1082 = vmatpush1.bf16.msra.mxu0 %v1619_v40  ;;  %1030 = vmatprep.subr.bf16.mxu1 %v1620_v41 }
  0x8b   : > { %1083 = vmatprep.subr.bf16.mxu0 %v1622_v42  ;;  %v579_v42 = vld [vmem:[#allocation2 + $0x28] sm:$0xff] }
  0x8d   : > { %1031 = vmatpush1.bf16.msra.mxu1 %v1624_v43 }
  0x8e   : > { %1084 = vmatpush1.bf16.msra.mxu0 %v1625_v44  ;;  %1032 = vmatprep.subr.bf16.mxu1 %v1626_v45 }
  0x8f   : > { %1085 = vmatprep.subr.bf16.mxu0 %v1628_v46  ;;  %v580_v46 = vld [vmem:[#allocation2 + $0x30] sm:$0xff] }
  0x91   : > { %1033 = vmatpush1.bf16.msra.mxu1 %v1630_v47 }
  0x92   : > { %1086 = vmatpush1.bf16.msra.mxu0 %v1631_v48  ;;  %1034 = vmatprep.subr.bf16.mxu1 %v1632_v49 }
  0x93   : > { %1087 = vmatprep.subr.bf16.mxu0 %v1634_v50 }
  0x95   : > { %1035 = vmatpush1.bf16.msra.mxu1 %v1636_v51  ;;  %v581_v51 = vld [vmem:[#allocation2 + $0x38] sm:$0xff] }
  0x96   : > { %1088 = vmatpush1.bf16.msra.mxu0 %v1637_v52  ;;  %1036 = vmatprep.subr.bf16.mxu1 %v1638_v53 }
  0x97   : > { %1089 = vmatprep.subr.bf16.mxu0 %v1640_v54 }
  0x99   : > { %1037 = vmatpush1.bf16.msra.mxu1 %v1642_v55 }
  0x9a   : > { %1090 = vmatpush1.bf16.msra.mxu0 %v1643_v56  ;;  %1038 = vmatprep.subr.bf16.mxu1 %v1644_v57  ;;  %v1150_v57 = vlaneseq (!%p1458_p5) }
  0x9b   : > { %1091 = vmatprep.subr.bf16.mxu0 %v1646_v59  ;;  %v1148_v59 = vld [vmem:[%s558_s29] sm:$0x3] (!%p1458_p5) }
  0x9c   : > { %v1151_v58 = vshrl.u32 (!%p1458_p5), %v1150_v57, 7 }
  0x9d   : > { %1039 = vmatpush1.bf16.msra.mxu1 %v1648_v61 }
  0x9e   : > { %1092 = vmatpush1.bf16.msra.mxu0 %v1649_v62  ;;  %1040 = vmatprep.subr.bf16.mxu1 %v1650_v63  ;;  %v1152_v62 = vsub.s32 (!%p1458_p5), 0, %v1151_v58  ;;  %v1156_v63 = vsub.s32 (!%p1458_p5), 1, %v1151_v58 }
  0x9f   : > { %1093 = vmatprep.subr.bf16.mxu0 %v1652_v0 }
  0xa1   : > { %1041 = vmatpush1.bf16.msra.mxu1 %v1654_v1 }
  0xa2   : > { %1094 = vmatpush1.bf16.msra.mxu0 %v1655_v2  ;;  %1042 = vmatprep.subr.bf16.mxu1 %v1656_v3  ;;  %v1153_v3 = vrot.slane (!%p1458_p5), %v1148_v59, %v1152_v62 }
  0xa3   : > { %1095 = vmatprep.subr.bf16.mxu0 %v1658_v4  ;;  %v1157_v4 = vrot.slane (!%p1458_p5), %v1148_v59, %v1156_v63 }
  0xa5   : > { %1043 = vmatpush1.bf16.msra.mxu1 %v1660_v5 }
  0xa6   : > { %1096 = vmatpush1.bf16.msra.mxu0 %v1661_v6  ;;  %1044 = vmatprep.subr.bf16.mxu1 %v1662_v7 }
  0xa7   : > { %1097 = vmatprep.subr.bf16.mxu0 %v1664_v8 }
  0xa9   : > { %1045 = vmatpush1.bf16.msra.mxu1 %v1666_v9 }
  0xaa   : > { %1098 = vmatpush1.bf16.msra.mxu0 %v1667_v10 }
  0xac   : > { %1047 = vmatmul.mubr.bf16.vlgmr.msra.gmra.mrb[0].mxu1 %v1668_v11 }
  0xad   : > { %1100 = vmatmul.mubr.bf16.vlgmr.msra.gmra.mrb[0].mxu0 %v1671_v12  ;;  %1056 = vmatprep.mubr.bf16.mxu1 %v1674_v13 }
  0xae   : > { %1109 = vmatprep.mubr.bf16.mxu0 %v1676_v14 }
  0xb4   : > { %1057 = vmatmul.mubr.bf16.gmra.mrb[4].mxu1 %v1678_v15 }
  0xb5   : > { %1110 = vmatmul.mubr.bf16.gmra.mrb[4].mxu0 %v1679_v16 }
 0x17f   : > { %v1048_v17 = vpop.f32.mrb[0].mxu1 }
 0x180   : > { %v1101_v19 = vpop.f32.mrb[0].mxu0  ;;  %v1050_v21 = vpop.f32.mrb[1].mxu1 }
 0x181   : > { %v1102_v20 = vadd.f32 %v1101_v19, %v1048_v17  ;;  %v1103_v23 = vpop.f32.mrb[1].mxu0  ;;  %v1052_v25 = vpop.f32.mrb[2].mxu1 }
 0x182   : > { %v1104_v24 = vadd.f32 %v1103_v23, %v1050_v21  ;;  %v1105_v27 = vpop.f32.mrb[2].mxu0  ;;  %v1054_v30 = vpop.f32.mrb[3].mxu1 }
 0x183   : > { %v1120_v28 = vadd.f32 %v1102_v20, %v574_v18  ;;  %v1106_v29 = vadd.f32 %v1105_v27, %v1052_v25  ;;  %v1107_v32 = vpop.f32.mrb[3].mxu0 }
 0x184   : > { %v1121_v33 = vadd.f32 %v1104_v24, %v575_v22  ;;  %v1108_v34 = vadd.f32 %v1107_v32, %v1054_v30 }
 0x185   : > { %1128 = vst [vmem:[#allocation2] sm:$0xff] %v1120_v28  ;;  %v1122_v35 = vadd.f32 %v1106_v29, %v576_v26 }
 0x186   : > { %1129 = vst [vmem:[#allocation2 + $0x8] sm:$0xff] %v1121_v33  ;;  %v1123_v36 = vadd.f32 %v1108_v34, %v577_v31 }
 0x187   : > { %1130 = vst [vmem:[#allocation2 + $0x10] sm:$0xff] %v1122_v35  ;;  %v1058_v37 = vpop.f32.mrb[4].mxu1 }
 0x188   : > { %1131 = vst [vmem:[#allocation2 + $0x18] sm:$0xff] %v1123_v36  ;;  %v1111_v39 = vpop.f32.mrb[4].mxu0  ;;  %v1060_v41 = vpop.f32.mrb[5].mxu1 }
 0x189   : > { %v1112_v40 = vadd.f32 %v1111_v39, %v1058_v37  ;;  %v1113_v43 = vpop.f32.mrb[5].mxu0  ;;  %v1062_v45 = vpop.f32.mrb[6].mxu1 }
 0x18a   : > { %v1114_v44 = vadd.f32 %v1113_v43, %v1060_v41  ;;  %v1115_v47 = vpop.f32.mrb[6].mxu0  ;;  %v1064_v50 = vpop.f32.mrb[7].mxu1  ;;  %1139 = sbr.rel (%p1458_p5) target bundleno = 415 (0x19f), region = 101 }
 0x18b   : > { %v1124_v48 = vadd.f32 %v1112_v40, %v578_v38  ;;  %v1116_v49 = vadd.f32 %v1115_v47, %v1062_v45  ;;  %v1117_v52 = vpop.f32.mrb[7].mxu0 }
 0x18c   : > { %v1125_v53 = vadd.f32 %v1114_v44, %v579_v42  ;;  %v1118_v54 = vadd.f32 %v1117_v52, %v1064_v50  ;;  %v1140_v60 = vld [vmem:[#allocation2] sm:$0xff] (!%p1458_p5) }
 0x18d   : > { %1132 = vst [vmem:[#allocation2 + $0x20] sm:$0xff] %v1124_v48  ;;  %v1126_v55 = vadd.f32 %v1116_v49, %v580_v46  ;;  %v1141_v61 = vld [vmem:[#allocation2 + $0x8] sm:$0xff] (!%p1458_p5)  ;;  %v1160_v8 = vadd.f32 (!%p1458_p5), %v1153_v3, %v1140_v60 }
 0x18e   : > { %1133 = vst [vmem:[#allocation2 + $0x28] sm:$0xff] %v1125_v53  ;;  %v1127_v56 = vadd.f32 %v1118_v54, %v581_v51  ;;  %v1142_v0 = vld [vmem:[#allocation2 + $0x10] sm:$0xff] (!%p1458_p5)  ;;  %v1161_v9 = vadd.f32 (!%p1458_p5), %v1157_v4, %v1141_v61 }
 0x18f   : > { %1134 = vst [vmem:[#allocation2 + $0x30] sm:$0xff] %v1126_v55  ;;  %v1143_v1 = vld [vmem:[#allocation2 + $0x18] sm:$0xff] (!%p1458_p5)  ;;  %v1162_v10 = vadd.f32 (!%p1458_p5), %v1153_v3, %v1142_v0  ;;  %v1168_v16 = vmax.f32 (!%p1458_p5), %v1160_v8, 0.0 }
 0x190   : > { %1135 = vst [vmem:[#allocation2 + $0x38] sm:$0xff] %v1127_v56  ;;  %v1163_v11 = vadd.f32 (!%p1458_p5), %v1157_v4, %v1143_v1  ;;  %v1169_v17 = vmax.f32 (!%p1458_p5), %v1161_v9, 0.0 }
 0x191   : > { %v1170_v18 = vmax.f32 %v1162_v10, 0.0 }
 0x192   : > { %v1171_v19 = vmax.f32 %v1163_v11, 0.0  ;;  %v1470_v24 = vpack.c.bf16 %v1169_v17, %v1168_v16 }
 0x194   : > { %v1144_v2 = vld [vmem:[#allocation2 + $0x20] sm:$0xff]  ;;  %v1471_v25 = vpack.c.bf16 %v1171_v19, %v1170_v18  ;;  %1200 = vst [vmem:[%s2051_s1] sm:$0xff] %v1470_v24 }
 0x195   : > { %v1145_v5 = vld [vmem:[#allocation2 + $0x28] sm:$0xff]  ;;  %v1164_v12 = vadd.f32 %v1153_v3, %v1144_v2 }
 0x196   : > { %v1146_v6 = vld [vmem:[#allocation2 + $0x30] sm:$0xff]  ;;  %v1165_v13 = vadd.f32 %v1157_v4, %v1145_v5  ;;  %1201 = vst [vmem:[%s2051_s1 + $0x8] sm:$0xff] %v1471_v25 }
 0x197   : > { %v1147_v7 = vld [vmem:[#allocation2 + $0x38] sm:$0xff]  ;;  %v1166_v14 = vadd.f32 %v1153_v3, %v1146_v6  ;;  %v1172_v20 = vmax.f32 %v1164_v12, 0.0 }
 0x198   : > { %v1167_v15 = vadd.f32 %v1157_v4, %v1147_v7  ;;  %v1173_v21 = vmax.f32 %v1165_v13, 0.0 }
 0x199   : > { %v1174_v22 = vmax.f32 %v1166_v14, 0.0 }
 0x19a   : > { %v1175_v23 = vmax.f32 %v1167_v15, 0.0  ;;  %v1472_v26 = vpack.c.bf16 %v1173_v21, %v1172_v20 }
 0x19c   : > { %v1473_v27 = vpack.c.bf16 %v1175_v23, %v1174_v22  ;;  %1202 = vst [vmem:[%s2051_s1 + $0x10] sm:$0xff] %v1472_v26 }
 0x19e   : > { %1203 = vst [vmem:[%s2051_s1 + $0x18] sm:$0xff] %v1473_v27 }
 0x19f PF: > { %1210 = sbr.rel (!%p1883_p12) target bundleno = 423 (0x1a7), region = 105  ;;  %s1474_s16 = sshll.u32 (%p1883_p12), %s1754_s19, 3  ;;  %v1250_v28 = vld [vmem:[%s2051_s1] sm:$0xff] (%p1883_p12)  ;;  %v1252_v29 = vld [vmem:[%s2051_s1 + $0x8] sm:$0xff] (%p1883_p12) }
 0x1a0   : > { %s1216_s5 = scalar_lea.vmem (%p1883_p12), %s2182_s3, %s1474_s16 }
 0x1a1   : > { %1251 = vst [vmem:[%s1216_s5] sm:$0xff] (%p1883_p12), %v1250_v28  ;;  %1253 = vst [vmem:[%s1216_s5 + $0x10] sm:$0xff] (%p1883_p12), %v1252_v29 }
 0x1a3   : > { %v1254_v30 = vld [vmem:[%s2051_s1 + $0x10] sm:$0xff] (%p1883_p12) }
 0x1a4   : > { %1255 = vst [vmem:[%s1216_s5 + $0x20] sm:$0xff] (%p1883_p12), %v1254_v30 }
 0x1a5   : > { %v1256_v31 = vld [vmem:[%s2051_s1 + $0x18] sm:$0xff] (%p1883_p12) }
 0x1a6   : > { %1257 = vst [vmem:[%s1216_s5 + $0x30] sm:$0xff] %v1256_v31 }
 0x1a7 PF: > { %s13_s22 = sadd.s32 1, %s1766_s22   ;;  %s2192_s10 = sld [smem:[#allocation6_spill]] }
 0x1a8   : > { %p10_p6 = scmp.ge.s32.totalorder %s13_s22, 20   ;;  %s2193_s12 = smov %s1730_s13 }
 0x1a9   : > { %s2194_s13 = smov %s1881_s9  ;;  %s2195_s14 = smov %s1738_s15 }
 0x1aa   : > { %s2196_s15 = smov %s1878_s8  ;;  %s2197_s16 = smov %s1746_s17 }
 0x1ab   : > { %s2198_s17 = smov %s1864_s30  ;;  %s2199_s18 = smov %s1758_s20 }
 0x1ac   : > { %s2200_s19 = smov %s1762_s21  ;;  %s2201_s20 = smov %s2204_s24 }
 0x1ad   : > { %s2202_s21 = smov %s2192_s10  ;;  %12 = sbr.rel (!%p10_p6) target bundleno = 9 (0x9), region = 185 }

// kernel: f_classification_forward.15
= control target key start
LH: loop header
LB: loop body
LE: loop exit
PB: predicated region body
PF: predicated region fallthrough
CT: control target
= control target key end

     0   :  { %s2179_s0 = inlined_call_operand.vmem [shape: bf16[32,2048], index: 0, kind: input, shape index: {}]   ;;  %s2180_s1 = inlined_call_operand.vmem [shape: bf16[2048,512], index: 1, kind: input, shape index: {}]   ;;  %s2181_s2 = inlined_call_operand.vmem [shape: f32[1,512], index: 2, kind: input, shape index: {}]   ;;  %s2182_s3 = inlined_call_operand.vmem [shape: bf16[32,512], index: 3, kind: output, shape index: {}]  }
   0x1   :  { %2184 = sst [smem:[#allocation7_spill]] %s2179_s0 }
   0x2   :  { %2185 = sst [smem:[#allocation8_spill]] %s2180_s1 }
   0x3   :  { %s1789_s12 = smov 0   ;;  %s1791_s13 = smov 0  }
   0x4   :  { %s1793_s14 = smov 0   ;;  %s1795_s15 = smov 0  }
   0x5   :  { %s1797_s16 = smov 0   ;;  %s1799_s17 = smov 0  }
   0x6   :  { %s1801_s18 = smov 0   ;;  %s1803_s19 = smov 0  }
   0x7   :  { %s1805_s20 = smov 0   ;;  %s1807_s21 = smov 0  }
   0x8   :  { %s1809_s22 = smov 0  }
   0x9 LB: > { %s1368_s23 = sadd.s32 4294967295, %s1766_s22   ;;  %s25_s24 = sadd.s32 1, %s1758_s20  ;;  %s1766_s22 = sphi %s1809_s22, %s13_s22   ;;  %s1762_s21 = sphi %s1807_s21, %s2202_s21   ;;  %s1758_s20 = sphi %s1805_s20, %s2201_s20   ;;  %s1754_s19 = sphi %s1803_s19, %s2200_s19   ;;  %s1750_s18 = sphi %s1801_s18, %s2199_s18   ;;  %s1746_s17 = sphi %s1799_s17, %s2198_s17   ;;  %s1742_s16 = sphi %s1797_s16, %s2197_s16   ;;  %s1738_s15 = sphi %s1795_s15, %s2196_s15   ;;  %s1734_s14 = sphi %s1793_s14, %s2195_s14   ;;  %s1730_s13 = sphi %s1791_s13, %s2194_s13   ;;  %s1726_s12 = sphi %s1789_s12, %s2193_s12  }
   0xa   : > { %p26_p0 = scmp.ge.s32.totalorder %s25_s24, 4  ;;  %s28_s25 = sadd.s32 1, %s1762_s21 }
   0xb   : > { %s41_s26 = sadd.s32 1, %s1746_s17  ;;  %p48_p1 = scmp.ne.s32.totalorder %s1746_s17, %s1742_s16 }
   0xc   : > { %s2204_s24 = smov (%p26_p0, %s25_s24), 0  ;;  %s2206_s25 = smov (!%p26_p0, %s28_s25), %s1762_s21 }
   0xd   : > { %s37_s27 = ssub.s32 %s1758_s20, %s2204_s24  ;;  %p49_p2 = scmp.eq.s32.totalorder %s1766_s22, 0 }
   0xe   : > { %p30_p3 = scmp.ge.s32.totalorder %s2206_s25, 2  ;;  %p39_p4 = scmp.eq.s32.totalorder %s37_s27, 0 }
   0xf   : > { %p1856_p5 = por %p49_p2, %p48_p1  ;;  %s69_s29 = sadd.s32 1, %s1738_s15 }
  0x10   : > { %s2208_s25 = smov (%p30_p3, %s2206_s25), 0  ;;  %p76_p6 = scmp.ne.s32.totalorder %s1738_s15, %s1734_s14 }
  0x11   : > { %2187 = sst [smem:[#allocation6_spill]] %s2208_s25  ;;  %s65_s4 = ssub.s32 %s1762_s21, %s2208_s25 }
  0x12   : > { %s1864_s30 = scalar_select %p39_p4, %s1746_s17, %s41_s26  }
  0x13   : > { %s66_s5 = sor.u32 %s65_s4, %s37_s27  ;;  %p121_p7 = scmp.eq.s32.totalorder %s65_s4, 0 }
  0x14   : > { %p67_p8 = scmp.eq.s32.totalorder %s66_s5, 0  ;;  %p1870_p9 = por %p76_p6, %p49_p2 }
  0x15   : > { %s123_s7 = sadd.s32 1, %s1730_s13  ;;  %p133_p10 = scmp.ne.s32.totalorder %s1730_s13, %s1726_s12 }
  0x16   : > { %s1878_s8 = scalar_select %p67_p8, %s1738_s15, %s69_s29  }
  0x17   : > { %s1881_s9 = scalar_select %p121_p7, %s1730_s13, %s123_s7  }
  0x18   : > { %p134_p11 = scmp.eq.s32.totalorder %s1368_s23, 7  ;;  %p1371_p13 = scmp.ge.s32.totalorder %s1766_s22, 8 }
  0x1a   : > { %p1883_p12 = por %p134_p11, %p133_p10  ;;  %156 = sbr.rel (%p1371_p13) target bundleno = 89 (0x59), region = 16 }
  0x21   : > { %159 = sbr.rel (!%p1856_p5) target bundleno = 47 (0x2f), region = 20  ;;  %s161_s11 = sand.u32 (%p1856_p5), 1, %s1746_s17  }
  0x22   : > { %s1468_s26 = sshll.u32 (%p1856_p5), %s1758_s20, 4  ;;  %s1372_s27 = sshll.u32 (%p1856_p5), %s161_s11, 6 }
  0x23   : > { %s2190_s0 = sld [smem:[#allocation7_spill]] (%p1856_p5)  ;;  %s163_s23 = scalar_lea.vmem (%p1856_p5), [#allocation3], %s1372_s27 }
  0x29   : > { %s169_s5 = scalar_lea.vmem %s2190_s0, %s1468_s26 }
  0x2a   : > { %v182_v0 = vld [vmem:[%s169_s5] sm:$0xff]  ;;  %v184_v1 = vld [vmem:[%s169_s5 + $0x8] sm:$0xff] }
  0x2b   : > { %v186_v2 = vld [vmem:[%s169_s5 + $0x40] sm:$0xff]  ;;  %183 = vst [vmem:[%s163_s23] sm:$0xff] %v182_v0  ;;  %185 = vst [vmem:[%s163_s23 + $0x8] sm:$0xff] %v184_v1  ;;  %v188_v3 = vld [vmem:[%s169_s5 + $0x48] sm:$0xff] }
  0x2c   : > { %187 = vst [vmem:[%s163_s23 + $0x10] sm:$0xff] %v186_v2  ;;  %v190_v4 = vld [vmem:[%s169_s5 + $0x80] sm:$0xff]  ;;  %v192_v5 = vld [vmem:[%s169_s5 + $0x88] sm:$0xff]  ;;  %189 = vst [vmem:[%s163_s23 + $0x18] sm:$0xff] %v188_v3 }
  0x2d   : > { %191 = vst [vmem:[%s163_s23 + $0x20] sm:$0xff] %v190_v4  ;;  %193 = vst [vmem:[%s163_s23 + $0x28] sm:$0xff] %v192_v5  ;;  %v194_v6 = vld [vmem:[%s169_s5 + $0xc0] sm:$0xff]  ;;  %v196_v7 = vld [vmem:[%s169_s5 + $0xc8] sm:$0xff] }
  0x2e   : > { %195 = vst [vmem:[%s163_s23 + $0x30] sm:$0xff] %v194_v6  ;;  %197 = vst [vmem:[%s163_s23 + $0x38] sm:$0xff] %v196_v7 }
  0x2f PF: > { %203 = sbr.rel (!%p1870_p9) target bundleno = 89 (0x59), region = 43  ;;  %s205_s28 = sand.u32 (%p1870_p9), 1, %s1738_s15  }
  0x30   : > { %s1377_s7 = sshll.u32 (%p1870_p9), %s1762_s21, 1  ;;  %s1375_s11 = sshll.u32 (%p1870_p9), %s205_s28, 9 }
  0x31   : > { %s1469_s26 = sshll.u32 (%p1870_p9), %s1758_s20, 8  ;;  %s2191_s1 = sld [smem:[#allocation8_spill]] (%p1870_p9) }
  0x32   : > { %s211_s27 = sadd.s32 (%p1870_p9), %s1469_s26, %s1377_s7  ;;  %s1908_s6 = scalar_lea.vmem (%p1870_p9), [#allocation4], %s1375_s11 }
  0x33   : > { %s1379_s29 = sshll.u32 (%p1870_p9), %s211_s27, 2 }
  0x37   : > { %s1903_s25 = scalar_lea.vmem %s2191_s1, %s1379_s29 }
  0x38   : > { %v367_v8 = vld [vmem:[%s1903_s25] sm:$0xff]  ;;  %v369_v9 = vld [vmem:[%s1903_s25 + $0x10] sm:$0xff] }
  0x39   : > { %v371_v10 = vld [vmem:[%s1903_s25 + $0x20] sm:$0xff]  ;;  %368 = vst [vmem:[%s1908_s6] sm:$0xff] %v367_v8  ;;  %370 = vst [vmem:[%s1908_s6 + $0x8] sm:$0xff] %v369_v9  ;;  %v373_v11 = vld [vmem:[%s1903_s25 + $0x30] sm:$0xff] }
  0x3a   : > { %372 = vst [vmem:[%s1908_s6 + $0x10] sm:$0xff] %v371_v10  ;;  %v375_v12 = vld [vmem:[%s1903_s25 + $0x40] sm:$0xff]  ;;  %v377_v13 = vld [vmem:[%s1903_s25 + $0x50] sm:$0xff]  ;;  %374 = vst [vmem:[%s1908_s6 + $0x18] sm:$0xff] %v373_v11 }
  0x3b   : > { %376 = vst [vmem:[%s1908_s6 + $0x20] sm:$0xff] %v375_v12  ;;  %378 = vst [vmem:[%s1908_s6 + $0x28] sm:$0xff] %v377_v13  ;;  %v379_v14 = vld [vmem:[%s1903_s25 + $0x60] sm:$0xff]  ;;  %v381_v15 = vld [vmem:[%s1903_s25 + $0x70] sm:$0xff] }
  0x3c   : > { %v383_v16 = vld [vmem:[%s1903_s25 + $0x80] sm:$0xff]  ;;  %380 = vst [vmem:[%s1908_s6 + $0x30] sm:$0xff] %v379_v14  ;;  %382 = vst [vmem:[%s1908_s6 + $0x38] sm:$0xff] %v381_v15  ;;  %v385_v17 = vld [vmem:[%s1903_s25 + $0x90] sm:$0xff] }
  0x3d   : > { %384 = vst [vmem:[%s1908_s6 + $0x40] sm:$0xff] %v383_v16  ;;  %v387_v18 = vld [vmem:[%s1903_s25 + $0xa0] sm:$0xff]  ;;  %v389_v19 = vld [vmem:[%s1903_s25 + $0xb0] sm:$0xff]  ;;  %386 = vst [vmem:[%s1908_s6 + $0x48] sm:$0xff] %v385_v17 }
  0x3e   : > { %388 = vst [vmem:[%s1908_s6 + $0x50] sm:$0xff] %v387_v18  ;;  %390 = vst [vmem:[%s1908_s6 + $0x58] sm:$0xff] %v389_v19  ;;  %v391_v20 = vld [vmem:[%s1903_s25 + $0xc0] sm:$0xff]  ;;  %v393_v21 = vld [vmem:[%s1903_s25 + $0xd0] sm:$0xff] }
  0x3f   : > { %v395_v22 = vld [vmem:[%s1903_s25 + $0xe0] sm:$0xff]  ;;  %392 = vst [vmem:[%s1908_s6 + $0x60] sm:$0xff] %v391_v20  ;;  %394 = vst [vmem:[%s1908_s6 + $0x68] sm:$0xff] %v393_v21  ;;  %v397_v23 = vld [vmem:[%s1903_s25 + $0xf0] sm:$0xff] }
  0x40   : > { %396 = vst [vmem:[%s1908_s6 + $0x70] sm:$0xff] %v395_v22  ;;  %v399_v24 = vld [vmem:[%s1903_s25 + $0x100] sm:$0xff]  ;;  %v401_v25 = vld [vmem:[%s1903_s25 + $0x110] sm:$0xff]  ;;  %398 = vst [vmem:[%s1908_s6 + $0x78] sm:$0xff] %v397_v23 }
  0x41   : > { %400 = vst [vmem:[%s1908_s6 + $0x80] sm:$0xff] %v399_v24  ;;  %402 = vst [vmem:[%s1908_s6 + $0x88] sm:$0xff] %v401_v25  ;;  %v403_v26 = vld [vmem:[%s1903_s25 + $0x120] sm:$0xff]  ;;  %v405_v27 = vld [vmem:[%s1903_s25 + $0x130] sm:$0xff] }
  0x42   : > { %v407_v28 = vld [vmem:[%s1903_s25 + $0x140] sm:$0xff]  ;;  %404 = vst [vmem:[%s1908_s6 + $0x90] sm:$0xff] %v403_v26  ;;  %406 = vst [vmem:[%s1908_s6 + $0x98] sm:$0xff] %v405_v27  ;;  %v409_v29 = vld [vmem:[%s1903_s25 + $0x150] sm:$0xff] }
  0x43   : > { %408 = vst [vmem:[%s1908_s6 + $0xa0] sm:$0xff] %v407_v28  ;;  %v411_v30 = vld [vmem:[%s1903_s25 + $0x160] sm:$0xff]  ;;  %v413_v31 = vld [vmem:[%s1903_s25 + $0x170] sm:$0xff]  ;;  %410 = vst [vmem:[%s1908_s6 + $0xa8] sm:$0xff] %v409_v29 }
  0x44   : > { %412 = vst [vmem:[%s1908_s6 + $0xb0] sm:$0xff] %v411_v30  ;;  %414 = vst [vmem:[%s1908_s6 + $0xb8] sm:$0xff] %v413_v31  ;;  %v415_v32 = vld [vmem:[%s1903_s25 + $0x180] sm:$0xff]  ;;  %v417_v33 = vld [vmem:[%s1903_s25 + $0x190] sm:$0xff] }
  0x45   : > { %v419_v34 = vld [vmem:[%s1903_s25 + $0x1a0] sm:$0xff]  ;;  %416 = vst [vmem:[%s1908_s6 + $0xc0] sm:$0xff] %v415_v32  ;;  %418 = vst [vmem:[%s1908_s6 + $0xc8] sm:$0xff] %v417_v33  ;;  %v421_v35 = vld [vmem:[%s1903_s25 + $0x1b0] sm:$0xff] }
  0x46   : > { %420 = vst [vmem:[%s1908_s6 + $0xd0] sm:$0xff] %v419_v34  ;;  %v423_v36 = vld [vmem:[%s1903_s25 + $0x1c0] sm:$0xff]  ;;  %v425_v37 = vld [vmem:[%s1903_s25 + $0x1d0] sm:$0xff]  ;;  %422 = vst [vmem:[%s1908_s6 + $0xd8] sm:$0xff] %v421_v35 }
  0x47   : > { %424 = vst [vmem:[%s1908_s6 + $0xe0] sm:$0xff] %v423_v36  ;;  %426 = vst [vmem:[%s1908_s6 + $0xe8] sm:$0xff] %v425_v37  ;;  %v427_v38 = vld [vmem:[%s1903_s25 + $0x1e0] sm:$0xff]  ;;  %v429_v39 = vld [vmem:[%s1903_s25 + $0x1f0] sm:$0xff] }
  0x48   : > { %v431_v40 = vld [vmem:[%s1903_s25 + $0x200] sm:$0xff]  ;;  %428 = vst [vmem:[%s1908_s6 + $0xf0] sm:$0xff] %v427_v38  ;;  %430 = vst [vmem:[%s1908_s6 + $0xf8] sm:$0xff] %v429_v39  ;;  %v433_v41 = vld [vmem:[%s1903_s25 + $0x210] sm:$0xff] }
  0x49   : > { %432 = vst [vmem:[%s1908_s6 + $0x100] sm:$0xff] %v431_v40  ;;  %v435_v42 = vld [vmem:[%s1903_s25 + $0x220] sm:$0xff]  ;;  %v437_v43 = vld [vmem:[%s1903_s25 + $0x230] sm:$0xff]  ;;  %434 = vst [vmem:[%s1908_s6 + $0x108] sm:$0xff] %v433_v41 }
  0x4a   : > { %436 = vst [vmem:[%s1908_s6 + $0x110] sm:$0xff] %v435_v42  ;;  %438 = vst [vmem:[%s1908_s6 + $0x118] sm:$0xff] %v437_v43  ;;  %v439_v44 = vld [vmem:[%s1903_s25 + $0x240] sm:$0xff]  ;;  %v441_v45 = vld [vmem:[%s1903_s25 + $0x250] sm:$0xff] }
  0x4b   : > { %v443_v46 = vld [vmem:[%s1903_s25 + $0x260] sm:$0xff]  ;;  %440 = vst [vmem:[%s1908_s6 + $0x120] sm:$0xff] %v439_v44  ;;  %442 = vst [vmem:[%s1908_s6 + $0x128] sm:$0xff] %v441_v45  ;;  %v445_v47 = vld [vmem:[%s1903_s25 + $0x270] sm:$0xff] }
  0x4c   : > { %444 = vst [vmem:[%s1908_s6 + $0x130] sm:$0xff] %v443_v46  ;;  %v447_v48 = vld [vmem:[%s1903_s25 + $0x280] sm:$0xff]  ;;  %v449_v49 = vld [vmem:[%s1903_s25 + $0x290] sm:$0xff]  ;;  %446 = vst [vmem:[%s1908_s6 + $0x138] sm:$0xff] %v445_v47 }
  0x4d   : > { %448 = vst [vmem:[%s1908_s6 + $0x140] sm:$0xff] %v447_v48  ;;  %450 = vst [vmem:[%s1908_s6 + $0x148] sm:$0xff] %v449_v49  ;;  %v451_v50 = vld [vmem:[%s1903_s25 + $0x2a0] sm:$0xff]  ;;  %v453_v51 = vld [vmem:[%s1903_s25 + $0x2b0] sm:$0xff] }
  0x4e   : > { %v455_v52 = vld [vmem:[%s1903_s25 + $0x2c0] sm:$0xff]  ;;  %452 = vst [vmem:[%s1908_s6 + $0x150] sm:$0xff] %v451_v50  ;;  %454 = vst [vmem:[%s1908_s6 + $0x158] sm:$0xff] %v453_v51  ;;  %v457_v53 = vld [vmem:[%s1903_s25 + $0x2d0] sm:$0xff] }
  0x4f   : > { %456 = vst [vmem:[%s1908_s6 + $0x160] sm:$0xff] %v455_v52  ;;  %v459_v54 = vld [vmem:[%s1903_s25 + $0x2e0] sm:$0xff]  ;;  %v461_v55 = vld [vmem:[%s1903_s25 + $0x2f0] sm:$0xff]  ;;  %458 = vst [vmem:[%s1908_s6 + $0x168] sm:$0xff] %v457_v53 }
  0x50   : > { %460 = vst [vmem:[%s1908_s6 + $0x170] sm:$0xff] %v459_v54  ;;  %462 = vst [vmem:[%s1908_s6 + $0x178] sm:$0xff] %v461_v55  ;;  %v463_v56 = vld [vmem:[%s1903_s25 + $0x300] sm:$0xff]  ;;  %v465_v57 = vld [vmem:[%s1903_s25 + $0x310] sm:$0xff] }
  0x51   : > { %v467_v58 = vld [vmem:[%s1903_s25 + $0x320] sm:$0xff]  ;;  %464 = vst [vmem:[%s1908_s6 + $0x180] sm:$0xff] %v463_v56  ;;  %466 = vst [vmem:[%s1908_s6 + $0x188] sm:$0xff] %v465_v57  ;;  %v469_v59 = vld [vmem:[%s1903_s25 + $0x330] sm:$0xff] }
  0x52   : > { %468 = vst [vmem:[%s1908_s6 + $0x190] sm:$0xff] %v467_v58  ;;  %v471_v60 = vld [vmem:[%s1903_s25 + $0x340] sm:$0xff]  ;;  %v473_v61 = vld [vmem:[%s1903_s25 + $0x350] sm:$0xff]  ;;  %470 = vst [vmem:[%s1908_s6 + $0x198] sm:$0xff] %v469_v59 }
  0x53   : > { %472 = vst [vmem:[%s1908_s6 + $0x1a0] sm:$0xff] %v471_v60  ;;  %474 = vst [vmem:[%s1908_s6 + $0x1a8] sm:$0xff] %v473_v61  ;;  %v475_v62 = vld [vmem:[%s1903_s25 + $0x360] sm:$0xff]  ;;  %v477_v63 = vld [vmem:[%s1903_s25 + $0x370] sm:$0xff] }
  0x54   : > { %v479_v0 = vld [vmem:[%s1903_s25 + $0x380] sm:$0xff]  ;;  %476 = vst [vmem:[%s1908_s6 + $0x1b0] sm:$0xff] %v475_v62  ;;  %478 = vst [vmem:[%s1908_s6 + $0x1b8] sm:$0xff] %v477_v63  ;;  %v481_v1 = vld [vmem:[%s1903_s25 + $0x390] sm:$0xff] }
  0x55   : > { %480 = vst [vmem:[%s1908_s6 + $0x1c0] sm:$0xff] %v479_v0  ;;  %v483_v2 = vld [vmem:[%s1903_s25 + $0x3a0] sm:$0xff]  ;;  %v485_v3 = vld [vmem:[%s1903_s25 + $0x3b0] sm:$0xff]  ;;  %482 = vst [vmem:[%s1908_s6 + $0x1c8] sm:$0xff] %v481_v1 }
  0x56   : > { %484 = vst [vmem:[%s1908_s6 + $0x1d0] sm:$0xff] %v483_v2  ;;  %486 = vst [vmem:[%s1908_s6 + $0x1d8] sm:$0xff] %v485_v3  ;;  %v487_v4 = vld [vmem:[%s1903_s25 + $0x3c0] sm:$0xff]  ;;  %v489_v5 = vld [vmem:[%s1903_s25 + $0x3d0] sm:$0xff] }
  0x57   : > { %v491_v6 = vld [vmem:[%s1903_s25 + $0x3e0] sm:$0xff]  ;;  %488 = vst [vmem:[%s1908_s6 + $0x1e0] sm:$0xff] %v487_v4  ;;  %490 = vst [vmem:[%s1908_s6 + $0x1e8] sm:$0xff] %v489_v5  ;;  %v493_v7 = vld [vmem:[%s1903_s25 + $0x3f0] sm:$0xff] }
  0x58   : > { %492 = vst [vmem:[%s1908_s6 + $0x1f0] sm:$0xff] %v491_v6  ;;  %494 = vst [vmem:[%s1908_s6 + $0x1f8] sm:$0xff] %v493_v7 }
  0x59 PF: > { %p1380_p0 = scmp.ge.s32.totalorder %s1766_s22, 1  ;;  %p507_p1 = scmp.lt.s32.totalorder %s1766_s22, 9 }
  0x5b   : > { %p508_p2 = pnand %p1380_p0, %p507_p1 }
  0x5c   : > { %s514_s0 = sand.u32 (!%p508_p2), 1, %s1742_s16   ;;  %s521_s5 = sand.u32 (!%p508_p2), 1, %s1734_s14  }
  0x5d   : > { %511 = sbr.rel (%p508_p2) target bundleno = 423 (0x1a7), region = 85  ;;  %s1381_s23 = sshll.u32 (!%p508_p2), %s514_s0, 6 }
  0x5e   : > { %s1382_s28 = sshll.u32 (!%p508_p2), %s521_s5, 9  ;;  %s548_s7 = sand.u32 (!%p508_p2), 1, %s1726_s12  }
  0x5f   : > { %s1384_s11 = sshll.u32 (!%p508_p2), %s1754_s19, 1  ;;  %s1383_s25 = sshll.u32 (!%p508_p2), %s548_s7, 5 }
  0x60   : > { %p556_p3 = scmp.lt.s32.totalorder (!%p508_p2), %s1384_s11, 3  ;;  %s2047_s4 = scalar_lea.vmem (!%p508_p2), [#allocation3], %s1381_s23 }
  0x61   : > { %s2049_s6 = scalar_lea.vmem (!%p508_p2), [#allocation4], %s1382_s28  ;;  %s2051_s1 = scalar_lea.vmem (!%p508_p2), [#allocation5], %s1383_s25 }
  0x62   : > { %p1385_p4 = scmp.ne.s32.totalorder (!%p508_p2), %s1750_s18, 0 }
  0x64   : > { %s2210_s11 = smov (!%p556_p3, %s1384_s11), 3  ;;  %565 = sbr.rel (%p1385_p4) target bundleno = 107 (0x6b), region = 97 }
  0x65   : > { %s558_s29 = scalar_lea.vmem %s2181_s2, %s2210_s11  ;;  %v1768_v8 = vmov (!%p1385_p4), 0.0  }
  0x66   : > { %566 = vst [vmem:[#allocation2] sm:$0xff] (!%p1385_p4), %v1768_v8  ;;  %567 = vst [vmem:[#allocation2 + $0x8] sm:$0xff] (!%p1385_p4), %v1768_v8 }
  0x67   : > { %568 = vst [vmem:[#allocation2 + $0x10] sm:$0xff] (!%p1385_p4), %v1768_v8  ;;  %569 = vst [vmem:[#allocation2 + $0x18] sm:$0xff] (!%p1385_p4), %v1768_v8 }
  0x68   : > { %570 = vst [vmem:[#allocation2 + $0x20] sm:$0xff] (!%p1385_p4), %v1768_v8  ;;  %571 = vst [vmem:[#allocation2 + $0x28] sm:$0xff] (!%p1385_p4), %v1768_v8 }
  0x69   : > { %572 = vst [vmem:[#allocation2 + $0x30] sm:$0xff] (!%p1385_p4), %v1768_v8  ;;  %573 = vst [vmem:[#allocation2 + $0x38] sm:$0xff] (!%p1385_p4), %v1768_v8 }
  0x6b PF: > { %v1572_v9 = vld [vmem:[%s2049_s6 + $0x4] ss:$8 sps:$4 sm:$0xff]   ;;  %v1576_v11 = vld [vmem:[%s2049_s6] ss:$8 sps:$4 sm:$0xff]   ;;  %v1578_v13 = vld [vmem:[%s2049_s6 + $0x14] ss:$8 sps:$4 sm:$0xff]  }
  0x6c   : > { %v1574_v10 = vld [vmem:[%s2049_s6 + $0x104] ss:$8 sps:$4 sm:$0xff]   ;;  %1014 = vmatprep.subr.bf16.mxu1 %v1572_v9  ;;  %v1577_v12 = vld [vmem:[%s2049_s6 + $0x100] ss:$8 sps:$4 sm:$0xff]   ;;  %v1580_v14 = vld [vmem:[%s2049_s6 + $0x114] ss:$8 sps:$4 sm:$0xff]  }
  0x6d   : > { %1067 = vmatprep.subr.bf16.mxu0 %v1574_v10  ;;  %1015 = vmatpush1.bf16.msra.mxu1 %v1576_v11  ;;  %v1582_v15 = vld [vmem:[%s2049_s6 + $0x10] ss:$8 sps:$4 sm:$0xff]   ;;  %v1584_v17 = vld [vmem:[%s2049_s6 + $0x24] ss:$8 sps:$4 sm:$0xff]   ;;  %v1588_v19 = vld [vmem:[%s2049_s6 + $0x20] ss:$8 sps:$4 sm:$0xff]  }
  0x6e   : > { %1068 = vmatpush1.bf16.msra.mxu0 %v1577_v12  ;;  %1016 = vmatprep.subr.bf16.mxu1 %v1578_v13  ;;  %v1583_v16 = vld [vmem:[%s2049_s6 + $0x110] ss:$8 sps:$4 sm:$0xff]   ;;  %v1586_v18 = vld [vmem:[%s2049_s6 + $0x124] ss:$8 sps:$4 sm:$0xff]   ;;  %v1589_v20 = vld [vmem:[%s2049_s6 + $0x120] ss:$8 sps:$4 sm:$0xff]  }
  0x6f   : > { %1069 = vmatprep.subr.bf16.mxu0 %v1580_v14  ;;  %v1590_v21 = vld [vmem:[%s2049_s6 + $0x34] ss:$8 sps:$4 sm:$0xff]   ;;  %v1594_v23 = vld [vmem:[%s2049_s6 + $0x30] ss:$8 sps:$4 sm:$0xff]   ;;  %v1596_v25 = vld [vmem:[%s2049_s6 + $0x44] ss:$8 sps:$4 sm:$0xff]  }
  0x70   : > { %v1592_v22 = vld [vmem:[%s2049_s6 + $0x134] ss:$8 sps:$4 sm:$0xff]   ;;  %v1595_v24 = vld [vmem:[%s2049_s6 + $0x130] ss:$8 sps:$4 sm:$0xff]   ;;  %v1598_v26 = vld [vmem:[%s2049_s6 + $0x144] ss:$8 sps:$4 sm:$0xff]  }
  0x71   : > { %1017 = vmatpush1.bf16.msra.mxu1 %v1582_v15  ;;  %v1600_v27 = vld [vmem:[%s2049_s6 + $0x40] ss:$8 sps:$4 sm:$0xff]   ;;  %v1602_v29 = vld [vmem:[%s2049_s6 + $0x54] ss:$8 sps:$4 sm:$0xff]   ;;  %v1606_v31 = vld [vmem:[%s2049_s6 + $0x50] ss:$8 sps:$4 sm:$0xff]  }
  0x72   : > { %1070 = vmatpush1.bf16.msra.mxu0 %v1583_v16  ;;  %1018 = vmatprep.subr.bf16.mxu1 %v1584_v17  ;;  %v1601_v28 = vld [vmem:[%s2049_s6 + $0x140] ss:$8 sps:$4 sm:$0xff]   ;;  %v1604_v30 = vld [vmem:[%s2049_s6 + $0x154] ss:$8 sps:$4 sm:$0xff]   ;;  %v1607_v32 = vld [vmem:[%s2049_s6 + $0x150] ss:$8 sps:$4 sm:$0xff]  }
  0x73   : > { %1071 = vmatprep.subr.bf16.mxu0 %v1586_v18  ;;  %v1608_v33 = vld [vmem:[%s2049_s6 + $0x64] ss:$8 sps:$4 sm:$0xff]   ;;  %v1612_v35 = vld [vmem:[%s2049_s6 + $0x60] ss:$8 sps:$4 sm:$0xff]   ;;  %v1614_v37 = vld [vmem:[%s2049_s6 + $0x74] ss:$8 sps:$4 sm:$0xff]  }
  0x74   : > { %v1610_v34 = vld [vmem:[%s2049_s6 + $0x164] ss:$8 sps:$4 sm:$0xff]   ;;  %v1613_v36 = vld [vmem:[%s2049_s6 + $0x160] ss:$8 sps:$4 sm:$0xff]   ;;  %v1616_v38 = vld [vmem:[%s2049_s6 + $0x174] ss:$8 sps:$4 sm:$0xff]  }
  0x75   : > { %1019 = vmatpush1.bf16.msra.mxu1 %v1588_v19  ;;  %v1618_v39 = vld [vmem:[%s2049_s6 + $0x70] ss:$8 sps:$4 sm:$0xff]   ;;  %v1620_v41 = vld [vmem:[%s2049_s6 + $0x84] ss:$8 sps:$4 sm:$0xff]   ;;  %v1624_v43 = vld [vmem:[%s2049_s6 + $0x80] ss:$8 sps:$4 sm:$0xff]  }
  0x76   : > { %1072 = vmatpush1.bf16.msra.mxu0 %v1589_v20  ;;  %1020 = vmatprep.subr.bf16.mxu1 %v1590_v21  ;;  %v1619_v40 = vld [vmem:[%s2049_s6 + $0x170] ss:$8 sps:$4 sm:$0xff]   ;;  %v1622_v42 = vld [vmem:[%s2049_s6 + $0x184] ss:$8 sps:$4 sm:$0xff]   ;;  %v1625_v44 = vld [vmem:[%s2049_s6 + $0x180] ss:$8 sps:$4 sm:$0xff]  }
  0x77   : > { %1073 = vmatprep.subr.bf16.mxu0 %v1592_v22  ;;  %v1626_v45 = vld [vmem:[%s2049_s6 + $0x94] ss:$8 sps:$4 sm:$0xff]   ;;  %v1630_v47 = vld [vmem:[%s2049_s6 + $0x90] ss:$8 sps:$4 sm:$0xff]   ;;  %v1632_v49 = vld [vmem:[%s2049_s6 + $0xa4] ss:$8 sps:$4 sm:$0xff]  }
  0x78   : > { %v1628_v46 = vld [vmem:[%s2049_s6 + $0x194] ss:$8 sps:$4 sm:$0xff]   ;;  %v1631_v48 = vld [vmem:[%s2049_s6 + $0x190] ss:$8 sps:$4 sm:$0xff]   ;;  %v1634_v50 = vld [vmem:[%s2049_s6 + $0x1a4] ss:$8 sps:$4 sm:$0xff]  }
  0x79   : > { %1021 = vmatpush1.bf16.msra.mxu1 %v1594_v23  ;;  %v1636_v51 = vld [vmem:[%s2049_s6 + $0xa0] ss:$8 sps:$4 sm:$0xff]   ;;  %v1638_v53 = vld [vmem:[%s2049_s6 + $0xb4] ss:$8 sps:$4 sm:$0xff]   ;;  %v1642_v55 = vld [vmem:[%s2049_s6 + $0xb0] ss:$8 sps:$4 sm:$0xff]  }
  0x7a   : > { %1074 = vmatpush1.bf16.msra.mxu0 %v1595_v24  ;;  %1022 = vmatprep.subr.bf16.mxu1 %v1596_v25  ;;  %v1637_v52 = vld [vmem:[%s2049_s6 + $0x1a0] ss:$8 sps:$4 sm:$0xff]   ;;  %v1640_v54 = vld [vmem:[%s2049_s6 + $0x1b4] ss:$8 sps:$4 sm:$0xff]   ;;  %v1643_v56 = vld [vmem:[%s2049_s6 + $0x1b0] ss:$8 sps:$4 sm:$0xff]  }
  0x7b   : > { %1075 = vmatprep.subr.bf16.mxu0 %v1598_v26  ;;  %v1644_v57 = vld [vmem:[%s2049_s6 + $0xc4] ss:$8 sps:$4 sm:$0xff]   ;;  %v1648_v61 = vld [vmem:[%s2049_s6 + $0xc0] ss:$8 sps:$4 sm:$0xff]   ;;  %v1650_v63 = vld [vmem:[%s2049_s6 + $0xd4] ss:$8 sps:$4 sm:$0xff]  }
  0x7c   : > { %v1670_v58 = vld [vmem:[%s2047_s4 + $0x4] ss:$16 sps:$4 sm:$0xff]   ;;  %v1673_v60 = vld [vmem:[%s2047_s4 + $0xc] ss:$16 sps:$4 sm:$0xff]   ;;  %v1649_v62 = vld [vmem:[%s2049_s6 + $0x1c0] ss:$8 sps:$4 sm:$0xff]  }
  0x7d   : > { %1023 = vmatpush1.bf16.msra.mxu1 %v1600_v27  ;;  %v1646_v59 = vld [vmem:[%s2049_s6 + $0x1c4] ss:$8 sps:$4 sm:$0xff]   ;;  %1046 = vmatprep.mubr.bf16.mxu1 %v1670_v58  ;;  %v1652_v0 = vld [vmem:[%s2049_s6 + $0x1d4] ss:$8 sps:$4 sm:$0xff]   ;;  %v1654_v1 = vld [vmem:[%s2049_s6 + $0xd0] ss:$8 sps:$4 sm:$0xff]  }
  0x7e   : > { %1076 = vmatpush1.bf16.msra.mxu0 %v1601_v28  ;;  %1024 = vmatprep.subr.bf16.mxu1 %v1602_v29  ;;  %v1655_v2 = vld [vmem:[%s2049_s6 + $0x1d0] ss:$8 sps:$4 sm:$0xff]   ;;  %v1656_v3 = vld [vmem:[%s2049_s6 + $0xe4] ss:$8 sps:$4 sm:$0xff]   ;;  %v1660_v5 = vld [vmem:[%s2049_s6 + $0xe0] ss:$8 sps:$4 sm:$0xff]  }
  0x7f   : > { %1077 = vmatprep.subr.bf16.mxu0 %v1604_v30  ;;  %1099 = vmatprep.mubr.bf16.mxu0 %v1673_v60  ;;  %v1658_v4 = vld [vmem:[%s2049_s6 + $0x1e4] ss:$8 sps:$4 sm:$0xff]   ;;  %v1661_v6 = vld [vmem:[%s2049_s6 + $0x1e0] ss:$8 sps:$4 sm:$0xff]   ;;  %v1662_v7 = vld [vmem:[%s2049_s6 + $0xf4] ss:$8 sps:$4 sm:$0xff]  }
  0x80   : > { %v1664_v8 = vld [vmem:[%s2049_s6 + $0x1f4] ss:$8 sps:$4 sm:$0xff]   ;;  %v1666_v9 = vld [vmem:[%s2049_s6 + $0xf0] ss:$8 sps:$4 sm:$0xff]   ;;  %v574_v18 = vld [vmem:[#allocation2] sm:$0xff]  ;;  %p1458_p5 = scmp.ne.s32.totalorder %s1750_s18, 3 }
  0x81   : > { %1025 = vmatpush1.bf16.msra.mxu1 %v1606_v31  ;;  %v1667_v10 = vld [vmem:[%s2049_s6 + $0x1f0] ss:$8 sps:$4 sm:$0xff]   ;;  %v1674_v13 = vld [vmem:[%s2047_s4 + $0x24] ss:$16 sps:$4 sm:$0xff]   ;;  %v1676_v14 = vld [vmem:[%s2047_s4 + $0x2c] ss:$16 sps:$4 sm:$0xff]  }
  0x82   : > { %1078 = vmatpush1.bf16.msra.mxu0 %v1607_v32  ;;  %1026 = vmatprep.subr.bf16.mxu1 %v1608_v33  ;;  %v1668_v11 = vld [vmem:[%s2047_s4] ss:$16 sps:$4 sm:$0xff]   ;;  %v1671_v12 = vld [vmem:[%s2047_s4 + $0x8] ss:$16 sps:$4 sm:$0xff]  }
  0x83   : > { %1079 = vmatprep.subr.bf16.mxu0 %v1610_v34  ;;  %v1678_v15 = vld [vmem:[%s2047_s4 + $0x20] ss:$16 sps:$4 sm:$0xff]   ;;  %v1679_v16 = vld [vmem:[%s2047_s4 + $0x28] ss:$16 sps:$4 sm:$0xff]  }
  0x84   : > { %v575_v22 = vld [vmem:[#allocation2 + $0x8] sm:$0xff]  ;;  %v576_v26 = vld [vmem:[#allocation2 + $0x10] sm:$0xff]  ;;  %v577_v31 = vld [vmem:[#allocation2 + $0x18] sm:$0xff] }
  0x85   : > { %1027 = vmatpush1.bf16.msra.mxu1 %v1612_v35 }
  0x86   : > { %1080 = vmatpush1.bf16.msra.mxu0 %v1613_v36  ;;  %1028 = vmatprep.subr.bf16.mxu1 %v1614_v37 }
  0x87   : > { %1081 = vmatprep.subr.bf16.mxu0 %v1616_v38  ;;  %v578_v38 = vld [vmem:[#allocation2 + $0x20] sm:$0xff] }
  0x89   : > { %1029 = vmatpush1.bf16.msra.mxu1 %v1618_v39 }
  0x8a   : > { %1082 = vmatpush1.bf16.msra.mxu0 %v1619_v40  ;;  %1030 = vmatprep.subr.bf16.mxu1 %v1620_v41 }
  0x8b   : > { %1083 = vmatprep.subr.bf16.mxu0 %v1622_v42  ;;  %v579_v42 = vld [vmem:[#allocation2 + $0x28] sm:$0xff] }
  0x8d   : > { %1031 = vmatpush1.bf16.msra.mxu1 %v1624_v43 }
  0x8e   : > { %1084 = vmatpush1.bf16.msra.mxu0 %v1625_v44  ;;  %1032 = vmatprep.subr.bf16.mxu1 %v1626_v45 }
  0x8f   : > { %1085 = vmatprep.subr.bf16.mxu0 %v1628_v46  ;;  %v580_v46 = vld [vmem:[#allocation2 + $0x30] sm:$0xff] }
  0x91   : > { %1033 = vmatpush1.bf16.msra.mxu1 %v1630_v47 }
  0x92   : > { %1086 = vmatpush1.bf16.msra.mxu0 %v1631_v48  ;;  %1034 = vmatprep.subr.bf16.mxu1 %v1632_v49 }
  0x93   : > { %1087 = vmatprep.subr.bf16.mxu0 %v1634_v50 }
  0x95   : > { %1035 = vmatpush1.bf16.msra.mxu1 %v1636_v51  ;;  %v581_v51 = vld [vmem:[#allocation2 + $0x38] sm:$0xff] }
  0x96   : > { %1088 = vmatpush1.bf16.msra.mxu0 %v1637_v52  ;;  %1036 = vmatprep.subr.bf16.mxu1 %v1638_v53 }
  0x97   : > { %1089 = vmatprep.subr.bf16.mxu0 %v1640_v54 }
  0x99   : > { %1037 = vmatpush1.bf16.msra.mxu1 %v1642_v55 }
  0x9a   : > { %1090 = vmatpush1.bf16.msra.mxu0 %v1643_v56  ;;  %1038 = vmatprep.subr.bf16.mxu1 %v1644_v57  ;;  %v1150_v57 = vlaneseq (!%p1458_p5) }
  0x9b   : > { %1091 = vmatprep.subr.bf16.mxu0 %v1646_v59  ;;  %v1148_v59 = vld [vmem:[%s558_s29] sm:$0x3] (!%p1458_p5) }
  0x9c   : > { %v1151_v58 = vshrl.u32 (!%p1458_p5), %v1150_v57, 7 }
  0x9d   : > { %1039 = vmatpush1.bf16.msra.mxu1 %v1648_v61 }
  0x9e   : > { %1092 = vmatpush1.bf16.msra.mxu0 %v1649_v62  ;;  %1040 = vmatprep.subr.bf16.mxu1 %v1650_v63  ;;  %v1152_v62 = vsub.s32 (!%p1458_p5), 0, %v1151_v58  ;;  %v1156_v63 = vsub.s32 (!%p1458_p5), 1, %v1151_v58 }
  0x9f   : > { %1093 = vmatprep.subr.bf16.mxu0 %v1652_v0 }
  0xa1   : > { %1041 = vmatpush1.bf16.msra.mxu1 %v1654_v1 }
  0xa2   : > { %1094 = vmatpush1.bf16.msra.mxu0 %v1655_v2  ;;  %1042 = vmatprep.subr.bf16.mxu1 %v1656_v3  ;;  %v1153_v3 = vrot.slane (!%p1458_p5), %v1148_v59, %v1152_v62 }
  0xa3   : > { %1095 = vmatprep.subr.bf16.mxu0 %v1658_v4  ;;  %v1157_v4 = vrot.slane (!%p1458_p5), %v1148_v59, %v1156_v63 }
  0xa5   : > { %1043 = vmatpush1.bf16.msra.mxu1 %v1660_v5 }
  0xa6   : > { %1096 = vmatpush1.bf16.msra.mxu0 %v1661_v6  ;;  %1044 = vmatprep.subr.bf16.mxu1 %v1662_v7 }
  0xa7   : > { %1097 = vmatprep.subr.bf16.mxu0 %v1664_v8 }
  0xa9   : > { %1045 = vmatpush1.bf16.msra.mxu1 %v1666_v9 }
  0xaa   : > { %1098 = vmatpush1.bf16.msra.mxu0 %v1667_v10 }
  0xac   : > { %1047 = vmatmul.mubr.bf16.vlgmr.msra.gmra.mrb[0].mxu1 %v1668_v11 }
  0xad   : > { %1100 = vmatmul.mubr.bf16.vlgmr.msra.gmra.mrb[0].mxu0 %v1671_v12  ;;  %1056 = vmatprep.mubr.bf16.mxu1 %v1674_v13 }
  0xae   : > { %1109 = vmatprep.mubr.bf16.mxu0 %v1676_v14 }
  0xb4   : > { %1057 = vmatmul.mubr.bf16.gmra.mrb[4].mxu1 %v1678_v15 }
  0xb5   : > { %1110 = vmatmul.mubr.bf16.gmra.mrb[4].mxu0 %v1679_v16 }
 0x17f   : > { %v1048_v17 = vpop.f32.mrb[0].mxu1 }
 0x180   : > { %v1101_v19 = vpop.f32.mrb[0].mxu0  ;;  %v1050_v21 = vpop.f32.mrb[1].mxu1 }
 0x181   : > { %v1102_v20 = vadd.f32 %v1101_v19, %v1048_v17  ;;  %v1103_v23 = vpop.f32.mrb[1].mxu0  ;;  %v1052_v25 = vpop.f32.mrb[2].mxu1 }
 0x182   : > { %v1104_v24 = vadd.f32 %v1103_v23, %v1050_v21  ;;  %v1105_v27 = vpop.f32.mrb[2].mxu0  ;;  %v1054_v30 = vpop.f32.mrb[3].mxu1 }
 0x183   : > { %v1120_v28 = vadd.f32 %v1102_v20, %v574_v18  ;;  %v1106_v29 = vadd.f32 %v1105_v27, %v1052_v25  ;;  %v1107_v32 = vpop.f32.mrb[3].mxu0 }
 0x184   : > { %v1121_v33 = vadd.f32 %v1104_v24, %v575_v22  ;;  %v1108_v34 = vadd.f32 %v1107_v32, %v1054_v30 }
 0x185   : > { %1128 = vst [vmem:[#allocation2] sm:$0xff] %v1120_v28  ;;  %v1122_v35 = vadd.f32 %v1106_v29, %v576_v26 }
 0x186   : > { %1129 = vst [vmem:[#allocation2 + $0x8] sm:$0xff] %v1121_v33  ;;  %v1123_v36 = vadd.f32 %v1108_v34, %v577_v31 }
 0x187   : > { %1130 = vst [vmem:[#allocation2 + $0x10] sm:$0xff] %v1122_v35  ;;  %v1058_v37 = vpop.f32.mrb[4].mxu1 }
 0x188   : > { %1131 = vst [vmem:[#allocation2 + $0x18] sm:$0xff] %v1123_v36  ;;  %v1111_v39 = vpop.f32.mrb[4].mxu0  ;;  %v1060_v41 = vpop.f32.mrb[5].mxu1 }
 0x189   : > { %v1112_v40 = vadd.f32 %v1111_v39, %v1058_v37  ;;  %v1113_v43 = vpop.f32.mrb[5].mxu0  ;;  %v1062_v45 = vpop.f32.mrb[6].mxu1 }
 0x18a   : > { %v1114_v44 = vadd.f32 %v1113_v43, %v1060_v41  ;;  %v1115_v47 = vpop.f32.mrb[6].mxu0  ;;  %v1064_v50 = vpop.f32.mrb[7].mxu1  ;;  %1139 = sbr.rel (%p1458_p5) target bundleno = 415 (0x19f), region = 101 }
 0x18b   : > { %v1124_v48 = vadd.f32 %v1112_v40, %v578_v38  ;;  %v1116_v49 = vadd.f32 %v1115_v47, %v1062_v45  ;;  %v1117_v52 = vpop.f32.mrb[7].mxu0 }
 0x18c   : > { %v1125_v53 = vadd.f32 %v1114_v44, %v579_v42  ;;  %v1118_v54 = vadd.f32 %v1117_v52, %v1064_v50  ;;  %v1140_v60 = vld [vmem:[#allocation2] sm:$0xff] (!%p1458_p5) }
 0x18d   : > { %1132 = vst [vmem:[#allocation2 + $0x20] sm:$0xff] %v1124_v48  ;;  %v1126_v55 = vadd.f32 %v1116_v49, %v580_v46  ;;  %v1141_v61 = vld [vmem:[#allocation2 + $0x8] sm:$0xff] (!%p1458_p5)  ;;  %v1160_v8 = vadd.f32 (!%p1458_p5), %v1153_v3, %v1140_v60 }
 0x18e   : > { %1133 = vst [vmem:[#allocation2 + $0x28] sm:$0xff] %v1125_v53  ;;  %v1127_v56 = vadd.f32 %v1118_v54, %v581_v51  ;;  %v1142_v0 = vld [vmem:[#allocation2 + $0x10] sm:$0xff] (!%p1458_p5)  ;;  %v1161_v9 = vadd.f32 (!%p1458_p5), %v1157_v4, %v1141_v61 }
 0x18f   : > { %1134 = vst [vmem:[#allocation2 + $0x30] sm:$0xff] %v1126_v55  ;;  %v1143_v1 = vld [vmem:[#allocation2 + $0x18] sm:$0xff] (!%p1458_p5)  ;;  %v1162_v10 = vadd.f32 (!%p1458_p5), %v1153_v3, %v1142_v0  ;;  %v1168_v16 = vmax.f32 (!%p1458_p5), %v1160_v8, 0.0 }
 0x190   : > { %1135 = vst [vmem:[#allocation2 + $0x38] sm:$0xff] %v1127_v56  ;;  %v1163_v11 = vadd.f32 (!%p1458_p5), %v1157_v4, %v1143_v1  ;;  %v1169_v17 = vmax.f32 (!%p1458_p5), %v1161_v9, 0.0 }
 0x191   : > { %v1170_v18 = vmax.f32 %v1162_v10, 0.0 }
 0x192   : > { %v1171_v19 = vmax.f32 %v1163_v11, 0.0  ;;  %v1470_v24 = vpack.c.bf16 %v1169_v17, %v1168_v16 }
 0x194   : > { %v1144_v2 = vld [vmem:[#allocation2 + $0x20] sm:$0xff]  ;;  %v1471_v25 = vpack.c.bf16 %v1171_v19, %v1170_v18  ;;  %1200 = vst [vmem:[%s2051_s1] sm:$0xff] %v1470_v24 }
 0x195   : > { %v1145_v5 = vld [vmem:[#allocation2 + $0x28] sm:$0xff]  ;;  %v1164_v12 = vadd.f32 %v1153_v3, %v1144_v2 }
 0x196   : > { %v1146_v6 = vld [vmem:[#allocation2 + $0x30] sm:$0xff]  ;;  %v1165_v13 = vadd.f32 %v1157_v4, %v1145_v5  ;;  %1201 = vst [vmem:[%s2051_s1 + $0x8] sm:$0xff] %v1471_v25 }
 0x197   : > { %v1147_v7 = vld [vmem:[#allocation2 + $0x38] sm:$0xff]  ;;  %v1166_v14 = vadd.f32 %v1153_v3, %v1146_v6  ;;  %v1172_v20 = vmax.f32 %v1164_v12, 0.0 }
 0x198   : > { %v1167_v15 = vadd.f32 %v1157_v4, %v1147_v7  ;;  %v1173_v21 = vmax.f32 %v1165_v13, 0.0 }
 0x199   : > { %v1174_v22 = vmax.f32 %v1166_v14, 0.0 }
 0x19a   : > { %v1175_v23 = vmax.f32 %v1167_v15, 0.0  ;;  %v1472_v26 = vpack.c.bf16 %v1173_v21, %v1172_v20 }
 0x19c   : > { %v1473_v27 = vpack.c.bf16 %v1175_v23, %v1174_v22  ;;  %1202 = vst [vmem:[%s2051_s1 + $0x10] sm:$0xff] %v1472_v26 }
 0x19e   : > { %1203 = vst [vmem:[%s2051_s1 + $0x18] sm:$0xff] %v1473_v27 }
 0x19f PF: > { %1210 = sbr.rel (!%p1883_p12) target bundleno = 423 (0x1a7), region = 105  ;;  %s1474_s16 = sshll.u32 (%p1883_p12), %s1754_s19, 3  ;;  %v1250_v28 = vld [vmem:[%s2051_s1] sm:$0xff] (%p1883_p12)  ;;  %v1252_v29 = vld [vmem:[%s2051_s1 + $0x8] sm:$0xff] (%p1883_p12) }
 0x1a0   : > { %s1216_s5 = scalar_lea.vmem (%p1883_p12), %s2182_s3, %s1474_s16 }
 0x1a1   : > { %1251 = vst [vmem:[%s1216_s5] sm:$0xff] (%p1883_p12), %v1250_v28  ;;  %1253 = vst [vmem:[%s1216_s5 + $0x10] sm:$0xff] (%p1883_p12), %v1252_v29 }
 0x1a3   : > { %v1254_v30 = vld [vmem:[%s2051_s1 + $0x10] sm:$0xff] (%p1883_p12) }
 0x1a4   : > { %1255 = vst [vmem:[%s1216_s5 + $0x20] sm:$0xff] (%p1883_p12), %v1254_v30 }
 0x1a5   : > { %v1256_v31 = vld [vmem:[%s2051_s1 + $0x18] sm:$0xff] (%p1883_p12) }
 0x1a6   : > { %1257 = vst [vmem:[%s1216_s5 + $0x30] sm:$0xff] %v1256_v31 }
 0x1a7 PF: > { %s13_s22 = sadd.s32 1, %s1766_s22   ;;  %s2192_s10 = sld [smem:[#allocation6_spill]] }
 0x1a8   : > { %p10_p6 = scmp.ge.s32.totalorder %s13_s22, 10   ;;  %s2193_s12 = smov %s1730_s13 }
 0x1a9   : > { %s2194_s13 = smov %s1881_s9  ;;  %s2195_s14 = smov %s1738_s15 }
 0x1aa   : > { %s2196_s15 = smov %s1878_s8  ;;  %s2197_s16 = smov %s1746_s17 }
 0x1ab   : > { %s2198_s17 = smov %s1864_s30  ;;  %s2199_s18 = smov %s1758_s20 }
 0x1ac   : > { %s2200_s19 = smov %s1762_s21  ;;  %s2201_s20 = smov %s2204_s24 }
 0x1ad   : > { %s2202_s21 = smov %s2192_s10  ;;  %12 = sbr.rel (!%p10_p6) target bundleno = 9 (0x9), region = 185 }

// kernel: f_classification_forward.14
= control target key start
LH: loop header
LB: loop body
LE: loop exit
PB: predicated region body
PF: predicated region fallthrough
CT: control target
= control target key end

     0   :  { %s1811_s15 = smov 0   ;;  %s1813_s16 = smov 0   ;;  %s2136_s0 = inlined_call_operand.vmem [shape: bf16[32,512], index: 0, kind: input, shape index: {}]   ;;  %s2137_s1 = inlined_call_operand.vmem [shape: bf16[512,2048], index: 1, kind: input, shape index: {}]   ;;  %s2138_s2 = inlined_call_operand.vmem [shape: f32[1,2048], index: 2, kind: input, shape index: {}]   ;;  %s2139_s3 = inlined_call_operand.vmem [shape: bf16[32,2048], index: 3, kind: input, shape index: {}]   ;;  %s2140_s4 = inlined_call_operand.vmem [shape: bf16[32,2048], index: 4, kind: output, shape index: {}]  }
   0x1   :  { %s1815_s17 = smov 0   ;;  %s1817_s18 = smov 0  }
   0x2   :  { %s1819_s19 = smov 0  }
   0x3 LB: > { %s29_s20 = sadd.s32 1, %s1780_s18  ;;  %s1486_s21 = sadd.s32 4294967295, %s1784_s19   ;;  %s1784_s19 = sphi %s1819_s19, %s14_s19   ;;  %s1780_s18 = sphi %s1817_s18, %s2146_s18   ;;  %s1776_s17 = sphi %s1815_s17, %s2145_s17   ;;  %s1772_s16 = sphi %s1813_s16, %s2144_s16   ;;  %s1768_s15 = sphi %s1811_s15, %s2143_s15  }
   0x4   : > { %p31_p0 = scmp.ge.s32.totalorder %s29_s20, 8  ;;  %p77_p1 = scmp.ne.s32.totalorder %s1772_s16, %s1768_s15 }
   0x5   : > { %p78_p2 = scmp.eq.s32.totalorder %s1784_s19, 0  ;;  %p163_p4 = scmp.eq.s32.totalorder %s1486_s21, 7 }
   0x6   : > { %s2148_s20 = smov (%p31_p0, %s29_s20), 0  ;;  %s70_s24 = sadd.s32 1, %s1772_s16 }
   0x7   : > { %p1843_p3 = por %p78_p2, %p77_p1  ;;  %s66_s23 = ssub.s32 %s1780_s18, %s2148_s20 }
   0x8   : > { %p68_p5 = scmp.eq.s32.totalorder %s66_s23, 0  ;;  %p1850_p6 = por %p163_p4, %p77_p1 }
   0x9   : > { %p1490_p7 = scmp.ge.s32.totalorder %s1784_s19, 8 }
   0xa   : > { %s1855_s26 = scalar_select %p68_p5, %s1772_s16, %s70_s24  }
   0xb   : > { %200 = sbr.rel (%p1490_p7) target bundleno = 94 (0x5e), region = 20 }
  0x12   : > { %203 = sbr.rel (!%p1843_p3) target bundleno = 86 (0x56), region = 24  ;;  %s205_s27 = sand.u32 (%p1843_p3), 1, %s1772_s16  }
  0x13   : > { %s1583_s28 = sshll.u32 (%p1843_p3), %s1780_s18, 3  ;;  %s1491_s29 = sshll.u32 (%p1843_p3), %s205_s27, 9 }
  0x14   : > { %s1865_s6 = scalar_lea.vmem (%p1843_p3), %s2137_s1, %s1583_s28  ;;  %s1870_s7 = scalar_lea.vmem (%p1843_p3), [#allocation3], %s1491_s29 }
  0x15   : > { %v367_v0 = vld [vmem:[%s1865_s6] sm:$0xff] (%p1843_p3) }
  0x16   : > { %v369_v1 = vld [vmem:[%s1865_s6 + $0x40] sm:$0xff] (%p1843_p3)  ;;  %368 = vst [vmem:[%s1870_s7] sm:$0xff] (%p1843_p3), %v367_v0 }
  0x17   : > { %v371_v2 = vld [vmem:[%s1865_s6 + $0x80] sm:$0xff] (%p1843_p3)  ;;  %370 = vst [vmem:[%s1870_s7 + $0x8] sm:$0xff] (%p1843_p3), %v369_v1 }
  0x18   : > { %372 = vst [vmem:[%s1870_s7 + $0x10] sm:$0xff] (%p1843_p3), %v371_v2  ;;  %v373_v3 = vld [vmem:[%s1865_s6 + $0xc0] sm:$0xff] (%p1843_p3) }
  0x19   : > { %v375_v4 = vld [vmem:[%s1865_s6 + $0x100] sm:$0xff]  ;;  %374 = vst [vmem:[%s1870_s7 + $0x18] sm:$0xff] %v373_v3 }
  0x1a   : > { %v377_v5 = vld [vmem:[%s1865_s6 + $0x140] sm:$0xff]  ;;  %376 = vst [vmem:[%s1870_s7 + $0x20] sm:$0xff] %v375_v4 }
  0x1b   : > { %378 = vst [vmem:[%s1870_s7 + $0x28] sm:$0xff] %v377_v5  ;;  %v379_v6 = vld [vmem:[%s1865_s6 + $0x180] sm:$0xff] }
  0x1c   : > { %v381_v7 = vld [vmem:[%s1865_s6 + $0x1c0] sm:$0xff]  ;;  %380 = vst [vmem:[%s1870_s7 + $0x30] sm:$0xff] %v379_v6 }
  0x1d   : > { %v383_v8 = vld [vmem:[%s1865_s6 + $0x200] sm:$0xff]  ;;  %382 = vst [vmem:[%s1870_s7 + $0x38] sm:$0xff] %v381_v7 }
  0x1e   : > { %384 = vst [vmem:[%s1870_s7 + $0x40] sm:$0xff] %v383_v8  ;;  %v385_v9 = vld [vmem:[%s1865_s6 + $0x240] sm:$0xff] }
  0x1f   : > { %v387_v10 = vld [vmem:[%s1865_s6 + $0x280] sm:$0xff]  ;;  %386 = vst [vmem:[%s1870_s7 + $0x48] sm:$0xff] %v385_v9 }
  0x20   : > { %v389_v11 = vld [vmem:[%s1865_s6 + $0x2c0] sm:$0xff]  ;;  %388 = vst [vmem:[%s1870_s7 + $0x50] sm:$0xff] %v387_v10 }
  0x21   : > { %390 = vst [vmem:[%s1870_s7 + $0x58] sm:$0xff] %v389_v11  ;;  %v391_v12 = vld [vmem:[%s1865_s6 + $0x300] sm:$0xff] }
  0x22   : > { %v393_v13 = vld [vmem:[%s1865_s6 + $0x340] sm:$0xff]  ;;  %392 = vst [vmem:[%s1870_s7 + $0x60] sm:$0xff] %v391_v12 }
  0x23   : > { %v395_v14 = vld [vmem:[%s1865_s6 + $0x380] sm:$0xff]  ;;  %394 = vst [vmem:[%s1870_s7 + $0x68] sm:$0xff] %v393_v13 }
  0x24   : > { %396 = vst [vmem:[%s1870_s7 + $0x70] sm:$0xff] %v395_v14  ;;  %v397_v15 = vld [vmem:[%s1865_s6 + $0x3c0] sm:$0xff] }
  0x25   : > { %v399_v16 = vld [vmem:[%s1865_s6 + $0x400] sm:$0xff]  ;;  %398 = vst [vmem:[%s1870_s7 + $0x78] sm:$0xff] %v397_v15 }
  0x26   : > { %v401_v17 = vld [vmem:[%s1865_s6 + $0x440] sm:$0xff]  ;;  %400 = vst [vmem:[%s1870_s7 + $0x80] sm:$0xff] %v399_v16 }
  0x27   : > { %402 = vst [vmem:[%s1870_s7 + $0x88] sm:$0xff] %v401_v17  ;;  %v403_v18 = vld [vmem:[%s1865_s6 + $0x480] sm:$0xff] }
  0x28   : > { %v405_v19 = vld [vmem:[%s1865_s6 + $0x4c0] sm:$0xff]  ;;  %404 = vst [vmem:[%s1870_s7 + $0x90] sm:$0xff] %v403_v18 }
  0x29   : > { %v407_v20 = vld [vmem:[%s1865_s6 + $0x500] sm:$0xff]  ;;  %406 = vst [vmem:[%s1870_s7 + $0x98] sm:$0xff] %v405_v19 }
  0x2a   : > { %408 = vst [vmem:[%s1870_s7 + $0xa0] sm:$0xff] %v407_v20  ;;  %v409_v21 = vld [vmem:[%s1865_s6 + $0x540] sm:$0xff] }
  0x2b   : > { %v411_v22 = vld [vmem:[%s1865_s6 + $0x580] sm:$0xff]  ;;  %410 = vst [vmem:[%s1870_s7 + $0xa8] sm:$0xff] %v409_v21 }
  0x2c   : > { %v413_v23 = vld [vmem:[%s1865_s6 + $0x5c0] sm:$0xff]  ;;  %412 = vst [vmem:[%s1870_s7 + $0xb0] sm:$0xff] %v411_v22 }
  0x2d   : > { %414 = vst [vmem:[%s1870_s7 + $0xb8] sm:$0xff] %v413_v23  ;;  %v415_v24 = vld [vmem:[%s1865_s6 + $0x600] sm:$0xff] }
  0x2e   : > { %v417_v25 = vld [vmem:[%s1865_s6 + $0x640] sm:$0xff]  ;;  %416 = vst [vmem:[%s1870_s7 + $0xc0] sm:$0xff] %v415_v24 }
  0x2f   : > { %v419_v26 = vld [vmem:[%s1865_s6 + $0x680] sm:$0xff]  ;;  %418 = vst [vmem:[%s1870_s7 + $0xc8] sm:$0xff] %v417_v25 }
  0x30   : > { %420 = vst [vmem:[%s1870_s7 + $0xd0] sm:$0xff] %v419_v26  ;;  %v421_v27 = vld [vmem:[%s1865_s6 + $0x6c0] sm:$0xff] }
  0x31   : > { %v423_v28 = vld [vmem:[%s1865_s6 + $0x700] sm:$0xff]  ;;  %422 = vst [vmem:[%s1870_s7 + $0xd8] sm:$0xff] %v421_v27 }
  0x32   : > { %v425_v29 = vld [vmem:[%s1865_s6 + $0x740] sm:$0xff]  ;;  %424 = vst [vmem:[%s1870_s7 + $0xe0] sm:$0xff] %v423_v28 }
  0x33   : > { %426 = vst [vmem:[%s1870_s7 + $0xe8] sm:$0xff] %v425_v29  ;;  %v427_v30 = vld [vmem:[%s1865_s6 + $0x780] sm:$0xff] }
  0x34   : > { %v429_v31 = vld [vmem:[%s1865_s6 + $0x7c0] sm:$0xff]  ;;  %428 = vst [vmem:[%s1870_s7 + $0xf0] sm:$0xff] %v427_v30 }
  0x35   : > { %v431_v32 = vld [vmem:[%s1865_s6 + $0x800] sm:$0xff]  ;;  %430 = vst [vmem:[%s1870_s7 + $0xf8] sm:$0xff] %v429_v31 }
  0x36   : > { %432 = vst [vmem:[%s1870_s7 + $0x100] sm:$0xff] %v431_v32  ;;  %v433_v33 = vld [vmem:[%s1865_s6 + $0x840] sm:$0xff] }
  0x37   : > { %v435_v34 = vld [vmem:[%s1865_s6 + $0x880] sm:$0xff]  ;;  %434 = vst [vmem:[%s1870_s7 + $0x108] sm:$0xff] %v433_v33 }
  0x38   : > { %v437_v35 = vld [vmem:[%s1865_s6 + $0x8c0] sm:$0xff]  ;;  %436 = vst [vmem:[%s1870_s7 + $0x110] sm:$0xff] %v435_v34 }
  0x39   : > { %438 = vst [vmem:[%s1870_s7 + $0x118] sm:$0xff] %v437_v35  ;;  %v439_v36 = vld [vmem:[%s1865_s6 + $0x900] sm:$0xff] }
  0x3a   : > { %v441_v37 = vld [vmem:[%s1865_s6 + $0x940] sm:$0xff]  ;;  %440 = vst [vmem:[%s1870_s7 + $0x120] sm:$0xff] %v439_v36 }
  0x3b   : > { %v443_v38 = vld [vmem:[%s1865_s6 + $0x980] sm:$0xff]  ;;  %442 = vst [vmem:[%s1870_s7 + $0x128] sm:$0xff] %v441_v37 }
  0x3c   : > { %444 = vst [vmem:[%s1870_s7 + $0x130] sm:$0xff] %v443_v38  ;;  %v445_v39 = vld [vmem:[%s1865_s6 + $0x9c0] sm:$0xff] }
  0x3d   : > { %v447_v40 = vld [vmem:[%s1865_s6 + $0xa00] sm:$0xff]  ;;  %446 = vst [vmem:[%s1870_s7 + $0x138] sm:$0xff] %v445_v39 }
  0x3e   : > { %v449_v41 = vld [vmem:[%s1865_s6 + $0xa40] sm:$0xff]  ;;  %448 = vst [vmem:[%s1870_s7 + $0x140] sm:$0xff] %v447_v40 }
  0x3f   : > { %450 = vst [vmem:[%s1870_s7 + $0x148] sm:$0xff] %v449_v41  ;;  %v451_v42 = vld [vmem:[%s1865_s6 + $0xa80] sm:$0xff] }
  0x40   : > { %v453_v43 = vld [vmem:[%s1865_s6 + $0xac0] sm:$0xff]  ;;  %452 = vst [vmem:[%s1870_s7 + $0x150] sm:$0xff] %v451_v42 }
  0x41   : > { %v455_v44 = vld [vmem:[%s1865_s6 + $0xb00] sm:$0xff]  ;;  %454 = vst [vmem:[%s1870_s7 + $0x158] sm:$0xff] %v453_v43 }
  0x42   : > { %456 = vst [vmem:[%s1870_s7 + $0x160] sm:$0xff] %v455_v44  ;;  %v457_v45 = vld [vmem:[%s1865_s6 + $0xb40] sm:$0xff] }
  0x43   : > { %v459_v46 = vld [vmem:[%s1865_s6 + $0xb80] sm:$0xff]  ;;  %458 = vst [vmem:[%s1870_s7 + $0x168] sm:$0xff] %v457_v45 }
  0x44   : > { %v461_v47 = vld [vmem:[%s1865_s6 + $0xbc0] sm:$0xff]  ;;  %460 = vst [vmem:[%s1870_s7 + $0x170] sm:$0xff] %v459_v46 }
  0x45   : > { %462 = vst [vmem:[%s1870_s7 + $0x178] sm:$0xff] %v461_v47  ;;  %v463_v48 = vld [vmem:[%s1865_s6 + $0xc00] sm:$0xff] }
  0x46   : > { %v465_v49 = vld [vmem:[%s1865_s6 + $0xc40] sm:$0xff]  ;;  %464 = vst [vmem:[%s1870_s7 + $0x180] sm:$0xff] %v463_v48 }
  0x47   : > { %v467_v50 = vld [vmem:[%s1865_s6 + $0xc80] sm:$0xff]  ;;  %466 = vst [vmem:[%s1870_s7 + $0x188] sm:$0xff] %v465_v49 }
  0x48   : > { %468 = vst [vmem:[%s1870_s7 + $0x190] sm:$0xff] %v467_v50  ;;  %v469_v51 = vld [vmem:[%s1865_s6 + $0xcc0] sm:$0xff] }
  0x49   : > { %v471_v52 = vld [vmem:[%s1865_s6 + $0xd00] sm:$0xff]  ;;  %470 = vst [vmem:[%s1870_s7 + $0x198] sm:$0xff] %v469_v51 }
  0x4a   : > { %v473_v53 = vld [vmem:[%s1865_s6 + $0xd40] sm:$0xff]  ;;  %472 = vst [vmem:[%s1870_s7 + $0x1a0] sm:$0xff] %v471_v52 }
  0x4b   : > { %474 = vst [vmem:[%s1870_s7 + $0x1a8] sm:$0xff] %v473_v53  ;;  %v475_v54 = vld [vmem:[%s1865_s6 + $0xd80] sm:$0xff] }
  0x4c   : > { %v477_v55 = vld [vmem:[%s1865_s6 + $0xdc0] sm:$0xff]  ;;  %476 = vst [vmem:[%s1870_s7 + $0x1b0] sm:$0xff] %v475_v54 }
  0x4d   : > { %v479_v56 = vld [vmem:[%s1865_s6 + $0xe00] sm:$0xff]  ;;  %478 = vst [vmem:[%s1870_s7 + $0x1b8] sm:$0xff] %v477_v55 }
  0x4e   : > { %480 = vst [vmem:[%s1870_s7 + $0x1c0] sm:$0xff] %v479_v56  ;;  %v481_v57 = vld [vmem:[%s1865_s6 + $0xe40] sm:$0xff] }
  0x4f   : > { %v483_v58 = vld [vmem:[%s1865_s6 + $0xe80] sm:$0xff]  ;;  %482 = vst [vmem:[%s1870_s7 + $0x1c8] sm:$0xff] %v481_v57 }
  0x50   : > { %v485_v59 = vld [vmem:[%s1865_s6 + $0xec0] sm:$0xff]  ;;  %484 = vst [vmem:[%s1870_s7 + $0x1d0] sm:$0xff] %v483_v58 }
  0x51   : > { %486 = vst [vmem:[%s1870_s7 + $0x1d8] sm:$0xff] %v485_v59  ;;  %v487_v60 = vld [vmem:[%s1865_s6 + $0xf00] sm:$0xff] }
  0x52   : > { %v489_v61 = vld [vmem:[%s1865_s6 + $0xf40] sm:$0xff]  ;;  %488 = vst [vmem:[%s1870_s7 + $0x1e0] sm:$0xff] %v487_v60 }
  0x53   : > { %v491_v62 = vld [vmem:[%s1865_s6 + $0xf80] sm:$0xff]  ;;  %490 = vst [vmem:[%s1870_s7 + $0x1e8] sm:$0xff] %v489_v61 }
  0x54   : > { %492 = vst [vmem:[%s1870_s7 + $0x1f0] sm:$0xff] %v491_v62  ;;  %v493_v63 = vld [vmem:[%s1865_s6 + $0xfc0] sm:$0xff] }
  0x55   : > { %494 = vst [vmem:[%s1870_s7 + $0x1f8] sm:$0xff] %v493_v63 }
  0x56 PF: > { %508 = sbr.rel (!%p1843_p3) target bundleno = 94 (0x5e), region = 66  ;;  %s510_s8 = sand.u32 (%p1843_p3), 1, %s1772_s16  }
  0x57   : > { %s1584_s9 = sshll.u32 (%p1843_p3), %s1780_s18, 3  ;;  %s1494_s10 = sshll.u32 (%p1843_p3), %s510_s8, 5 }
  0x58   : > { %s518_s13 = scalar_lea.vmem (%p1843_p3), %s2139_s3, %s1584_s9  ;;  %s512_s14 = scalar_lea.vmem (%p1843_p3), [#allocation4], %s1494_s10 }
  0x59   : > { %v552_v0 = vld [vmem:[%s518_s13] sm:$0xff] (%p1843_p3) }
  0x5a   : > { %v554_v1 = vld [vmem:[%s518_s13 + $0x40] sm:$0xff] (%p1843_p3)  ;;  %553 = vst [vmem:[%s512_s14] sm:$0xff] (%p1843_p3), %v552_v0 }
  0x5b   : > { %v556_v2 = vld [vmem:[%s518_s13 + $0x80] sm:$0xff] (%p1843_p3)  ;;  %555 = vst [vmem:[%s512_s14 + $0x8] sm:$0xff] (%p1843_p3), %v554_v1 }
  0x5c   : > { %557 = vst [vmem:[%s512_s14 + $0x10] sm:$0xff] (%p1843_p3), %v556_v2  ;;  %v558_v3 = vld [vmem:[%s518_s13 + $0xc0] sm:$0xff] (%p1843_p3) }
  0x5d   : > { %559 = vst [vmem:[%s512_s14 + $0x18] sm:$0xff] %v558_v3 }
  0x5e PF: > { %p1497_p8 = scmp.ge.s32.totalorder %s1784_s19, 1  ;;  %p564_p9 = scmp.lt.s32.totalorder %s1784_s19, 9 }
  0x60   : > { %p565_p10 = pnand %p1497_p8, %p564_p9 }
  0x61   : > { %s571_s21 = sand.u32 (!%p565_p10), 1, %s1768_s15   ;;  %v1736_v4 = vld [vmem:[%s2136_s0 + $0x4] ss:$16 sps:$4 sm:$0xff] (!%p565_p10)   ;;  %v1739_v5 = vld [vmem:[%s2136_s0 + $0xc] ss:$16 sps:$4 sm:$0xff] (!%p565_p10)   ;;  %s1501_s23 = sshll.u32 (!%p565_p10), %s1776_s17, 1 }
  0x62   : > { %568 = sbr.rel (%p565_p10) target bundleno = 408 (0x198), region = 104  ;;  %s1498_s22 = sshll.u32 (!%p565_p10), %s571_s21, 9  ;;  %1127 = vmatprep.mubr.bf16.mxu1 (!%p565_p10), %v1736_v4  ;;  %1180 = vmatprep.mubr.bf16.mxu0 (!%p565_p10), %v1739_v5 }
  0x63   : > { %s2015_s29 = scalar_lea.vmem (!%p565_p10), [#allocation3], %s1498_s22  ;;  %p635_p11 = scmp.lt.s32.totalorder (!%p565_p10), %s1501_s23, 15 }
  0x64   : > { %v1638_v6 = vld [vmem:[%s2015_s29 + $0x4] ss:$8 sps:$4 sm:$0xff] (!%p565_p10)   ;;  %v1642_v8 = vld [vmem:[%s2015_s29] ss:$8 sps:$4 sm:$0xff] (!%p565_p10)   ;;  %v1644_v10 = vld [vmem:[%s2015_s29 + $0x14] ss:$8 sps:$4 sm:$0xff] (!%p565_p10)  }
  0x65   : > { %v1640_v7 = vld [vmem:[%s2015_s29 + $0x104] ss:$8 sps:$4 sm:$0xff] (!%p565_p10)   ;;  %1095 = vmatprep.subr.bf16.mxu1 (!%p565_p10), %v1638_v6  ;;  %v1643_v9 = vld [vmem:[%s2015_s29 + $0x100] ss:$8 sps:$4 sm:$0xff] (!%p565_p10)   ;;  %v1646_v11 = vld [vmem:[%s2015_s29 + $0x114] ss:$8 sps:$4 sm:$0xff] (!%p565_p10)  }
  0x66   : > { %1148 = vmatprep.subr.bf16.mxu0 (!%p565_p10), %v1640_v7  ;;  %1096 = vmatpush1.bf16.msra.mxu1 (!%p565_p10), %v1642_v8  ;;  %v1648_v12 = vld [vmem:[%s2015_s29 + $0x10] ss:$8 sps:$4 sm:$0xff] (!%p565_p10)   ;;  %v1650_v14 = vld [vmem:[%s2015_s29 + $0x24] ss:$8 sps:$4 sm:$0xff] (!%p565_p10)   ;;  %v1654_v16 = vld [vmem:[%s2015_s29 + $0x20] ss:$8 sps:$4 sm:$0xff] (!%p565_p10)  }
  0x67   : > { %1149 = vmatpush1.bf16.msra.mxu0 (!%p565_p10), %v1643_v9  ;;  %1097 = vmatprep.subr.bf16.mxu1 (!%p565_p10), %v1644_v10  ;;  %v1649_v13 = vld [vmem:[%s2015_s29 + $0x110] ss:$8 sps:$4 sm:$0xff] (!%p565_p10)   ;;  %v1652_v15 = vld [vmem:[%s2015_s29 + $0x124] ss:$8 sps:$4 sm:$0xff] (!%p565_p10)   ;;  %v1655_v17 = vld [vmem:[%s2015_s29 + $0x120] ss:$8 sps:$4 sm:$0xff] (!%p565_p10)  }
  0x68   : > { %1150 = vmatprep.subr.bf16.mxu0 (!%p565_p10), %v1646_v11  ;;  %v1656_v18 = vld [vmem:[%s2015_s29 + $0x34] ss:$8 sps:$4 sm:$0xff] (!%p565_p10)   ;;  %v1660_v20 = vld [vmem:[%s2015_s29 + $0x30] ss:$8 sps:$4 sm:$0xff] (!%p565_p10)   ;;  %v1662_v22 = vld [vmem:[%s2015_s29 + $0x44] ss:$8 sps:$4 sm:$0xff] (!%p565_p10)  }
  0x69   : > { %v1658_v19 = vld [vmem:[%s2015_s29 + $0x134] ss:$8 sps:$4 sm:$0xff]   ;;  %v1661_v21 = vld [vmem:[%s2015_s29 + $0x130] ss:$8 sps:$4 sm:$0xff]   ;;  %v1664_v23 = vld [vmem:[%s2015_s29 + $0x144] ss:$8 sps:$4 sm:$0xff]  }
  0x6a   : > { %1098 = vmatpush1.bf16.msra.mxu1 %v1648_v12  ;;  %v1666_v24 = vld [vmem:[%s2015_s29 + $0x40] ss:$8 sps:$4 sm:$0xff]   ;;  %v1668_v26 = vld [vmem:[%s2015_s29 + $0x54] ss:$8 sps:$4 sm:$0xff]   ;;  %v1672_v28 = vld [vmem:[%s2015_s29 + $0x50] ss:$8 sps:$4 sm:$0xff]   ;;  %v1230_v12 = vlaneseq }
  0x6b   : > { %1151 = vmatpush1.bf16.msra.mxu0 %v1649_v13  ;;  %1099 = vmatprep.subr.bf16.mxu1 %v1650_v14  ;;  %v1667_v25 = vld [vmem:[%s2015_s29 + $0x140] ss:$8 sps:$4 sm:$0xff]   ;;  %v1670_v27 = vld [vmem:[%s2015_s29 + $0x154] ss:$8 sps:$4 sm:$0xff]   ;;  %v1673_v29 = vld [vmem:[%s2015_s29 + $0x150] ss:$8 sps:$4 sm:$0xff]  }
  0x6c   : > { %1152 = vmatprep.subr.bf16.mxu0 %v1652_v15  ;;  %v1674_v30 = vld [vmem:[%s2015_s29 + $0x64] ss:$8 sps:$4 sm:$0xff]   ;;  %v1678_v32 = vld [vmem:[%s2015_s29 + $0x60] ss:$8 sps:$4 sm:$0xff]   ;;  %v1680_v34 = vld [vmem:[%s2015_s29 + $0x74] ss:$8 sps:$4 sm:$0xff]  }
  0x6d   : > { %v1676_v31 = vld [vmem:[%s2015_s29 + $0x164] ss:$8 sps:$4 sm:$0xff]   ;;  %v1679_v33 = vld [vmem:[%s2015_s29 + $0x160] ss:$8 sps:$4 sm:$0xff]   ;;  %v1682_v35 = vld [vmem:[%s2015_s29 + $0x174] ss:$8 sps:$4 sm:$0xff]  }
  0x6e   : > { %1100 = vmatpush1.bf16.msra.mxu1 %v1654_v16  ;;  %v1684_v36 = vld [vmem:[%s2015_s29 + $0x70] ss:$8 sps:$4 sm:$0xff]   ;;  %v1686_v38 = vld [vmem:[%s2015_s29 + $0x84] ss:$8 sps:$4 sm:$0xff]   ;;  %v1690_v40 = vld [vmem:[%s2015_s29 + $0x80] ss:$8 sps:$4 sm:$0xff]  }
  0x6f   : > { %1153 = vmatpush1.bf16.msra.mxu0 %v1655_v17  ;;  %1101 = vmatprep.subr.bf16.mxu1 %v1656_v18  ;;  %v1685_v37 = vld [vmem:[%s2015_s29 + $0x170] ss:$8 sps:$4 sm:$0xff]   ;;  %v1688_v39 = vld [vmem:[%s2015_s29 + $0x184] ss:$8 sps:$4 sm:$0xff]   ;;  %v1691_v41 = vld [vmem:[%s2015_s29 + $0x180] ss:$8 sps:$4 sm:$0xff]  }
  0x70   : > { %1154 = vmatprep.subr.bf16.mxu0 %v1658_v19  ;;  %v1692_v42 = vld [vmem:[%s2015_s29 + $0x94] ss:$8 sps:$4 sm:$0xff]   ;;  %v1696_v44 = vld [vmem:[%s2015_s29 + $0x90] ss:$8 sps:$4 sm:$0xff]   ;;  %v1698_v46 = vld [vmem:[%s2015_s29 + $0xa4] ss:$8 sps:$4 sm:$0xff]  }
  0x71   : > { %v1694_v43 = vld [vmem:[%s2015_s29 + $0x194] ss:$8 sps:$4 sm:$0xff]   ;;  %v1697_v45 = vld [vmem:[%s2015_s29 + $0x190] ss:$8 sps:$4 sm:$0xff]   ;;  %v1700_v47 = vld [vmem:[%s2015_s29 + $0x1a4] ss:$8 sps:$4 sm:$0xff]  }
  0x72   : > { %1102 = vmatpush1.bf16.msra.mxu1 %v1660_v20  ;;  %v1702_v48 = vld [vmem:[%s2015_s29 + $0xa0] ss:$8 sps:$4 sm:$0xff]   ;;  %v1704_v50 = vld [vmem:[%s2015_s29 + $0xb4] ss:$8 sps:$4 sm:$0xff]   ;;  %v1708_v52 = vld [vmem:[%s2015_s29 + $0xb0] ss:$8 sps:$4 sm:$0xff]  }
  0x73   : > { %1155 = vmatpush1.bf16.msra.mxu0 %v1661_v21  ;;  %1103 = vmatprep.subr.bf16.mxu1 %v1662_v22  ;;  %v1703_v49 = vld [vmem:[%s2015_s29 + $0x1a0] ss:$8 sps:$4 sm:$0xff]   ;;  %v1706_v51 = vld [vmem:[%s2015_s29 + $0x1b4] ss:$8 sps:$4 sm:$0xff]   ;;  %v1709_v53 = vld [vmem:[%s2015_s29 + $0x1b0] ss:$8 sps:$4 sm:$0xff]  }
  0x74   : > { %1156 = vmatprep.subr.bf16.mxu0 %v1664_v23  ;;  %v1710_v54 = vld [vmem:[%s2015_s29 + $0xc4] ss:$8 sps:$4 sm:$0xff]   ;;  %v1714_v56 = vld [vmem:[%s2015_s29 + $0xc0] ss:$8 sps:$4 sm:$0xff]   ;;  %v1716_v58 = vld [vmem:[%s2015_s29 + $0xd4] ss:$8 sps:$4 sm:$0xff]  }
  0x75   : > { %v1712_v55 = vld [vmem:[%s2015_s29 + $0x1c4] ss:$8 sps:$4 sm:$0xff]   ;;  %v1715_v57 = vld [vmem:[%s2015_s29 + $0x1c0] ss:$8 sps:$4 sm:$0xff]   ;;  %v1718_v59 = vld [vmem:[%s2015_s29 + $0x1d4] ss:$8 sps:$4 sm:$0xff]  }
  0x76   : > { %1104 = vmatpush1.bf16.msra.mxu1 %v1666_v24  ;;  %v1720_v60 = vld [vmem:[%s2015_s29 + $0xd0] ss:$8 sps:$4 sm:$0xff]   ;;  %v1722_v62 = vld [vmem:[%s2015_s29 + $0xe4] ss:$8 sps:$4 sm:$0xff]   ;;  %v1726_v0 = vld [vmem:[%s2015_s29 + $0xe0] ss:$8 sps:$4 sm:$0xff]  }
  0x77   : > { %1157 = vmatpush1.bf16.msra.mxu0 %v1667_v25  ;;  %1105 = vmatprep.subr.bf16.mxu1 %v1668_v26  ;;  %v1721_v61 = vld [vmem:[%s2015_s29 + $0x1d0] ss:$8 sps:$4 sm:$0xff]   ;;  %v1724_v63 = vld [vmem:[%s2015_s29 + $0x1e4] ss:$8 sps:$4 sm:$0xff]   ;;  %v1727_v1 = vld [vmem:[%s2015_s29 + $0x1e0] ss:$8 sps:$4 sm:$0xff]  }
  0x78   : > { %1158 = vmatprep.subr.bf16.mxu0 %v1670_v27  ;;  %v1728_v2 = vld [vmem:[%s2015_s29 + $0xf4] ss:$8 sps:$4 sm:$0xff]   ;;  %v1732_v4 = vld [vmem:[%s2015_s29 + $0xf0] ss:$8 sps:$4 sm:$0xff]   ;;  %s2150_s23 = smov (!%p635_p11, %s1501_s23), 15  ;;  %v1231_v13 = vshrl.u32 %v1230_v12, 7 }
  0x79   : > { %v1730_v3 = vld [vmem:[%s2015_s29 + $0x1f4] ss:$8 sps:$4 sm:$0xff]   ;;  %v1733_v5 = vld [vmem:[%s2015_s29 + $0x1f0] ss:$8 sps:$4 sm:$0xff]   ;;  %s2102_s24 = sshll.u32 %s571_s21, 5  ;;  %s637_s29 = scalar_lea.vmem %s2138_s2, %s2150_s23 }
  0x7a   : > { %1106 = vmatpush1.bf16.msra.mxu1 %v1672_v28  ;;  %v1734_v6 = vld [vmem:[%s2136_s0] ss:$16 sps:$4 sm:$0xff]   ;;  %v1737_v7 = vld [vmem:[%s2136_s0 + $0x8] ss:$16 sps:$4 sm:$0xff]   ;;  %v1740_v8 = vld [vmem:[%s2136_s0 + $0x24] ss:$16 sps:$4 sm:$0xff]  }
  0x7b   : > { %1159 = vmatpush1.bf16.msra.mxu0 %v1673_v29  ;;  %1107 = vmatprep.subr.bf16.mxu1 %v1674_v30  ;;  %v1742_v9 = vld [vmem:[%s2136_s0 + $0x2c] ss:$16 sps:$4 sm:$0xff]   ;;  %v1744_v10 = vld [vmem:[%s2136_s0 + $0x20] ss:$16 sps:$4 sm:$0xff]   ;;  %v1745_v11 = vld [vmem:[%s2136_s0 + $0x28] ss:$16 sps:$4 sm:$0xff]  }
  0x7c   : > { %1160 = vmatprep.subr.bf16.mxu0 %v1676_v31  ;;  %v1232_v14 = vsub.s32 0, %v1231_v13  ;;  %v1228_v15 = vld [vmem:[%s637_s29] sm:$0x3]  ;;  %v1236_v16 = vsub.s32 1, %v1231_v13  ;;  %s2108_s30 = scalar_lea.vmem [#allocation4], %s2102_s24  ;;  %s619_s15 = scalar_lea.vmem [#allocation5], %s2102_s24 }
  0x7d   : > { %v1248_v17 = vld [vmem:[%s2108_s30] sm:$0xff]  ;;  %v1249_v22 = vld [vmem:[%s2108_s30 + $0x8] sm:$0xff]  ;;  %s1589_s21 = sshll.u32 (%p1850_p6), %s1776_s17, 3 }
  0x7e   : > { %1108 = vmatpush1.bf16.msra.mxu1 %v1678_v32  ;;  %v1233_v18 = vrot.slane %v1228_v15, %v1232_v14  ;;  %v1237_v21 = vrot.slane %v1228_v15, %v1236_v16  ;;  %v1252_v24 = vunpack.c.l.bf16 %v1248_v17  ;;  %v1253_v28 = vunpack.c.h.bf16 %v1248_v17  ;;  %s1316_s7 = scalar_lea.vmem (%p1850_p6), %s2140_s4, %s1589_s21 }
  0x7f   : > { %1161 = vmatpush1.bf16.msra.mxu0 %v1679_v33  ;;  %1109 = vmatprep.subr.bf16.mxu1 %v1680_v34  ;;  %v1254_v33 = vunpack.c.l.bf16 %v1249_v22 }
  0x80   : > { %1162 = vmatprep.subr.bf16.mxu0 %v1682_v35 }
  0x82   : > { %1110 = vmatpush1.bf16.msra.mxu1 %v1684_v36 }
  0x83   : > { %1163 = vmatpush1.bf16.msra.mxu0 %v1685_v37  ;;  %1111 = vmatprep.subr.bf16.mxu1 %v1686_v38  ;;  %v1255_v38 = vunpack.c.h.bf16 %v1249_v22 }
  0x84   : > { %1164 = vmatprep.subr.bf16.mxu0 %v1688_v39 }
  0x86   : > { %1112 = vmatpush1.bf16.msra.mxu1 %v1690_v40 }
  0x87   : > { %1165 = vmatpush1.bf16.msra.mxu0 %v1691_v41  ;;  %1113 = vmatprep.subr.bf16.mxu1 %v1692_v42 }
  0x88   : > { %1166 = vmatprep.subr.bf16.mxu0 %v1694_v43  ;;  %v1250_v43 = vld [vmem:[%s2108_s30 + $0x10] sm:$0xff] }
  0x8a   : > { %1114 = vmatpush1.bf16.msra.mxu1 %v1696_v44 }
  0x8b   : > { %1167 = vmatpush1.bf16.msra.mxu0 %v1697_v45  ;;  %1115 = vmatprep.subr.bf16.mxu1 %v1698_v46 }
  0x8c   : > { %1168 = vmatprep.subr.bf16.mxu0 %v1700_v47 }
  0x8e   : > { %1116 = vmatpush1.bf16.msra.mxu1 %v1702_v48 }
  0x8f   : > { %1169 = vmatpush1.bf16.msra.mxu0 %v1703_v49  ;;  %1117 = vmatprep.subr.bf16.mxu1 %v1704_v50  ;;  %v1251_v50 = vld [vmem:[%s2108_s30 + $0x18] sm:$0xff] }
  0x90   : > { %1170 = vmatprep.subr.bf16.mxu0 %v1706_v51 }
  0x92   : > { %1118 = vmatpush1.bf16.msra.mxu1 %v1708_v52 }
  0x93   : > { %1171 = vmatpush1.bf16.msra.mxu0 %v1709_v53  ;;  %1119 = vmatprep.subr.bf16.mxu1 %v1710_v54  ;;  %v1256_v53 = vunpack.c.l.bf16 %v1250_v43 }
  0x94   : > { %1172 = vmatprep.subr.bf16.mxu0 %v1712_v55 }
  0x96   : > { %1120 = vmatpush1.bf16.msra.mxu1 %v1714_v56 }
  0x97   : > { %1173 = vmatpush1.bf16.msra.mxu0 %v1715_v57  ;;  %1121 = vmatprep.subr.bf16.mxu1 %v1716_v58 }
  0x98   : > { %1174 = vmatprep.subr.bf16.mxu0 %v1718_v59  ;;  %v1257_v59 = vunpack.c.h.bf16 %v1250_v43 }
  0x9a   : > { %1122 = vmatpush1.bf16.msra.mxu1 %v1720_v60 }
  0x9b   : > { %1175 = vmatpush1.bf16.msra.mxu0 %v1721_v61  ;;  %1123 = vmatprep.subr.bf16.mxu1 %v1722_v62 }
  0x9c   : > { %1176 = vmatprep.subr.bf16.mxu0 %v1724_v63 }
  0x9e   : > { %1124 = vmatpush1.bf16.msra.mxu1 %v1726_v0  ;;  %v1258_v0 = vunpack.c.l.bf16 %v1251_v50 }
  0x9f   : > { %1177 = vmatpush1.bf16.msra.mxu0 %v1727_v1  ;;  %1125 = vmatprep.subr.bf16.mxu1 %v1728_v2 }
  0xa0   : > { %1178 = vmatprep.subr.bf16.mxu0 %v1730_v3 }
  0xa2   : > { %1126 = vmatpush1.bf16.msra.mxu1 %v1732_v4 }
  0xa3   : > { %1179 = vmatpush1.bf16.msra.mxu0 %v1733_v5 }
  0xa5   : > { %1128 = vmatmul.mubr.bf16.vlgmr.msra.gmra.mrb[0].mxu1 %v1734_v6  ;;  %v1259_v6 = vunpack.c.h.bf16 %v1251_v50 }
  0xa6   : > { %1181 = vmatmul.mubr.bf16.vlgmr.msra.gmra.mrb[0].mxu0 %v1737_v7  ;;  %1137 = vmatprep.mubr.bf16.mxu1 %v1740_v8 }
  0xa7   : > { %1190 = vmatprep.mubr.bf16.mxu0 %v1742_v9 }
  0xad   : > { %1138 = vmatmul.mubr.bf16.gmra.mrb[4].mxu1 %v1744_v10 }
  0xae   : > { %1191 = vmatmul.mubr.bf16.gmra.mrb[4].mxu0 %v1745_v11 }
 0x178   : > { %v1129_v19 = vpop.f32.mrb[0].mxu1 }
 0x179   : > { %v1182_v20 = vpop.f32.mrb[0].mxu0  ;;  %v1131_v25 = vpop.f32.mrb[1].mxu1 }
 0x17a   : > { %v1183_v23 = vadd.f32 %v1182_v20, %v1129_v19  ;;  %v1184_v26 = vpop.f32.mrb[1].mxu0  ;;  %v1133_v29 = vpop.f32.mrb[2].mxu1 }
 0x17b   : > { %v1185_v27 = vadd.f32 %v1184_v26, %v1131_v25  ;;  %v1186_v30 = vpop.f32.mrb[2].mxu0  ;;  %v1135_v34 = vpop.f32.mrb[3].mxu1 }
 0x17c   : > { %v1240_v31 = vadd.f32 %v1233_v18, %v1183_v23  ;;  %v1187_v32 = vadd.f32 %v1186_v30, %v1133_v29  ;;  %v1188_v35 = vpop.f32.mrb[3].mxu0 }
 0x17d   : > { %v1241_v36 = vadd.f32 %v1237_v21, %v1185_v27  ;;  %v1189_v37 = vadd.f32 %v1188_v35, %v1135_v34 }
 0x17e   : > { %v1260_v39 = vadd.f32 %v1252_v24, %v1240_v31  ;;  %v1242_v40 = vadd.f32 %v1233_v18, %v1187_v32 }
 0x17f   : > { %v1261_v41 = vadd.f32 %v1253_v28, %v1241_v36  ;;  %v1243_v42 = vadd.f32 %v1237_v21, %v1189_v37 }
 0x180   : > { %v1268_v44 = vmax.f32 %v1260_v39, 0.0  ;;  %v1262_v45 = vadd.f32 %v1254_v33, %v1242_v40  ;;  %v1139_v48 = vpop.f32.mrb[4].mxu1 }
 0x181   : > { %v1269_v46 = vmax.f32 %v1261_v41, 0.0  ;;  %v1263_v47 = vadd.f32 %v1255_v38, %v1243_v42  ;;  %v1192_v49 = vpop.f32.mrb[4].mxu0  ;;  %v1141_v54 = vpop.f32.mrb[5].mxu1 }
 0x182   : > { %v1270_v51 = vmax.f32 %v1262_v45, 0.0  ;;  %v1193_v52 = vadd.f32 %v1192_v49, %v1139_v48  ;;  %v1194_v55 = vpop.f32.mrb[5].mxu0  ;;  %v1143_v60 = vpop.f32.mrb[6].mxu1 }
 0x183   : > { %v1585_v56 = vpack.c.bf16 %v1269_v46, %v1268_v44  ;;  %v1271_v57 = vmax.f32 %v1263_v47, 0.0  ;;  %v1195_v58 = vadd.f32 %v1194_v55, %v1141_v54  ;;  %v1196_v61 = vpop.f32.mrb[6].mxu0  ;;  %v1145_v1 = vpop.f32.mrb[7].mxu1 }
 0x184   : > { %v1244_v62 = vadd.f32 %v1233_v18, %v1193_v52  ;;  %v1197_v63 = vadd.f32 %v1196_v61, %v1143_v60  ;;  %v1198_v2 = vpop.f32.mrb[7].mxu0 }
 0x185   : > { %1300 = vst [vmem:[%s619_s15] sm:$0xff] %v1585_v56  ;;  %v1586_v3 = vpack.c.bf16 %v1271_v57, %v1270_v51  ;;  %v1245_v4 = vadd.f32 %v1237_v21, %v1195_v58  ;;  %v1199_v5 = vadd.f32 %v1198_v2, %v1145_v1 }
 0x186   : > { %v1264_v7 = vadd.f32 %v1256_v53, %v1244_v62  ;;  %v1246_v8 = vadd.f32 %v1233_v18, %v1197_v63 }
 0x187   : > { %1301 = vst [vmem:[%s619_s15 + $0x8] sm:$0xff] %v1586_v3  ;;  %v1265_v9 = vadd.f32 %v1257_v59, %v1245_v4  ;;  %v1247_v10 = vadd.f32 %v1237_v21, %v1199_v5 }
 0x188   : > { %v1272_v11 = vmax.f32 %v1264_v7, 0.0  ;;  %v1266_v12 = vadd.f32 %v1258_v0, %v1246_v8 }
 0x189   : > { %v1273_v13 = vmax.f32 %v1265_v9, 0.0  ;;  %v1267_v14 = vadd.f32 %v1259_v6, %v1247_v10  ;;  %1310 = sbr.rel (!%p1850_p6) target bundleno = 408 (0x198), region = 124 }
 0x18a   : > { %v1274_v15 = vmax.f32 %v1266_v12, 0.0 }
 0x18b   : > { %v1587_v16 = vpack.c.bf16 %v1273_v13, %v1272_v11  ;;  %v1275_v17 = vmax.f32 %v1267_v14, 0.0 }
 0x18c   : > { %v1350_v20 = vld [vmem:[%s619_s15] sm:$0xff] (%p1850_p6) }
 0x18d   : > { %1302 = vst [vmem:[%s619_s15 + $0x10] sm:$0xff] %v1587_v16  ;;  %v1588_v19 = vpack.c.bf16 %v1275_v17, %v1274_v15  ;;  %1351 = vst [vmem:[%s1316_s7] sm:$0xff] (%p1850_p6), %v1350_v20 }
 0x18e   : > { %v1352_v18 = vld [vmem:[%s619_s15 + $0x8] sm:$0xff] (%p1850_p6) }
 0x18f   : > { %1303 = vst [vmem:[%s619_s15 + $0x18] sm:$0xff] %v1588_v19  ;;  %1353 = vst [vmem:[%s1316_s7 + $0x40] sm:$0xff] (%p1850_p6), %v1352_v18 }
 0x194   : > { %v1354_v22 = vld [vmem:[%s619_s15 + $0x10] sm:$0xff] }
 0x195   : > { %1355 = vst [vmem:[%s1316_s7 + $0x80] sm:$0xff] %v1354_v22 }
 0x196   : > { %v1356_v21 = vld [vmem:[%s619_s15 + $0x18] sm:$0xff] }
 0x197   : > { %1357 = vst [vmem:[%s1316_s7 + $0xc0] sm:$0xff] %v1356_v21 }
 0x198 PF: > { %s14_s19 = sadd.s32 1, %s1784_s19   ;;  %s2143_s15 = smov %s1772_s16 }
 0x199   : > { %p11_p12 = scmp.ge.s32.totalorder %s14_s19, 10   ;;  %s2144_s16 = smov %s1855_s26 }
 0x19a   : > { %s2145_s17 = smov %s1780_s18  ;;  %s2146_s18 = smov %s2148_s20 }
 0x19b   :  { %13 = sbr.rel (!%p11_p12) target bundleno = 3 (0x3), region = 207 }

// kernel: f_classification_forward.21
= control target key start
LH: loop header
LB: loop body
LE: loop exit
PB: predicated region body
PF: predicated region fallthrough
CT: control target
= control target key end

     0   :  { %s1021_s12 = smov 0   ;;  %s1023_s13 = smov 0   ;;  %s1137_s0 = inlined_call_operand.vmem [shape: bf16[16,2048], index: 0, kind: input, shape index: {}]   ;;  %s1138_s1 = inlined_call_operand.vmem [shape: bf16[2048,128], index: 1, kind: input, shape index: {}]   ;;  %s1139_s2 = inlined_call_operand.vmem [shape: f32[1,128], index: 2, kind: input, shape index: {}]   ;;  %s1140_s3 = inlined_call_operand.vmem [shape: f32[16,128], index: 3, kind: output, shape index: {}]  }
   0x1   :  { %s1025_s14 = smov 0   ;;  %s1027_s15 = smov 0  }
   0x2   :  { %s1029_s16 = smov 0  }
   0x3 LB: > { %s25_s17 = sadd.s32 1, %s994_s15  ;;  %p48_p1 = scmp.ne.s32.totalorder %s986_s13, %s982_s12  ;;  %s998_s16 = sphi %s1029_s16, %s13_s16   ;;  %s994_s15 = sphi %s1027_s15, %s1144_s15   ;;  %s990_s14 = sphi %s1025_s14, %s1143_s14   ;;  %s986_s13 = sphi %s1023_s13, %s1142_s13   ;;  %s982_s12 = sphi %s1021_s12, %s1141_s12  }
   0x4   : > { %p26_p0 = scmp.ge.s32.totalorder %s25_s17, 4  ;;  %p49_p2 = scmp.eq.s32.totalorder %s998_s16, 0 }
   0x5   : > { %s41_s19 = sadd.s32 1, %s986_s13  ;;  %p785_p5 = scmp.ge.s32.totalorder %s998_s16, 4 }
   0x6   : > { %s1146_s17 = smov (%p26_p0, %s25_s17), 0  ;;  %p50_p3 = por %p49_p2, %p48_p1 }
   0x7   : > { %s37_s18 = ssub.s32 %s994_s15, %s1146_s17  ;;  %162 = sbr.rel (%p785_p5) target bundleno = 21 (0x15), region = 20 }
   0x8   : > { %p39_p4 = scmp.eq.s32.totalorder %s37_s18, 0 }
   0xa   : > { %s1056_s20 = scalar_select %p39_p4, %s986_s13, %s41_s19  }
   0xe   : > { %165 = sbr.rel (!%p50_p3) target bundleno = 21 (0x15), region = 24  ;;  %s167_s21 = sand.u32 (%p50_p3), 1, %s986_s13  }
   0xf   : > { %s836_s22 = sshll.u32 (%p50_p3), %s994_s15, 4  ;;  %s786_s23 = sshll.u32 (%p50_p3), %s167_s21, 5 }
  0x10   : > { %s175_s26 = scalar_lea.vmem (%p50_p3), %s1137_s0, %s836_s22  ;;  %s169_s27 = scalar_lea.vmem (%p50_p3), [#allocation3], %s786_s23 }
  0x11   : > { %v188_v0 = vld [vmem:[%s175_s26] sm:$0xff] (%p50_p3)  ;;  %v190_v1 = vld [vmem:[%s175_s26 + $0x8] sm:$0xff] (%p50_p3) }
  0x12   : > { %v192_v2 = vld [vmem:[%s175_s26 + $0x40] sm:$0xff] (%p50_p3)  ;;  %189 = vst [vmem:[%s169_s27] sm:$0xff] (%p50_p3), %v188_v0  ;;  %191 = vst [vmem:[%s169_s27 + $0x8] sm:$0xff] (%p50_p3), %v190_v1  ;;  %v194_v3 = vld [vmem:[%s175_s26 + $0x48] sm:$0xff] (%p50_p3) }
  0x13   : > { %193 = vst [vmem:[%s169_s27 + $0x10] sm:$0xff] (%p50_p3), %v192_v2  ;;  %195 = vst [vmem:[%s169_s27 + $0x18] sm:$0xff] (%p50_p3), %v194_v3 }
  0x15 PF: > { %p789_p6 = scmp.ge.s32.totalorder %s998_s16, 1  ;;  %p212_p7 = scmp.lt.s32.totalorder %s998_s16, 5 }
  0x17   : > { %p213_p8 = pnand %p789_p6, %p212_p7 }
  0x18   : > { %s219_s28 = sand.u32 (!%p213_p8), 1, %s982_s12   ;;  %s791_s29 = sshll.u32 (!%p213_p8), %s990_s14, 6 }
  0x19   : > { %216 = sbr.rel (%p213_p8) target bundleno = 306 (0x132), region = 51  ;;  %s790_s30 = sshll.u32 (!%p213_p8), %s219_s28, 5 }
  0x1a   : > { %p259_p9 = scmp.lt.s32.totalorder (!%p213_p8), %s791_s29, 255  ;;  %s1073_s8 = scalar_lea.vmem (!%p213_p8), [#allocation3], %s790_s30 }
  0x1b   : > { %p793_p10 = scmp.ne.s32.totalorder (!%p213_p8), %s990_s14, 0 }
  0x20   : > { %s1148_s29 = smov (!%p259_p9, %s791_s29), 255  ;;  %283 = sbr.rel (%p793_p10) target bundleno = 39 (0x27), region = 59 }
  0x21   : > { %s792_s4 = sshll.u32 %s1148_s29, 2  ;;  %v1000_v4 = vmov (!%p793_p10), 0.0  }
  0x22   : > { %s1071_s7 = scalar_lea.vmem %s1138_s1, %s792_s4  ;;  %284 = vst [vmem:[#allocation2] sm:$0xff] (!%p793_p10), %v1000_v4  ;;  %285 = vst [vmem:[#allocation2 + $0x8] sm:$0xff] (!%p793_p10), %v1000_v4 }
  0x27 PF: > { %v922_v5 = vld [vmem:[%s1071_s7 + $0x40] sm:$0xff]   ;;  %v926_v9 = vld [vmem:[%s1071_s7 + $0x48] sm:$0xff]   ;;  %v930_v13 = vld [vmem:[%s1071_s7 + $0x50] sm:$0xff]   ;;  %p830_p11 = scmp.ne.s32.totalorder %s990_s14, 3 }
  0x28   : > { %v923_v6 = vld [vmem:[%s1071_s7 + $0xc0] sm:$0xff]   ;;  %837 = vmatprep.subr.bf16.mxu0 %v922_v5  ;;  %v927_v10 = vld [vmem:[%s1071_s7 + $0xc8] sm:$0xff]   ;;  %v931_v14 = vld [vmem:[%s1071_s7 + $0xd0] sm:$0xff]  }
  0x29   : > { %v924_v7 = vld [vmem:[%s1071_s7] sm:$0xff]   ;;  %859 = vmatprep.subr.bf16.mxu1 %v923_v6  ;;  %v928_v11 = vld [vmem:[%s1071_s7 + $0x8] sm:$0xff]   ;;  %v932_v15 = vld [vmem:[%s1071_s7 + $0x10] sm:$0xff]  }
  0x2a   : > { %v925_v8 = vld [vmem:[%s1071_s7 + $0x80] sm:$0xff]   ;;  %838 = vmatpush3.bf16.msra.mxu0 %v924_v7  ;;  %v929_v12 = vld [vmem:[%s1071_s7 + $0x88] sm:$0xff]   ;;  %v933_v16 = vld [vmem:[%s1071_s7 + $0x90] sm:$0xff]  }
  0x2b   : > { %860 = vmatpush3.bf16.msra.mxu1 %v925_v8  ;;  %839 = vmatprep.subr.bf16.mxu0 %v926_v9  ;;  %v934_v17 = vld [vmem:[%s1071_s7 + $0x58] sm:$0xff]   ;;  %v938_v21 = vld [vmem:[%s1071_s7 + $0x60] sm:$0xff]   ;;  %v942_v25 = vld [vmem:[%s1071_s7 + $0x68] sm:$0xff]  }
  0x2c   : > { %861 = vmatprep.subr.bf16.mxu1 %v927_v10  ;;  %v935_v18 = vld [vmem:[%s1071_s7 + $0xd8] sm:$0xff]   ;;  %v939_v22 = vld [vmem:[%s1071_s7 + $0xe0] sm:$0xff]   ;;  %v943_v26 = vld [vmem:[%s1071_s7 + $0xe8] sm:$0xff]  }
  0x2d   : > { %v936_v19 = vld [vmem:[%s1071_s7 + $0x18] sm:$0xff]   ;;  %v940_v23 = vld [vmem:[%s1071_s7 + $0x20] sm:$0xff]   ;;  %v944_v27 = vld [vmem:[%s1071_s7 + $0x28] sm:$0xff]  }
  0x2e   : > { %840 = vmatpush3.bf16.msra.mxu0 %v928_v11  ;;  %v937_v20 = vld [vmem:[%s1071_s7 + $0x98] sm:$0xff]   ;;  %v941_v24 = vld [vmem:[%s1071_s7 + $0xa0] sm:$0xff]   ;;  %v945_v28 = vld [vmem:[%s1071_s7 + $0xa8] sm:$0xff]  }
  0x2f   : > { %862 = vmatpush3.bf16.msra.mxu1 %v929_v12  ;;  %841 = vmatprep.subr.bf16.mxu0 %v930_v13  ;;  %v946_v29 = vld [vmem:[%s1071_s7 + $0x70] sm:$0xff]   ;;  %v950_v33 = vld [vmem:[%s1071_s7 + $0x78] sm:$0xff]   ;;  %v286_v50 = vld [vmem:[#allocation2] sm:$0xff] }
  0x30   : > { %863 = vmatprep.subr.bf16.mxu1 %v931_v14  ;;  %v947_v30 = vld [vmem:[%s1071_s7 + $0xf0] sm:$0xff]   ;;  %v951_v34 = vld [vmem:[%s1071_s7 + $0xf8] sm:$0xff]   ;;  %v287_v55 = vld [vmem:[#allocation2 + $0x8] sm:$0xff] }
  0x31   : > { %v948_v31 = vld [vmem:[%s1071_s7 + $0x30] sm:$0xff]   ;;  %v952_v35 = vld [vmem:[%s1071_s7 + $0x38] sm:$0xff]   ;;  %v831_v60 = vld [vmem:[%s1139_s2] ss:$0 sm:$0xff] (!%p830_p11) }
  0x32   : > { %842 = vmatpush3.bf16.msra.mxu0 %v932_v15  ;;  %v949_v32 = vld [vmem:[%s1071_s7 + $0xb0] sm:$0xff]   ;;  %v953_v36 = vld [vmem:[%s1071_s7 + $0xb8] sm:$0xff]  }
  0x33   : > { %864 = vmatpush3.bf16.msra.mxu1 %v933_v16  ;;  %843 = vmatprep.subr.bf16.mxu0 %v934_v17  ;;  %v954_v37 = vld [vmem:[%s1073_s8] ss:$16 sps:$4 sm:$0xff]   ;;  %v956_v38 = vld [vmem:[%s1073_s8 + $0x4] ss:$16 sps:$4 sm:$0xff]   ;;  %v957_v39 = vld [vmem:[%s1073_s8 + $0x8] ss:$16 sps:$4 sm:$0xff]  }
  0x34   : > { %865 = vmatprep.subr.bf16.mxu1 %v935_v18  ;;  %v959_v40 = vld [vmem:[%s1073_s8 + $0xc] ss:$16 sps:$4 sm:$0xff]   ;;  %600 = vmatprep.mubr.bf16.mxu0 %v956_v38 }
  0x35   : > { %641 = vmatprep.mubr.bf16.mxu1 %v959_v40 }
  0x36   : > { %844 = vmatpush3.bf16.msra.mxu0 %v936_v19 }
  0x37   : > { %866 = vmatpush3.bf16.msra.mxu1 %v937_v20  ;;  %845 = vmatprep.subr.bf16.mxu0 %v938_v21 }
  0x38   : > { %867 = vmatprep.subr.bf16.mxu1 %v939_v22 }
  0x3a   : > { %846 = vmatpush3.bf16.msra.mxu0 %v940_v23 }
  0x3b   : > { %868 = vmatpush3.bf16.msra.mxu1 %v941_v24  ;;  %847 = vmatprep.subr.bf16.mxu0 %v942_v25 }
  0x3c   : > { %869 = vmatprep.subr.bf16.mxu1 %v943_v26 }
  0x3e   : > { %848 = vmatpush3.bf16.msra.mxu0 %v944_v27 }
  0x3f   : > { %870 = vmatpush3.bf16.msra.mxu1 %v945_v28  ;;  %849 = vmatprep.subr.bf16.mxu0 %v946_v29 }
  0x40   : > { %871 = vmatprep.subr.bf16.mxu1 %v947_v30 }
  0x42   : > { %850 = vmatpush3.bf16.msra.mxu0 %v948_v31 }
  0x43   : > { %872 = vmatpush3.bf16.msra.mxu1 %v949_v32  ;;  %851 = vmatprep.subr.bf16.mxu0 %v950_v33 }
  0x44   : > { %873 = vmatprep.subr.bf16.mxu1 %v951_v34 }
  0x46   : > { %852 = vmatpush3.bf16.msra.mxu0 %v952_v35 }
  0x47   : > { %874 = vmatpush3.bf16.msra.mxu1 %v953_v36 }
  0x49   : > { %601 = vmatmul.mubr.bf16.vlgmr.msra.gmra.mrb[0].mxu0 %v954_v37 }
  0x4a   : > { %642 = vmatmul.mubr.bf16.vlgmr.msra.gmra.mrb[0].mxu1 %v957_v39 }
 0x11c   : > { %v853_v41 = vpop.f32.mrb[0].mxu0 }
 0x11d   : > { %v875_v42 = vpop.f32.mrb[0].mxu1  ;;  %v854_v43 = vpop.f32.mrb[1].mxu0 }
 0x11e   : > { %v855_v44 = vadd.f32 %v854_v43, %v853_v41  ;;  %v876_v45 = vpop.f32.mrb[1].mxu1  ;;  %v856_v46 = vpop.f32.mrb[2].mxu0 }
 0x11f   : > { %v877_v47 = vadd.f32 %v876_v45, %v875_v42  ;;  %v878_v48 = vpop.f32.mrb[2].mxu1  ;;  %v857_v49 = vpop.f32.mrb[3].mxu0 }
 0x120   : > { %v858_v51 = vadd.f32 %v857_v49, %v856_v46  ;;  %v879_v52 = vpop.f32.mrb[3].mxu1 }
 0x121   : > { %v644_v53 = vadd.f32 %v877_v47, %v855_v44  ;;  %v880_v54 = vadd.f32 %v879_v52, %v878_v48  ;;  %657 = sbr.rel (%p830_p11) target bundleno = 306 (0x132), region = 63 }
 0x123   : > { %v650_v56 = vadd.f32 %v644_v53, %v286_v50  ;;  %v647_v57 = vadd.f32 %v880_v54, %v858_v51 }
 0x125   : > { %652 = vst [vmem:[#allocation2] sm:$0xff] %v650_v56  ;;  %v651_v58 = vadd.f32 %v647_v57, %v287_v55 }
 0x127   : > { %653 = vst [vmem:[#allocation2 + $0x8] sm:$0xff] %v651_v58 }
 0x12c   : > { %v658_v59 = vld [vmem:[#allocation2] sm:$0xff] }
 0x12d   : > { %v667_v62 = vadd.f32 %v831_v60, %v658_v59 }
 0x12e   : > { %v659_v61 = vld [vmem:[#allocation2 + $0x8] sm:$0xff] }
 0x12f   : > { %v668_v63 = vadd.f32 %v831_v60, %v659_v61  ;;  %669 = vst [vmem:[%s1140_s3] sm:$0xff] %v667_v62 }
 0x131   : > { %670 = vst [vmem:[%s1140_s3 + $0x8] sm:$0xff] %v668_v63 }
 0x132 PF: > { %s13_s16 = sadd.s32 1, %s998_s16   ;;  %s1141_s12 = smov %s986_s13 }
 0x133   : > { %p10_p12 = scmp.ge.s32.totalorder %s13_s16, 6   ;;  %s1142_s13 = smov %s1056_s20 }
 0x134   : > { %s1143_s14 = smov %s994_s15  ;;  %s1144_s15 = smov %s1146_s17 }
 0x135   :  { %12 = sbr.rel (!%p10_p12) target bundleno = 3 (0x3), region = 104 }

</bundles_post_ra>
